<compile_context>
chip_gen: v5e
topology: v5e:2x2
jax: 0.10.0
libtpu: 0.0.40
codegen_flags: <defaults>
</compile_context>

<pallas_src>
import functools

import jax
import jax.numpy as jnp
from jax.experimental import pallas as pl
from jax.experimental.pallas import tpu as pltpu

EPS = 1e-5
MXU_DTYPE = jnp.bfloat16   # MXU operand dtype (f32 accumulation)
ACT_DTYPE = jnp.bfloat16   # inter-kernel activation storage dtype

# -----------------------------------------------------------------------------
# VMEM budget / tile helpers
# -----------------------------------------------------------------------------
_VMEM_LIMIT = None


def _vmem_limit():
    global _VMEM_LIMIT
    if _VMEM_LIMIT is None:
        try:
            cap = int(pltpu.get_tpu_info().vmem_capacity_bytes)
        except Exception:
            cap = 64 * 1024 * 1024
        _VMEM_LIMIT = max(16 * 1024 * 1024,
                          min(int(cap * 3) // 4, cap - (8 << 20)))
    return _VMEM_LIMIT


def _cparams(sem):
    return pltpu.CompilerParams(dimension_semantics=sem,
                                vmem_limit_bytes=_vmem_limit())


def _pick_lane_tile(lanes, per_lane_bytes, budget):
    """Largest multiple-of-128 tile dividing `lanes` that fits the budget."""
    cap = max(128, (budget // max(per_lane_bytes, 1)) // 128 * 128)
    cap = min(cap, 8192)
    t = max(128, min(lanes, cap) // 128 * 128)
    while lanes % t:
        t -= 128
    return t


def _pick_row_tile(rows, cap):
    if rows % 8:
        return rows
    t = max(8, min(rows, cap) // 8 * 8)
    while rows % t:
        t -= 8
    return t


def _mxu_dot(a, b, dims=None):
    """2-D dot on the MXU with bf16 operands and f32 accumulation."""
    a = a.astype(MXU_DTYPE)
    b = b.astype(MXU_DTYPE)
    if dims is None:
        return jnp.dot(a, b, preferred_element_type=jnp.float32)
    return jax.lax.dot_general(a, b, (dims, ((), ())),
                               preferred_element_type=jnp.float32)


# -----------------------------------------------------------------------------
# Shared-LHS 1x1 conv matmul (1-2 inputs = fused concat), fused bias/ReLU
# -----------------------------------------------------------------------------
def _mm_lhs_kernel(*refs, n_in, relu):
    w_refs = refs[:n_in]
    b_ref = refs[n_in]
    x_refs = refs[n_in + 1:2 * n_in + 1]
    o_ref = refs[2 * n_in + 1]
    acc = b_ref[...]                                   # (M, 1) f32
    for w_ref, x_ref in zip(w_refs, x_refs):
        acc = acc + _mxu_dot(w_ref[...], x_ref[0])     # (M, TL)
    if relu:
        acc = jnp.maximum(acc, 0.0)
    o_ref[0] = acc.astype(o_ref.dtype)


def conv1x1_fused(ws, xs, bias, *, relu=False, out_dtype=ACT_DTYPE):
    """act(sum_i ws[i] @ xs[i] + bias); ws[i]: (M, K_i), xs[i]: (N, K_i, L)."""
    n_in = len(ws)
    N, _, L = xs[0].shape
    M = ws[0].shape[0]
    Mp = -(-M // 8) * 8                                # sublane-dense stores
    if Mp != M:
        ws = [jnp.pad(w, ((0, Mp - M), (0, 0))) for w in ws]
        bias = jnp.pad(bias, (0, Mp - M))
    Lp = -(-L // 128) * 128                            # lane-dense tiles
    if Lp != L:
        xs = [jnp.pad(x, ((0, 0), (0, 0), (0, Lp - L))) for x in xs]
    ksum = sum(int(w.shape[1]) for w in ws)
    per_lane = (ksum * 2 + Mp * jnp.dtype(out_dtype).itemsize) * 2
    TL = _pick_lane_tile(Lp, per_lane, _vmem_limit() // 3)

    in_specs = [pl.BlockSpec(tuple(w.shape), lambda n, j: (0, 0)) for w in ws]
    in_specs.append(pl.BlockSpec((Mp, 1), lambda n, j: (0, 0)))
    in_specs += [pl.BlockSpec((1, int(w.shape[1]), TL), lambda n, j: (n, 0, j))
                 for w in ws]
    out = pl.pallas_call(
        functools.partial(_mm_lhs_kernel, n_in=n_in, relu=relu),
        out_shape=jax.ShapeDtypeStruct((N, Mp, Lp), out_dtype),
        grid=(N, Lp // TL),
        in_specs=in_specs,
        out_specs=pl.BlockSpec((1, Mp, TL), lambda n, j: (n, 0, j)),
        compiler_params=_cparams(("parallel", "parallel")),
    )(*[w.astype(MXU_DTYPE) for w in ws],
      bias.reshape(Mp, 1).astype(jnp.float32),
      *[x.astype(ACT_DTYPE) for x in xs])
    if Mp != M or Lp != L:
        out = out[:, :M, :L]
    return out


# -----------------------------------------------------------------------------
# Shared-RHS matmul (separable bilinear upsample), optional `res*y + res`
# -----------------------------------------------------------------------------
def _mm_rhs_kernel(x_ref, r_ref, o_ref):
    o_ref[...] = _mxu_dot(x_ref[...], r_ref[...]).astype(o_ref.dtype)


def _mm_rhs_res_kernel(x_ref, r_ref, res_ref, o_ref):
    y = _mxu_dot(x_ref[...], r_ref[...])
    res = res_ref[...].astype(jnp.float32)
    o_ref[...] = (res * y + res).astype(o_ref.dtype)


def matmul_rhs(x, rhs, *, residual=None, out_dtype=ACT_DTYPE, row_cap=2048):
    R, K = x.shape
    Wd = rhs.shape[1]
    TM = _pick_row_tile(R, row_cap)
    in_specs = [pl.BlockSpec((TM, K), lambda i: (i, 0)),
                pl.BlockSpec((K, Wd), lambda i: (0, 0))]
    args = [x.astype(ACT_DTYPE), rhs.astype(MXU_DTYPE)]
    kern = _mm_rhs_kernel
    if residual is not None:
        in_specs.append(pl.BlockSpec((TM, Wd), lambda i: (i, 0)))
        args.append(residual.astype(ACT_DTYPE))
        kern = _mm_rhs_res_kernel
    return pl.pallas_call(
        kern,
        out_shape=jax.ShapeDtypeStruct((R, Wd), out_dtype),
        grid=(R // TM,),
        in_specs=in_specs,
        out_specs=pl.BlockSpec((TM, Wd), lambda i: (i, 0)),
        compiler_params=_cparams(("parallel",)),
    )(*args)


# -----------------------------------------------------------------------------
# 3x3 conv (stride 1, pad 1), BN(+ReLU) folded: 9 shifted matmuls per input,
# column-boundary masking -> emits only valid outputs.  1 or 2 inputs (concat).
# -----------------------------------------------------------------------------
def _conv3x3_kernel(*refs, n_in, W, HW, relu):
    mL = refs[0][...]                                  # (1, HW) f32
    mR = refs[1][...]
    w_refs = refs[2:2 + n_in]                          # (9, Cout, Ci) bf16
    b_ref = refs[2 + n_in]                             # (Cout, 1) f32
    x_refs = refs[3 + n_in:3 + 2 * n_in]               # (1, Ci, LB) bf16
    o_ref = refs[3 + 2 * n_in]
    xs = [xr[0] for xr in x_refs]                      # load once, slice bf16

    def tap_group(dj):
        acc = None
        for di in range(3):
            off = di * W + dj                          # = 1 + di*W + (dj-1)
            t = di * 3 + dj
            for w_ref, x in zip(w_refs, xs):
                p = _mxu_dot(w_ref[t], x[:, off:off + HW])
                acc = p if acc is None else acc + p
        return acc

    y = tap_group(1) + b_ref[...]                      # centre column, + bias
    y = y + tap_group(0) * mL                          # left taps, mask col 0
    y = y + tap_group(2) * mR                          # right taps, mask col W-1
    if relu:
        y = jnp.maximum(y, 0.0)
    o_ref[0] = y.astype(o_ref.dtype)


def conv3x3_fused(xs, w9s, bias, *, relu):
    """xs[i]: (N, Ci, H, W); w9s[i]: (9, Cout, Ci); bias: (Cout,) -> (N, Cout, H*W)."""
    N, _, H, W = xs[0].shape
    Cout = w9s[0].shape[1]
    HW = H * W
    LB = HW + 2 * W + 3                                # lead 1 + H-pad rows + tail 2
    flats = []
    for x in xs:
        Ci = x.shape[1]
        xp = jnp.pad(x.astype(ACT_DTYPE), ((0, 0), (0, 0), (1, 1), (0, 0)))
        flats.append(jnp.pad(xp.reshape(N, Ci, (H + 2) * W),
                             ((0, 0), (0, 0), (1, 2))))
    col = jnp.arange(HW, dtype=jnp.int32) % W
    maskL = (col != 0).astype(jnp.float32).reshape(1, HW)
    maskR = (col != W - 1).astype(jnp.float32).reshape(1, HW)

    n_in = len(xs)
    in_specs = [pl.BlockSpec((1, HW), lambda n: (0, 0)),
                pl.BlockSpec((1, HW), lambda n: (0, 0))]
    in_specs += [pl.BlockSpec(tuple(w9.shape), lambda n: (0, 0, 0)) for w9 in w9s]
    in_specs.append(pl.BlockSpec((Cout, 1), lambda n: (0, 0)))
    in_specs += [pl.BlockSpec((1, int(f.shape[1]), LB), lambda n: (n, 0, 0))
                 for f in flats]
    return pl.pallas_call(
        functools.partial(_conv3x3_kernel, n_in=n_in, W=W, HW=HW, relu=relu),
        out_shape=jax.ShapeDtypeStruct((N, Cout, HW), ACT_DTYPE),
        grid=(N,),
        in_specs=in_specs,
        out_specs=pl.BlockSpec((1, Cout, HW), lambda n: (n, 0, 0)),
        compiler_params=_cparams(("parallel",)),
    )(maskL, maskR,
      *[w9.astype(MXU_DTYPE) for w9 in w9s],
      bias.reshape(Cout, 1).astype(jnp.float32),
      *flats)


# -----------------------------------------------------------------------------
# Depthwise 3x3 stride-2 conv, BN folded: 4 parity planes, contiguous lane shifts
# -----------------------------------------------------------------------------
def _dwconv_kernel(w_ref, b_ref, x_ref, o_ref, *, Wo1, LP):
    x = x_ref[0]                                       # (4, C, LPp) bf16
    w = w_ref[...]                                     # (C, 9) f32
    acc = b_ref[...]                                   # (C, 1) f32
    for di in range(3):
        for dj in range(3):
            t = di * 3 + dj
            pidx = (di & 1) * 2 + (dj & 1)
            shift = (di >> 1) * Wo1 + (dj >> 1)
            tap = x[pidx, :, shift:shift + LP]         # (C, LP)
            acc = acc + tap.astype(jnp.float32) * w[:, t:t + 1]
    o_ref[0] = acc.astype(o_ref.dtype)


def dwconv_s2_fused(x, w, bias):
    """x: (N, C, H, W); w: (C, 9); bias: (C, 1) -> (N, C, Ho, Wo)."""
    N, C, H, W = x.shape
    Ho, Wo = (H + 1) // 2, (W + 1) // 2
    Ho1, Wo1 = Ho + 1, Wo + 1
    Hq, Wq = 2 * Ho1, 2 * Wo1
    LP = Ho1 * Wo1
    LPp = LP + Wo1 + 1
    xq = jnp.pad(x.astype(ACT_DTYPE),
                 ((0, 0), (0, 0), (1, Hq - H - 1), (1, Wq - W - 1)))
    planes = jnp.stack([xq[:, :, pr::2, pc::2].reshape(N, C, LP)
                        for pr in (0, 1) for pc in (0, 1)], axis=1)  # (N,4,C,LP)
    planes = jnp.pad(planes, ((0, 0), (0, 0), (0, 0), (0, LPp - LP)))
    out = pl.pallas_call(
        functools.partial(_dwconv_kernel, Wo1=Wo1, LP=LP),
        out_shape=jax.ShapeDtypeStruct((N, C, LP), ACT_DTYPE),
        grid=(N,),
        in_specs=[pl.BlockSpec((C, 9), lambda n: (0, 0)),
                  pl.BlockSpec((C, 1), lambda n: (0, 0)),
                  pl.BlockSpec((1, 4, C, LPp), lambda n: (n, 0, 0, 0))],
        out_specs=pl.BlockSpec((1, C, LP), lambda n: (n, 0, 0)),
        compiler_params=_cparams(("parallel",)),
    )(w.astype(jnp.float32), bias.astype(jnp.float32), planes)
    # drop the junk row/column of the (Ho+1, Wo+1) output grid (small tensor)
    return out.reshape(N, C, Ho1, Wo1)[:, :, :Ho, :Wo]


# -----------------------------------------------------------------------------
# SpatialGCN: k/v/q + softmax attention + wg + out + residual ReLU, per batch
# -----------------------------------------------------------------------------
def _sgcn_kernel(wk_ref, bk_ref, wv_ref, bv_ref, wq_ref, bq_ref,
                 wwg_ref, bwg_ref, wo_ref, bo_ref, x_ref, o_ref):
    x = x_ref[0]                                           # (P, l) bf16
    k = _mxu_dot(wk_ref[...], x) + bk_ref[...]             # (c, l) f32
    v = _mxu_dot(wv_ref[...], x) + bv_ref[...]
    q = _mxu_dot(wq_ref[...], x) + bq_ref[...]
    s = _mxu_dot(q, v, dims=((1,), (1,)))                  # (c, c) = Q V^T
    s = s - jnp.max(s, axis=-1, keepdims=True)
    p = jnp.exp(s)
    p = p * pl.reciprocal(jnp.sum(p, axis=-1, keepdims=True), approx=False)
    av = _mxu_dot(p, k, dims=((0,), (0,)))                 # softmax^T K, (c, l)
    avw = _mxu_dot(wwg_ref[...], av) + bwg_ref[...]        # conv_wg + bn_wg
    out = _mxu_dot(wo_ref[...], avw) + bo_ref[...]         # out conv + bn_out
    o_ref[0] = jnp.maximum(out + x.astype(jnp.float32), 0.0).astype(o_ref.dtype)


def sgcn_forward(sp, x):
    """x: (N, P, l) -> (N, P, l)."""
    N, P, l = x.shape
    ip = sp["wk"].shape[0]
    wmap = lambda b: (0, 0)
    xmap = lambda b: (b, 0, 0)
    return pl.pallas_call(
        _sgcn_kernel,
        out_shape=jax.ShapeDtypeStruct((N, P, l), ACT_DTYPE),
        grid=(N,),
        in_specs=[
            pl.BlockSpec((ip, P), wmap), pl.BlockSpec((ip, 1), wmap),
            pl.BlockSpec((ip, P), wmap), pl.BlockSpec((ip, 1), wmap),
            pl.BlockSpec((ip, P), wmap), pl.BlockSpec((ip, 1), wmap),
            pl.BlockSpec((ip, ip), wmap), pl.BlockSpec((ip, 1), wmap),
            pl.BlockSpec((P, ip), wmap), pl.BlockSpec((P, 1), wmap),
            pl.BlockSpec((1, P, l), xmap),
        ],
        out_specs=pl.BlockSpec((1, P, l), xmap),
        compiler_params=_cparams(("parallel",)),
    )(sp["wk"], sp["bk"], sp["wv"], sp["bv"], sp["wq"], sp["bq"],
      sp["wwg"], sp["bwg"], sp["wo"], sp["bo"], x.astype(ACT_DTYPE))


# -----------------------------------------------------------------------------
# DualGCN graph-reasoning chain, fully fused per batch
# -----------------------------------------------------------------------------
def _graph_kernel(wphi_ref, bphi_ref, wth_ref, bth_ref, wadj_ref, badj_ref,
                  wwg_ref, bwg_ref, w3_ref, b3_ref, x_ref, o_ref):
    x = x_ref[0]                                           # (P, L) bf16
    xs = _mxu_dot(wphi_ref[...], x) + bphi_ref[...]        # (2r, L)
    bm = _mxu_dot(wth_ref[...], x) + bth_ref[...]          # (r, L)
    z_idt = _mxu_dot(xs, bm, dims=((1,), (1,)))            # (2r, r)
    # conv_adj+bn_adj on z_idt^T, transposed back, + residual (no transposes):
    z = _mxu_dot(z_idt, wadj_ref[...], dims=((1,), (1,))) + badj_ref[...] + z_idt
    z = _mxu_dot(wwg_ref[...], z) + bwg_ref[...]           # conv_wg + bn_wg
    y = _mxu_dot(z, bm)                                    # (2r, L)
    y = _mxu_dot(w3_ref[...], y) + b3_ref[...]             # conv3 + bn3
    o_ref[0] = jnp.maximum(x.astype(jnp.float32) + y, 0.0).astype(o_ref.dtype)


def graph_forward(gp, x):
    """x: (N, P, L) -> (N, P, L)."""
    N, P, L = x.shape
    r = gp["wth"].shape[0]
    r2 = gp["wphi"].shape[0]
    wmap = lambda b: (0, 0)
    xmap = lambda b: (b, 0, 0)
    return pl.pallas_call(
        _graph_kernel,
        out_shape=jax.ShapeDtypeStruct((N, P, L), ACT_DTYPE),
        grid=(N,),
        in_specs=[
            pl.BlockSpec((r2, P), wmap), pl.BlockSpec((r2, 1), wmap),
            pl.BlockSpec((r, P), wmap), pl.BlockSpec((r, 1), wmap),
            pl.BlockSpec((r, r), wmap), pl.BlockSpec((1, r), wmap),
            pl.BlockSpec((r2, r2), wmap), pl.BlockSpec((r2, 1), wmap),
            pl.BlockSpec((P, r2), wmap), pl.BlockSpec((P, 1), wmap),
            pl.BlockSpec((1, P, L), xmap),
        ],
        out_specs=pl.BlockSpec((1, P, L), xmap),
        compiler_params=_cparams(("parallel",)),
    )(gp["wphi"], gp["bphi"], gp["wth"], gp["bth"], gp["wadj"], gp["badj_row"],
      gp["wwg"], gp["bwg"], gp["w3"], gp["b3"], x.astype(ACT_DTYPE))


# -----------------------------------------------------------------------------
# Separable bilinear upsample (align_corners=True), fused `x*local + x`
# -----------------------------------------------------------------------------
def _interp_matrix(in_size, out_size):
    if out_size == 1:
        src = jnp.zeros((1,), jnp.float32)
    else:
        src = jnp.arange(out_size, dtype=jnp.float32) * (
            float(in_size - 1) / float(out_size - 1))
    i0 = jnp.clip(jnp.floor(src), 0, in_size - 1).astype(jnp.int32)
    i1 = jnp.minimum(i0 + 1, in_size - 1)
    frac = src - i0.astype(jnp.float32)
    return (jax.nn.one_hot(i0, in_size, dtype=jnp.float32) * (1.0 - frac)[:, None]
            + jax.nn.one_hot(i1, in_size, dtype=jnp.float32) * frac[:, None])


def upsample_mulres(loc, res, H, W):
    """res * bilinear_up(loc, (H, W)) + res; loc: (N, P, h, w), res: (N, P, H*W)."""
    N, P, h, w = loc.shape
    WhT = _interp_matrix(h, H).T                       # (h, H)
    WwT = _interp_matrix(w, W).T                       # (w, W)
    # pass 1: interpolate along H (rows = (n, p, w-col)); small transpose only
    x1 = jnp.transpose(loc, (0, 1, 3, 2)).reshape(N * P * w, h)
    y1 = matmul_rhs(x1, WhT)                           # (N*P*w, H)
    # pass 2: interpolate along W with the residual epilogue fused
    x2 = jnp.transpose(y1.reshape(N, P, w, H), (0, 1, 3, 2)).reshape(N * P * H, w)
    y2 = matmul_rhs(x2, WwT, residual=res.reshape(N * P * H, W))
    return y2.reshape(N, P, H * W)


# -----------------------------------------------------------------------------
# Module forward passes (activations (N, C, L) bf16 throughout)
# -----------------------------------------------------------------------------
def dualgcn_forward(fp, x1, N, H, W):
    P = x1.shape[1]
    L = H * W
    # local branch: 3x depthwise 3x3 s2 (+BN folded) -> SpatialGCN
    loc = x1.reshape(N, P, H, W)
    h, w = H, W
    for lvl in fp["local"]:
        loc = dwconv_s2_fused(loc, lvl["w"], lvl["b"])
        h, w = (h + 1) // 2, (w + 1) // 2
    loc = sgcn_forward(fp["sgcn"], loc.reshape(N, P, h * w))
    # upsample + x*local + x (separable, residual fused)
    slf = upsample_mulres(loc.reshape(N, P, h, w), x1, H, W)          # (N,P,L)
    # global graph-reasoning branch (one fused kernel per batch)
    gout = graph_forward(fp["graph"], x1)                             # (N,P,L)
    # final 1x1 conv + BN over concat([slf, gout]); concat fused via split weight
    return conv1x1_fused([fp["wfinal_a"], fp["wfinal_b"]], [slf, gout],
                         fp["bfinal"], relu=False)


def dualgcn_head_forward(fp, x_nchw):
    N, _, H, W = x_nchw.shape
    xb = x_nchw.astype(ACT_DTYPE)                                     # (N,Cin,H,W)
    out1 = conv3x3_fused([xb], [fp["conva_w9"]], fp["conva_b"], relu=True)
    P = out1.shape[1]
    out2 = dualgcn_forward(fp["dualgcn"], out1, N, H, W)              # (N,P,L)
    out3 = conv3x3_fused([out2.reshape(N, P, H, W)], [fp["convb_w9"]],
                         fp["convb_b"], relu=True)
    # bottleneck 3x3 over concat([x, out3]); concat fused via split weights
    out4 = conv3x3_fused([xb, out3.reshape(N, P, H, W)],
                         [fp["btl_w9_x"], fp["btl_w9_p"]], fp["btl_b"], relu=True)
    logits = conv1x1_fused([fp["cls_w"]], [out4], fp["cls_b"],
                           relu=False, out_dtype=jnp.float32)         # (N,ncls,L)
    return logits.reshape(N, -1, H, W)


# -----------------------------------------------------------------------------
# Parameter init (PyTorch-style raw params) + one-time BN folding (outside jit)
# -----------------------------------------------------------------------------
class _PRNG:
    def __init__(self, key):
        self.key = key

    def next(self):
        self.key, sub = jax.random.split(self.key)
        return sub


def init_params(key, inplanes, interplanes, num_classes):
    rng = _PRNG(key)
    P = interplanes
    r = P // 4
    r2 = 2 * r
    ip = P // 2

    def conv_w(cout, cin, k=1):
        fan_in = float(cin * k * k)
        return jax.random.normal(rng.next(), (cout, cin, k, k),
                                 jnp.float32) / jnp.sqrt(fan_in)

    def dw_w(c):
        return jax.random.normal(rng.next(), (c, 1, 3, 3), jnp.float32) / 3.0

    def bias(c):
        return 0.05 * jax.random.normal(rng.next(), (c,), jnp.float32)

    def bn(c):
        return dict(
            gamma=1.0 + 0.1 * jax.random.normal(rng.next(), (c,), jnp.float32),
            beta=0.1 * jax.random.normal(rng.next(), (c,), jnp.float32),
            mean=0.1 * jax.random.normal(rng.next(), (c,), jnp.float32),
            var=0.5 + jax.random.uniform(rng.next(), (c,), jnp.float32),
        )

    sgcn = dict(
        k_w=conv_w(ip, P), k_b=bias(ip),
        v_w=conv_w(ip, P), v_b=bias(ip),
        q_w=conv_w(ip, P), q_b=bias(ip),
        wg_w=conv_w(ip, ip), bn_wg=bn(ip),
        out_w=conv_w(P, ip), out_b=bias(P), bn_out=bn(P),
    )
    local = [dict(w=dw_w(P), bn=bn(P)) for _ in range(3)]
    dual = dict(
        local=local, sgcn=sgcn,
        phi_w=conv_w(r2, P), bn_phi=bn(r2),
        theta_w=conv_w(r, P), bn_theta=bn(r),
        adj_w=conv_w(r, r), bn_adj=bn(r),
        wg_w=conv_w(r2, r2), bn_wg=bn(r2),
        conv3_w=conv_w(P, r2), bn3=bn(P),
        final_w=conv_w(P, 2 * P), bn_final=bn(P),
    )
    return dict(
        conva_w=conv_w(P, inplanes, 3), bn_a=bn(P),
        dualgcn=dual,
        convb_w=conv_w(P, P, 3), bn_b=bn(P),
        btl_w=conv_w(P, inplanes + P, 3), bn_btl=bn(P),
        cls_w=conv_w(num_classes, P), cls_b=bias(num_classes),
        inplanes=inplanes,
    )


def fold_params(p):
    """Fold eval-mode BN into conv weights/bias, pre-cast matmul weights to bf16."""
    inplanes = p["inplanes"]

    def bnf(bn):
        s = bn["gamma"] / jnp.sqrt(bn["var"] + EPS)
        return s, bn["beta"] - bn["mean"] * s

    def f_conv1x1_bn(w, bn=None, b=None):
        wf = w.reshape(w.shape[0], -1)
        if bn is None:
            s = jnp.ones((w.shape[0],), jnp.float32)
            sh = jnp.zeros_like(s)
        else:
            s, sh = bnf(bn)
        wf = wf * s[:, None]
        bf = sh if b is None else s * b + sh
        return wf.astype(MXU_DTYPE), bf.astype(jnp.float32)

    def f_conv3x3_bn(w, bn):
        s, sh = bnf(bn)
        cout, cin = w.shape[0], w.shape[1]
        w9 = jnp.transpose(w * s[:, None, None, None],
                           (2, 3, 0, 1)).reshape(9, cout, cin)
        return w9.astype(MXU_DTYPE), sh.astype(jnp.float32)

    def f_dw_bn(w, bn):
        s, sh = bnf(bn)
        c = w.shape[0]
        wf = (w.reshape(c, 9) * s[:, None]).astype(jnp.float32)
        return wf, sh.reshape(c, 1).astype(jnp.float32)

    d = p["dualgcn"]
    sg = d["sgcn"]
    ip = sg["k_w"].shape[0]
    sgcn = dict(
        wk=sg["k_w"].reshape(ip, -1).astype(MXU_DTYPE),
        bk=sg["k_b"].reshape(-1, 1).astype(jnp.float32),
        wv=sg["v_w"].reshape(ip, -1).astype(MXU_DTYPE),
        bv=sg["v_b"].reshape(-1, 1).astype(jnp.float32),
        wq=sg["q_w"].reshape(ip, -1).astype(MXU_DTYPE),
        bq=sg["q_b"].reshape(-1, 1).astype(jnp.float32),
    )
    sgcn["wwg"], bwg = f_conv1x1_bn(sg["wg_w"], sg["bn_wg"])
    sgcn["bwg"] = bwg.reshape(-1, 1)
    sgcn["wo"], bo = f_conv1x1_bn(sg["out_w"], sg["bn_out"], sg["out_b"])
    sgcn["bo"] = bo.reshape(-1, 1)

    local = []
    for lv in d["local"]:
        wdw, bdw = f_dw_bn(lv["w"], lv["bn"])
        local.append(dict(w=wdw, b=bdw))

    wphi, bphi = f_conv1x1_bn(d["phi_w"], d["bn_phi"])
    wth, bth = f_conv1x1_bn(d["theta_w"], d["bn_theta"])
    wadj, badj = f_conv1x1_bn(d["adj_w"], d["bn_adj"])
    wwg, bwg = f_conv1x1_bn(d["wg_w"], d["bn_wg"])
    w3, b3 = f_conv1x1_bn(d["conv3_w"], d["bn3"])
    graph = dict(wphi=wphi, bphi=bphi.reshape(-1, 1),
                 wth=wth, bth=bth.reshape(-1, 1),
                 wadj=wadj, badj_row=badj.reshape(1, -1),
                 wwg=wwg, bwg=bwg.reshape(-1, 1),
                 w3=w3, b3=b3.reshape(-1, 1))

    wfin, bfin = f_conv1x1_bn(d["final_w"], d["bn_final"])
    P = wfin.shape[0]
    dual = dict(local=local, sgcn=sgcn, graph=graph,
                wfinal_a=wfin[:, :P], wfinal_b=wfin[:, P:], bfinal=bfin)

    conva_w9, conva_b = f_conv3x3_bn(p["conva_w"], p["bn_a"])
    convb_w9, convb_b = f_conv3x3_bn(p["convb_w"], p["bn_b"])
    btl_w9, btl_b = f_conv3x3_bn(p["btl_w"], p["bn_btl"])
    return dict(
        conva_w9=conva_w9, conva_b=conva_b,
        dualgcn=dual,
        convb_w9=convb_w9, convb_b=convb_b,
        btl_w9_x=btl_w9[:, :, :inplanes], btl_w9_p=btl_w9[:, :, inplanes:],
        btl_b=btl_b,
        cls_w=p["cls_w"].reshape(p["cls_w"].shape[0], -1).astype(MXU_DTYPE),
        cls_b=p["cls_b"].astype(jnp.float32),
    )


# -----------------------------------------------------------------------------
if __name__ == "__main__":
    inplanes, interplanes, num_classes = 8, 16, 4
    N, H, W = 2, 16, 16

    key = jax.random.PRNGKey(0)
    kx, kp = jax.random.split(key)
    x = jax.random.normal(kx, (N, inplanes, H, W), jnp.float32)
    raw_params = init_params(kp, inplanes, interplanes, num_classes)
    params = fold_params(raw_params)        # BN folding + bf16 cast, outside jit

    fwd = jax.jit(dualgcn_head_forward)
    out = fwd(params, x)
    jax.block_until_ready(out)
    assert out.shape == (N, num_classes, H, W), out.shape
    assert bool(jnp.all(jnp.isfinite(out)))
    print("KERNEL_OK")
</pallas_src>

<mosaic_0001>
module attributes {stable_mosaic.version = 11 : i64} {
  func.func @_conv3x3_kernel(%arg0: i32, %arg1: memref<1x256xf32, #tpu.memory_space<vmem>>, %arg2: memref<1x256xf32, #tpu.memory_space<vmem>>, %arg3: memref<9x16x8xbf16, #tpu.memory_space<vmem>>, %arg4: memref<16x1xf32, #tpu.memory_space<vmem>>, %arg5: memref<1x8x291xbf16, #tpu.memory_space<vmem>>, %arg6: memref<1x16x256xbf16, #tpu.memory_space<vmem>>) attributes {dimension_semantics = [#tpu.dimension_semantics<parallel>], iteration_bounds = array<i64: 2>, scalar_prefetch = 0 : i64, scratch_operands = 0 : i64, tpu.core_type = #tpu.core_type<tc>, window_params = [{pipeline_mode = #tpu.pipeline_mode<synchronous>, transform_indices = @transform_0, window_bounds = array<i64: 1, 256>}, {pipeline_mode = #tpu.pipeline_mode<synchronous>, transform_indices = @transform_1, window_bounds = array<i64: 1, 256>}, {pipeline_mode = #tpu.pipeline_mode<synchronous>, transform_indices = @transform_2, window_bounds = array<i64: 9, 16, 8>}, {pipeline_mode = #tpu.pipeline_mode<synchronous>, transform_indices = @transform_3, window_bounds = array<i64: 16, 1>}, {transform_indices = @transform_4, window_bounds = array<i64: 1, 8, 291>}, {transform_indices = @transform_5, window_bounds = array<i64: 1, 16, 256>}]} {
    %c0 = arith.constant 0 : index
    %c0_0 = arith.constant 0 : index
    %0 = vector.load %arg1[%c0, %c0_0] : memref<1x256xf32, #tpu.memory_space<vmem>>, vector<1x256xf32>
    %c0_1 = arith.constant 0 : index
    %c0_2 = arith.constant 0 : index
    %1 = vector.load %arg2[%c0_1, %c0_2] : memref<1x256xf32, #tpu.memory_space<vmem>>, vector<1x256xf32>
    %c0_3 = arith.constant 0 : index
    %c0_4 = arith.constant 0 : index
    %c0_5 = arith.constant 0 : index
    %2 = vector.load %arg5[%c0_3, %c0_4, %c0_5] : memref<1x8x291xbf16, #tpu.memory_space<vmem>>, vector<1x8x291xbf16>
    %3 = vector.shape_cast %2 : vector<1x8x291xbf16> to vector<8x291xbf16>
    %c1 = arith.constant 1 : index
    %c0_6 = arith.constant 0 : index
    %c0_7 = arith.constant 0 : index
    %4 = vector.load %arg3[%c1, %c0_6, %c0_7] : memref<9x16x8xbf16, #tpu.memory_space<vmem>>, vector<1x16x8xbf16>
    %5 = vector.shape_cast %4 : vector<1x16x8xbf16> to vector<16x8xbf16>
    %6 = vector.extract_strided_slice %3 {offsets = [0, 1], sizes = [8, 256], strides = [1, 1]} : vector<8x291xbf16> to vector<8x256xbf16>
    %cst = arith.constant dense<0.000000e+00> : vector<16x256xf32>
    %7 = tpu.matmul %5, %6, %cst {dimension_numbers = #tpu.dot_dimension_numbers<[1], [0], [0], [1], [0, 0, 1, 1], [], []>} : vector<16x8xbf16>, vector<8x256xbf16>, vector<16x256xf32> -> vector<16x256xf32>
    %c4 = arith.constant 4 : index
    %c0_8 = arith.constant 0 : index
    %c0_9 = arith.constant 0 : index
    %8 = vector.load %arg3[%c4, %c0_8, %c0_9] : memref<9x16x8xbf16, #tpu.memory_space<vmem>>, vector<1x16x8xbf16>
    %9 = vector.shape_cast %8 : vector<1x16x8xbf16> to vector<16x8xbf16>
    %10 = vector.extract_strided_slice %3 {offsets = [0, 17], sizes = [8, 256], strides = [1, 1]} : vector<8x291xbf16> to vector<8x256xbf16>
    %cst_10 = arith.constant dense<0.000000e+00> : vector<16x256xf32>
    %11 = tpu.matmul %9, %10, %cst_10 {dimension_numbers = #tpu.dot_dimension_numbers<[1], [0], [0], [1], [0, 0, 1, 1], [], []>} : vector<16x8xbf16>, vector<8x256xbf16>, vector<16x256xf32> -> vector<16x256xf32>
    %12 = arith.addf %7, %11 : vector<16x256xf32>
    %c7 = arith.constant 7 : index
    %c0_11 = arith.constant 0 : index
    %c0_12 = arith.constant 0 : index
    %13 = vector.load %arg3[%c7, %c0_11, %c0_12] : memref<9x16x8xbf16, #tpu.memory_space<vmem>>, vector<1x16x8xbf16>
    %14 = vector.shape_cast %13 : vector<1x16x8xbf16> to vector<16x8xbf16>
    %15 = vector.extract_strided_slice %3 {offsets = [0, 33], sizes = [8, 256], strides = [1, 1]} : vector<8x291xbf16> to vector<8x256xbf16>
    %cst_13 = arith.constant dense<0.000000e+00> : vector<16x256xf32>
    %16 = tpu.matmul %14, %15, %cst_13 {dimension_numbers = #tpu.dot_dimension_numbers<[1], [0], [0], [1], [0, 0, 1, 1], [], []>} : vector<16x8xbf16>, vector<8x256xbf16>, vector<16x256xf32> -> vector<16x256xf32>
    %17 = arith.addf %12, %16 : vector<16x256xf32>
    %c0_14 = arith.constant 0 : index
    %c0_15 = arith.constant 0 : index
    %18 = vector.load %arg4[%c0_14, %c0_15] : memref<16x1xf32, #tpu.memory_space<vmem>>, vector<16x1xf32>
    %19 = vector.broadcast %18 : vector<16x1xf32> to vector<16x256xf32>
    %20 = arith.addf %17, %19 : vector<16x256xf32>
    %c0_16 = arith.constant 0 : index
    %c0_17 = arith.constant 0 : index
    %c0_18 = arith.constant 0 : index
    %21 = vector.load %arg3[%c0_16, %c0_17, %c0_18] : memref<9x16x8xbf16, #tpu.memory_space<vmem>>, vector<1x16x8xbf16>
    %22 = vector.shape_cast %21 : vector<1x16x8xbf16> to vector<16x8xbf16>
    %23 = vector.extract_strided_slice %3 {offsets = [0, 0], sizes = [8, 256], strides = [1, 1]} : vector<8x291xbf16> to vector<8x256xbf16>
    %cst_19 = arith.constant dense<0.000000e+00> : vector<16x256xf32>
    %24 = tpu.matmul %22, %23, %cst_19 {dimension_numbers = #tpu.dot_dimension_numbers<[1], [0], [0], [1], [0, 0, 1, 1], [], []>} : vector<16x8xbf16>, vector<8x256xbf16>, vector<16x256xf32> -> vector<16x256xf32>
    %c3 = arith.constant 3 : index
    %c0_20 = arith.constant 0 : index
    %c0_21 = arith.constant 0 : index
    %25 = vector.load %arg3[%c3, %c0_20, %c0_21] : memref<9x16x8xbf16, #tpu.memory_space<vmem>>, vector<1x16x8xbf16>
    %26 = vector.shape_cast %25 : vector<1x16x8xbf16> to vector<16x8xbf16>
    %27 = vector.extract_strided_slice %3 {offsets = [0, 16], sizes = [8, 256], strides = [1, 1]} : vector<8x291xbf16> to vector<8x256xbf16>
    %cst_22 = arith.constant dense<0.000000e+00> : vector<16x256xf32>
    %28 = tpu.matmul %26, %27, %cst_22 {dimension_numbers = #tpu.dot_dimension_numbers<[1], [0], [0], [1], [0, 0, 1, 1], [], []>} : vector<16x8xbf16>, vector<8x256xbf16>, vector<16x256xf32> -> vector<16x256xf32>
    %29 = arith.addf %24, %28 : vector<16x256xf32>
    %c6 = arith.constant 6 : index
    %c0_23 = arith.constant 0 : index
    %c0_24 = arith.constant 0 : index
    %30 = vector.load %arg3[%c6, %c0_23, %c0_24] : memref<9x16x8xbf16, #tpu.memory_space<vmem>>, vector<1x16x8xbf16>
    %31 = vector.shape_cast %30 : vector<1x16x8xbf16> to vector<16x8xbf16>
    %32 = vector.extract_strided_slice %3 {offsets = [0, 32], sizes = [8, 256], strides = [1, 1]} : vector<8x291xbf16> to vector<8x256xbf16>
    %cst_25 = arith.constant dense<0.000000e+00> : vector<16x256xf32>
    %33 = tpu.matmul %31, %32, %cst_25 {dimension_numbers = #tpu.dot_dimension_numbers<[1], [0], [0], [1], [0, 0, 1, 1], [], []>} : vector<16x8xbf16>, vector<8x256xbf16>, vector<16x256xf32> -> vector<16x256xf32>
    %34 = arith.addf %29, %33 : vector<16x256xf32>
    %35 = vector.broadcast %0 : vector<1x256xf32> to vector<16x256xf32>
    %36 = arith.mulf %34, %35 : vector<16x256xf32>
    %37 = arith.addf %20, %36 : vector<16x256xf32>
    %c2 = arith.constant 2 : index
    %c0_26 = arith.constant 0 : index
    %c0_27 = arith.constant 0 : index
    %38 = vector.load %arg3[%c2, %c0_26, %c0_27] : memref<9x16x8xbf16, #tpu.memory_space<vmem>>, vector<1x16x8xbf16>
    %39 = vector.shape_cast %38 : vector<1x16x8xbf16> to vector<16x8xbf16>
    %40 = vector.extract_strided_slice %3 {offsets = [0, 2], sizes = [8, 256], strides = [1, 1]} : vector<8x291xbf16> to vector<8x256xbf16>
    %cst_28 = arith.constant dense<0.000000e+00> : vector<16x256xf32>
    %41 = tpu.matmul %39, %40, %cst_28 {dimension_numbers = #tpu.dot_dimension_numbers<[1], [0], [0], [1], [0, 0, 1, 1], [], []>} : vector<16x8xbf16>, vector<8x256xbf16>, vector<16x256xf32> -> vector<16x256xf32>
    %c5 = arith.constant 5 : index
    %c0_29 = arith.constant 0 : index
    %c0_30 = arith.constant 0 : index
    %42 = vector.load %arg3[%c5, %c0_29, %c0_30] : memref<9x16x8xbf16, #tpu.memory_space<vmem>>, vector<1x16x8xbf16>
    %43 = vector.shape_cast %42 : vector<1x16x8xbf16> to vector<16x8xbf16>
    %44 = vector.extract_strided_slice %3 {offsets = [0, 18], sizes = [8, 256], strides = [1, 1]} : vector<8x291xbf16> to vector<8x256xbf16>
    %cst_31 = arith.constant dense<0.000000e+00> : vector<16x256xf32>
    %45 = tpu.matmul %43, %44, %cst_31 {dimension_numbers = #tpu.dot_dimension_numbers<[1], [0], [0], [1], [0, 0, 1, 1], [], []>} : vector<16x8xbf16>, vector<8x256xbf16>, vector<16x256xf32> -> vector<16x256xf32>
    %46 = arith.addf %41, %45 : vector<16x256xf32>
    %c8 = arith.constant 8 : index
    %c0_32 = arith.constant 0 : index
    %c0_33 = arith.constant 0 : index
    %47 = vector.load %arg3[%c8, %c0_32, %c0_33] : memref<9x16x8xbf16, #tpu.memory_space<vmem>>, vector<1x16x8xbf16>
    %48 = vector.shape_cast %47 : vector<1x16x8xbf16> to vector<16x8xbf16>
    %49 = vector.extract_strided_slice %3 {offsets = [0, 34], sizes = [8, 256], strides = [1, 1]} : vector<8x291xbf16> to vector<8x256xbf16>
    %cst_34 = arith.constant dense<0.000000e+00> : vector<16x256xf32>
    %50 = tpu.matmul %48, %49, %cst_34 {dimension_numbers = #tpu.dot_dimension_numbers<[1], [0], [0], [1], [0, 0, 1, 1], [], []>} : vector<16x8xbf16>, vector<8x256xbf16>, vector<16x256xf32> -> vector<16x256xf32>
    %51 = arith.addf %46, %50 : vector<16x256xf32>
    %52 = vector.broadcast %1 : vector<1x256xf32> to vector<16x256xf32>
    %53 = arith.mulf %51, %52 : vector<16x256xf32>
    %54 = arith.addf %37, %53 : vector<16x256xf32>
    %cst_35 = arith.constant 0.000000e+00 : f32
    %55 = vector.broadcast %cst_35 : f32 to vector<16x256xf32>
    %56 = arith.maximumf %54, %55 : vector<16x256xf32>
    %57 = arith.truncf %56 : vector<16x256xf32> to vector<16x256xbf16>
    %c0_36 = arith.constant 0 : index
    %c0_37 = arith.constant 0 : index
    %c0_38 = arith.constant 0 : index
    %58 = vector.load %arg6[%c0_36, %c0_37, %c0_38] : memref<1x16x256xbf16, #tpu.memory_space<vmem>>, vector<1x16x256xbf16>
    %59 = vector.shape_cast %58 : vector<1x16x256xbf16> to vector<16x256xbf16>
    %60 = vector.shape_cast %57 : vector<16x256xbf16> to vector<1x16x256xbf16>
    tpu.vector_store %arg6[%c0_36, %c0_37, %c0_38], %60 {strides = array<i32>} : memref<1x16x256xbf16, #tpu.memory_space<vmem>>, vector<1x16x256xbf16>,
    return
  }
  func.func @transform_0(%arg0: i32) -> (i32, i32) {
    %c0_i32 = arith.constant 0 : i32
    %c0_i32_0 = arith.constant 0 : i32
    %c0_i32_1 = arith.constant 0 : i32
    return %c0_i32, %c0_i32_0 : i32, i32
  }
  func.func @transform_1(%arg0: i32) -> (i32, i32) {
    %c0_i32 = arith.constant 0 : i32
    %c0_i32_0 = arith.constant 0 : i32
    %c0_i32_1 = arith.constant 0 : i32
    return %c0_i32, %c0_i32_0 : i32, i32
  }
  func.func @transform_2(%arg0: i32) -> (i32, i32, i32) {
    %c0_i32 = arith.constant 0 : i32
    %c0_i32_0 = arith.constant 0 : i32
    %c0_i32_1 = arith.constant 0 : i32
    %c0_i32_2 = arith.constant 0 : i32
    return %c0_i32, %c0_i32_0, %c0_i32_1 : i32, i32, i32
  }
  func.func @transform_3(%arg0: i32) -> (i32, i32) {
    %c0_i32 = arith.constant 0 : i32
    %c0_i32_0 = arith.constant 0 : i32
    %c0_i32_1 = arith.constant 0 : i32
    return %c0_i32, %c0_i32_0 : i32, i32
  }
  func.func @transform_4(%arg0: i32) -> (i32, i32, i32) {
    %c0_i32 = arith.constant 0 : i32
    %c0_i32_0 = arith.constant 0 : i32
    %c0_i32_1 = arith.constant 0 : i32
    return %arg0, %c0_i32, %c0_i32_0 : i32, i32, i32
  }
  func.func @transform_5(%arg0: i32) -> (i32, i32, i32) {
    %c0_i32 = arith.constant 0 : i32
    %c0_i32_0 = arith.constant 0 : i32
    %c0_i32_1 = arith.constant 0 : i32
    return %arg0, %c0_i32, %c0_i32_0 : i32, i32, i32
  }
}

module attributes {stable_mosaic.version = 11 : i64} {
  func.func @_dwconv_kernel(%arg0: i32, %arg1: memref<16x9xf32, #tpu.memory_space<vmem>>, %arg2: memref<16x1xf32, #tpu.memory_space<vmem>>, %arg3: memref<1x4x16x91xbf16, #tpu.memory_space<vmem>>, %arg4: memref<1x16x81xbf16, #tpu.memory_space<vmem>>) attributes {dimension_semantics = [#tpu.dimension_semantics<parallel>], iteration_bounds = array<i64: 2>, scalar_prefetch = 0 : i64, scratch_operands = 0 : i64, tpu.core_type = #tpu.core_type<tc>, window_params = [{pipeline_mode = #tpu.pipeline_mode<synchronous>, transform_indices = @transform_0, window_bounds = array<i64: 16, 9>}, {pipeline_mode = #tpu.pipeline_mode<synchronous>, transform_indices = @transform_1, window_bounds = array<i64: 16, 1>}, {transform_indices = @transform_2, window_bounds = array<i64: 1, 4, 16, 91>}, {transform_indices = @transform_3, window_bounds = array<i64: 1, 16, 81>}]} {
    %c0 = arith.constant 0 : index
    %c0_0 = arith.constant 0 : index
    %c0_1 = arith.constant 0 : index
    %c0_2 = arith.constant 0 : index
    %0 = vector.load %arg3[%c0, %c0_0, %c0_1, %c0_2] : memref<1x4x16x91xbf16, #tpu.memory_space<vmem>>, vector<1x4x16x91xbf16>
    %1 = vector.shape_cast %0 : vector<1x4x16x91xbf16> to vector<4x16x91xbf16>
    %c0_3 = arith.constant 0 : index
    %c0_4 = arith.constant 0 : index
    %2 = vector.load %arg1[%c0_3, %c0_4] : memref<16x9xf32, #tpu.memory_space<vmem>>, vector<16x9xf32>
    %c0_5 = arith.constant 0 : index
    %c0_6 = arith.constant 0 : index
    %3 = vector.load %arg2[%c0_5, %c0_6] : memref<16x1xf32, #tpu.memory_space<vmem>>, vector<16x1xf32>
    %4 = vector.extract_strided_slice %1 {offsets = [0, 0, 0], sizes = [1, 16, 81], strides = [1, 1, 1]} : vector<4x16x91xbf16> to vector<1x16x81xbf16>
    %5 = vector.shape_cast %4 : vector<1x16x81xbf16> to vector<16x81xbf16>
    %6 = arith.extf %5 : vector<16x81xbf16> to vector<16x81xf32>
    %7 = vector.extract_strided_slice %2 {offsets = [0, 0], sizes = [16, 1], strides = [1, 1]} : vector<16x9xf32> to vector<16x1xf32>
    %8 = vector.broadcast %7 : vector<16x1xf32> to vector<16x81xf32>
    %9 = arith.mulf %6, %8 : vector<16x81xf32>
    %10 = vector.broadcast %3 : vector<16x1xf32> to vector<16x81xf32>
    %11 = arith.addf %10, %9 : vector<16x81xf32>
    %12 = vector.extract_strided_slice %1 {offsets = [1, 0, 0], sizes = [1, 16, 81], strides = [1, 1, 1]} : vector<4x16x91xbf16> to vector<1x16x81xbf16>
    %13 = vector.shape_cast %12 : vector<1x16x81xbf16> to vector<16x81xbf16>
    %14 = arith.extf %13 : vector<16x81xbf16> to vector<16x81xf32>
    %15 = vector.extract_strided_slice %2 {offsets = [0, 1], sizes = [16, 1], strides = [1, 1]} : vector<16x9xf32> to vector<16x1xf32>
    %16 = vector.broadcast %15 : vector<16x1xf32> to vector<16x81xf32>
    %17 = arith.mulf %14, %16 : vector<16x81xf32>
    %18 = arith.addf %11, %17 : vector<16x81xf32>
    %19 = vector.extract_strided_slice %1 {offsets = [0, 0, 1], sizes = [1, 16, 81], strides = [1, 1, 1]} : vector<4x16x91xbf16> to vector<1x16x81xbf16>
    %20 = vector.shape_cast %19 : vector<1x16x81xbf16> to vector<16x81xbf16>
    %21 = arith.extf %20 : vector<16x81xbf16> to vector<16x81xf32>
    %22 = vector.extract_strided_slice %2 {offsets = [0, 2], sizes = [16, 1], strides = [1, 1]} : vector<16x9xf32> to vector<16x1xf32>
    %23 = vector.broadcast %22 : vector<16x1xf32> to vector<16x81xf32>
    %24 = arith.mulf %21, %23 : vector<16x81xf32>
    %25 = arith.addf %18, %24 : vector<16x81xf32>
    %26 = vector.extract_strided_slice %1 {offsets = [2, 0, 0], sizes = [1, 16, 81], strides = [1, 1, 1]} : vector<4x16x91xbf16> to vector<1x16x81xbf16>
    %27 = vector.shape_cast %26 : vector<1x16x81xbf16> to vector<16x81xbf16>
    %28 = arith.extf %27 : vector<16x81xbf16> to vector<16x81xf32>
    %29 = vector.extract_strided_slice %2 {offsets = [0, 3], sizes = [16, 1], strides = [1, 1]} : vector<16x9xf32> to vector<16x1xf32>
    %30 = vector.broadcast %29 : vector<16x1xf32> to vector<16x81xf32>
    %31 = arith.mulf %28, %30 : vector<16x81xf32>
    %32 = arith.addf %25, %31 : vector<16x81xf32>
    %33 = vector.extract_strided_slice %1 {offsets = [3, 0, 0], sizes = [1, 16, 81], strides = [1, 1, 1]} : vector<4x16x91xbf16> to vector<1x16x81xbf16>
    %34 = vector.shape_cast %33 : vector<1x16x81xbf16> to vector<16x81xbf16>
    %35 = arith.extf %34 : vector<16x81xbf16> to vector<16x81xf32>
    %36 = vector.extract_strided_slice %2 {offsets = [0, 4], sizes = [16, 1], strides = [1, 1]} : vector<16x9xf32> to vector<16x1xf32>
    %37 = vector.broadcast %36 : vector<16x1xf32> to vector<16x81xf32>
    %38 = arith.mulf %35, %37 : vector<16x81xf32>
    %39 = arith.addf %32, %38 : vector<16x81xf32>
    %40 = vector.extract_strided_slice %1 {offsets = [2, 0, 1], sizes = [1, 16, 81], strides = [1, 1, 1]} : vector<4x16x91xbf16> to vector<1x16x81xbf16>
    %41 = vector.shape_cast %40 : vector<1x16x81xbf16> to vector<16x81xbf16>
    %42 = arith.extf %41 : vector<16x81xbf16> to vector<16x81xf32>
    %43 = vector.extract_strided_slice %2 {offsets = [0, 5], sizes = [16, 1], strides = [1, 1]} : vector<16x9xf32> to vector<16x1xf32>
    %44 = vector.broadcast %43 : vector<16x1xf32> to vector<16x81xf32>
    %45 = arith.mulf %42, %44 : vector<16x81xf32>
    %46 = arith.addf %39, %45 : vector<16x81xf32>
    %47 = vector.extract_strided_slice %1 {offsets = [0, 0, 9], sizes = [1, 16, 81], strides = [1, 1, 1]} : vector<4x16x91xbf16> to vector<1x16x81xbf16>
    %48 = vector.shape_cast %47 : vector<1x16x81xbf16> to vector<16x81xbf16>
    %49 = arith.extf %48 : vector<16x81xbf16> to vector<16x81xf32>
    %50 = vector.extract_strided_slice %2 {offsets = [0, 6], sizes = [16, 1], strides = [1, 1]} : vector<16x9xf32> to vector<16x1xf32>
    %51 = vector.broadcast %50 : vector<16x1xf32> to vector<16x81xf32>
    %52 = arith.mulf %49, %51 : vector<16x81xf32>
    %53 = arith.addf %46, %52 : vector<16x81xf32>
    %54 = vector.extract_strided_slice %1 {offsets = [1, 0, 9], sizes = [1, 16, 81], strides = [1, 1, 1]} : vector<4x16x91xbf16> to vector<1x16x81xbf16>
    %55 = vector.shape_cast %54 : vector<1x16x81xbf16> to vector<16x81xbf16>
    %56 = arith.extf %55 : vector<16x81xbf16> to vector<16x81xf32>
    %57 = vector.extract_strided_slice %2 {offsets = [0, 7], sizes = [16, 1], strides = [1, 1]} : vector<16x9xf32> to vector<16x1xf32>
    %58 = vector.broadcast %57 : vector<16x1xf32> to vector<16x81xf32>
    %59 = arith.mulf %56, %58 : vector<16x81xf32>
    %60 = arith.addf %53, %59 : vector<16x81xf32>
    %61 = vector.extract_strided_slice %1 {offsets = [0, 0, 10], sizes = [1, 16, 81], strides = [1, 1, 1]} : vector<4x16x91xbf16> to vector<1x16x81xbf16>
    %62 = vector.shape_cast %61 : vector<1x16x81xbf16> to vector<16x81xbf16>
    %63 = arith.extf %62 : vector<16x81xbf16> to vector<16x81xf32>
    %64 = vector.extract_strided_slice %2 {offsets = [0, 8], sizes = [16, 1], strides = [1, 1]} : vector<16x9xf32> to vector<16x1xf32>
    %65 = vector.broadcast %64 : vector<16x1xf32> to vector<16x81xf32>
    %66 = arith.mulf %63, %65 : vector<16x81xf32>
    %67 = arith.addf %60, %66 : vector<16x81xf32>
    %68 = arith.truncf %67 : vector<16x81xf32> to vector<16x81xbf16>
    %c0_7 = arith.constant 0 : index
    %c0_8 = arith.constant 0 : index
    %c0_9 = arith.constant 0 : index
    %69 = vector.load %arg4[%c0_7, %c0_8, %c0_9] : memref<1x16x81xbf16, #tpu.memory_space<vmem>>, vector<1x16x81xbf16>
    %70 = vector.shape_cast %69 : vector<1x16x81xbf16> to vector<16x81xbf16>
    %71 = vector.shape_cast %68 : vector<16x81xbf16> to vector<1x16x81xbf16>
    tpu.vector_store %arg4[%c0_7, %c0_8, %c0_9], %71 {strides = array<i32>} : memref<1x16x81xbf16, #tpu.memory_space<vmem>>, vector<1x16x81xbf16>,
    return
  }
  func.func @transform_0(%arg0: i32) -> (i32, i32) {
    %c0_i32 = arith.constant 0 : i32
    %c0_i32_0 = arith.constant 0 : i32
    %c0_i32_1 = arith.constant 0 : i32
    return %c0_i32, %c0_i32_0 : i32, i32
  }
  func.func @transform_1(%arg0: i32) -> (i32, i32) {
    %c0_i32 = arith.constant 0 : i32
    %c0_i32_0 = arith.constant 0 : i32
    %c0_i32_1 = arith.constant 0 : i32
    return %c0_i32, %c0_i32_0 : i32, i32
  }
  func.func @transform_2(%arg0: i32) -> (i32, i32, i32, i32) {
    %c0_i32 = arith.constant 0 : i32
    %c0_i32_0 = arith.constant 0 : i32
    %c0_i32_1 = arith.constant 0 : i32
    %c0_i32_2 = arith.constant 0 : i32
    return %arg0, %c0_i32, %c0_i32_0, %c0_i32_1 : i32, i32, i32, i32
  }
  func.func @transform_3(%arg0: i32) -> (i32, i32, i32) {
    %c0_i32 = arith.constant 0 : i32
    %c0_i32_0 = arith.constant 0 : i32
    %c0_i32_1 = arith.constant 0 : i32
    return %arg0, %c0_i32, %c0_i32_0 : i32, i32, i32
  }
}

module attributes {stable_mosaic.version = 11 : i64} {
  func.func @_dwconv_kernel(%arg0: i32, %arg1: memref<16x9xf32, #tpu.memory_space<vmem>>, %arg2: memref<16x1xf32, #tpu.memory_space<vmem>>, %arg3: memref<1x4x16x31xbf16, #tpu.memory_space<vmem>>, %arg4: memref<1x16x25xbf16, #tpu.memory_space<vmem>>) attributes {dimension_semantics = [#tpu.dimension_semantics<parallel>], iteration_bounds = array<i64: 2>, scalar_prefetch = 0 : i64, scratch_operands = 0 : i64, tpu.core_type = #tpu.core_type<tc>, window_params = [{pipeline_mode = #tpu.pipeline_mode<synchronous>, transform_indices = @transform_0, window_bounds = array<i64: 16, 9>}, {pipeline_mode = #tpu.pipeline_mode<synchronous>, transform_indices = @transform_1, window_bounds = array<i64: 16, 1>}, {transform_indices = @transform_2, window_bounds = array<i64: 1, 4, 16, 31>}, {transform_indices = @transform_3, window_bounds = array<i64: 1, 16, 25>}]} {
    %c0 = arith.constant 0 : index
    %c0_0 = arith.constant 0 : index
    %c0_1 = arith.constant 0 : index
    %c0_2 = arith.constant 0 : index
    %0 = vector.load %arg3[%c0, %c0_0, %c0_1, %c0_2] : memref<1x4x16x31xbf16, #tpu.memory_space<vmem>>, vector<1x4x16x31xbf16>
    %1 = vector.shape_cast %0 : vector<1x4x16x31xbf16> to vector<4x16x31xbf16>
    %c0_3 = arith.constant 0 : index
    %c0_4 = arith.constant 0 : index
    %2 = vector.load %arg1[%c0_3, %c0_4] : memref<16x9xf32, #tpu.memory_space<vmem>>, vector<16x9xf32>
    %c0_5 = arith.constant 0 : index
    %c0_6 = arith.constant 0 : index
    %3 = vector.load %arg2[%c0_5, %c0_6] : memref<16x1xf32, #tpu.memory_space<vmem>>, vector<16x1xf32>
    %4 = vector.extract_strided_slice %1 {offsets = [0, 0, 0], sizes = [1, 16, 25], strides = [1, 1, 1]} : vector<4x16x31xbf16> to vector<1x16x25xbf16>
    %5 = vector.shape_cast %4 : vector<1x16x25xbf16> to vector<16x25xbf16>
    %6 = arith.extf %5 : vector<16x25xbf16> to vector<16x25xf32>
    %7 = vector.extract_strided_slice %2 {offsets = [0, 0], sizes = [16, 1], strides = [1, 1]} : vector<16x9xf32> to vector<16x1xf32>
    %8 = vector.broadcast %7 : vector<16x1xf32> to vector<16x25xf32>
    %9 = arith.mulf %6, %8 : vector<16x25xf32>
    %10 = vector.broadcast %3 : vector<16x1xf32> to vector<16x25xf32>
    %11 = arith.addf %10, %9 : vector<16x25xf32>
    %12 = vector.extract_strided_slice %1 {offsets = [1, 0, 0], sizes = [1, 16, 25], strides = [1, 1, 1]} : vector<4x16x31xbf16> to vector<1x16x25xbf16>
    %13 = vector.shape_cast %12 : vector<1x16x25xbf16> to vector<16x25xbf16>
    %14 = arith.extf %13 : vector<16x25xbf16> to vector<16x25xf32>
    %15 = vector.extract_strided_slice %2 {offsets = [0, 1], sizes = [16, 1], strides = [1, 1]} : vector<16x9xf32> to vector<16x1xf32>
    %16 = vector.broadcast %15 : vector<16x1xf32> to vector<16x25xf32>
    %17 = arith.mulf %14, %16 : vector<16x25xf32>
    %18 = arith.addf %11, %17 : vector<16x25xf32>
    %19 = vector.extract_strided_slice %1 {offsets = [0, 0, 1], sizes = [1, 16, 25], strides = [1, 1, 1]} : vector<4x16x31xbf16> to vector<1x16x25xbf16>
    %20 = vector.shape_cast %19 : vector<1x16x25xbf16> to vector<16x25xbf16>
    %21 = arith.extf %20 : vector<16x25xbf16> to vector<16x25xf32>
    %22 = vector.extract_strided_slice %2 {offsets = [0, 2], sizes = [16, 1], strides = [1, 1]} : vector<16x9xf32> to vector<16x1xf32>
    %23 = vector.broadcast %22 : vector<16x1xf32> to vector<16x25xf32>
    %24 = arith.mulf %21, %23 : vector<16x25xf32>
    %25 = arith.addf %18, %24 : vector<16x25xf32>
    %26 = vector.extract_strided_slice %1 {offsets = [2, 0, 0], sizes = [1, 16, 25], strides = [1, 1, 1]} : vector<4x16x31xbf16> to vector<1x16x25xbf16>
    %27 = vector.shape_cast %26 : vector<1x16x25xbf16> to vector<16x25xbf16>
    %28 = arith.extf %27 : vector<16x25xbf16> to vector<16x25xf32>
    %29 = vector.extract_strided_slice %2 {offsets = [0, 3], sizes = [16, 1], strides = [1, 1]} : vector<16x9xf32> to vector<16x1xf32>
    %30 = vector.broadcast %29 : vector<16x1xf32> to vector<16x25xf32>
    %31 = arith.mulf %28, %30 : vector<16x25xf32>
    %32 = arith.addf %25, %31 : vector<16x25xf32>
    %33 = vector.extract_strided_slice %1 {offsets = [3, 0, 0], sizes = [1, 16, 25], strides = [1, 1, 1]} : vector<4x16x31xbf16> to vector<1x16x25xbf16>
    %34 = vector.shape_cast %33 : vector<1x16x25xbf16> to vector<16x25xbf16>
    %35 = arith.extf %34 : vector<16x25xbf16> to vector<16x25xf32>
    %36 = vector.extract_strided_slice %2 {offsets = [0, 4], sizes = [16, 1], strides = [1, 1]} : vector<16x9xf32> to vector<16x1xf32>
    %37 = vector.broadcast %36 : vector<16x1xf32> to vector<16x25xf32>
    %38 = arith.mulf %35, %37 : vector<16x25xf32>
    %39 = arith.addf %32, %38 : vector<16x25xf32>
    %40 = vector.extract_strided_slice %1 {offsets = [2, 0, 1], sizes = [1, 16, 25], strides = [1, 1, 1]} : vector<4x16x31xbf16> to vector<1x16x25xbf16>
    %41 = vector.shape_cast %40 : vector<1x16x25xbf16> to vector<16x25xbf16>
    %42 = arith.extf %41 : vector<16x25xbf16> to vector<16x25xf32>
    %43 = vector.extract_strided_slice %2 {offsets = [0, 5], sizes = [16, 1], strides = [1, 1]} : vector<16x9xf32> to vector<16x1xf32>
    %44 = vector.broadcast %43 : vector<16x1xf32> to vector<16x25xf32>
    %45 = arith.mulf %42, %44 : vector<16x25xf32>
    %46 = arith.addf %39, %45 : vector<16x25xf32>
    %47 = vector.extract_strided_slice %1 {offsets = [0, 0, 5], sizes = [1, 16, 25], strides = [1, 1, 1]} : vector<4x16x31xbf16> to vector<1x16x25xbf16>
    %48 = vector.shape_cast %47 : vector<1x16x25xbf16> to vector<16x25xbf16>
    %49 = arith.extf %48 : vector<16x25xbf16> to vector<16x25xf32>
    %50 = vector.extract_strided_slice %2 {offsets = [0, 6], sizes = [16, 1], strides = [1, 1]} : vector<16x9xf32> to vector<16x1xf32>
    %51 = vector.broadcast %50 : vector<16x1xf32> to vector<16x25xf32>
    %52 = arith.mulf %49, %51 : vector<16x25xf32>
    %53 = arith.addf %46, %52 : vector<16x25xf32>
    %54 = vector.extract_strided_slice %1 {offsets = [1, 0, 5], sizes = [1, 16, 25], strides = [1, 1, 1]} : vector<4x16x31xbf16> to vector<1x16x25xbf16>
    %55 = vector.shape_cast %54 : vector<1x16x25xbf16> to vector<16x25xbf16>
    %56 = arith.extf %55 : vector<16x25xbf16> to vector<16x25xf32>
    %57 = vector.extract_strided_slice %2 {offsets = [0, 7], sizes = [16, 1], strides = [1, 1]} : vector<16x9xf32> to vector<16x1xf32>
    %58 = vector.broadcast %57 : vector<16x1xf32> to vector<16x25xf32>
    %59 = arith.mulf %56, %58 : vector<16x25xf32>
    %60 = arith.addf %53, %59 : vector<16x25xf32>
    %61 = vector.extract_strided_slice %1 {offsets = [0, 0, 6], sizes = [1, 16, 25], strides = [1, 1, 1]} : vector<4x16x31xbf16> to vector<1x16x25xbf16>
    %62 = vector.shape_cast %61 : vector<1x16x25xbf16> to vector<16x25xbf16>
    %63 = arith.extf %62 : vector<16x25xbf16> to vector<16x25xf32>
    %64 = vector.extract_strided_slice %2 {offsets = [0, 8], sizes = [16, 1], strides = [1, 1]} : vector<16x9xf32> to vector<16x1xf32>
    %65 = vector.broadcast %64 : vector<16x1xf32> to vector<16x25xf32>
    %66 = arith.mulf %63, %65 : vector<16x25xf32>
    %67 = arith.addf %60, %66 : vector<16x25xf32>
    %68 = arith.truncf %67 : vector<16x25xf32> to vector<16x25xbf16>
    %c0_7 = arith.constant 0 : index
    %c0_8 = arith.constant 0 : index
    %c0_9 = arith.constant 0 : index
    %69 = vector.load %arg4[%c0_7, %c0_8, %c0_9] : memref<1x16x25xbf16, #tpu.memory_space<vmem>>, vector<1x16x25xbf16>
    %70 = vector.shape_cast %69 : vector<1x16x25xbf16> to vector<16x25xbf16>
    %71 = vector.shape_cast %68 : vector<16x25xbf16> to vector<1x16x25xbf16>
    tpu.vector_store %arg4[%c0_7, %c0_8, %c0_9], %71 {strides = array<i32>} : memref<1x16x25xbf16, #tpu.memory_space<vmem>>, vector<1x16x25xbf16>,
    return
  }
  func.func @transform_0(%arg0: i32) -> (i32, i32) {
    %c0_i32 = arith.constant 0 : i32
    %c0_i32_0 = arith.constant 0 : i32
    %c0_i32_1 = arith.constant 0 : i32
    return %c0_i32, %c0_i32_0 : i32, i32
  }
  func.func @transform_1(%arg0: i32) -> (i32, i32) {
    %c0_i32 = arith.constant 0 : i32
    %c0_i32_0 = arith.constant 0 : i32
    %c0_i32_1 = arith.constant 0 : i32
    return %c0_i32, %c0_i32_0 : i32, i32
  }
  func.func @transform_2(%arg0: i32) -> (i32, i32, i32, i32) {
    %c0_i32 = arith.constant 0 : i32
    %c0_i32_0 = arith.constant 0 : i32
    %c0_i32_1 = arith.constant 0 : i32
    %c0_i32_2 = arith.constant 0 : i32
    return %arg0, %c0_i32, %c0_i32_0, %c0_i32_1 : i32, i32, i32, i32
  }
  func.func @transform_3(%arg0: i32) -> (i32, i32, i32) {
    %c0_i32 = arith.constant 0 : i32
    %c0_i32_0 = arith.constant 0 : i32
    %c0_i32_1 = arith.constant 0 : i32
    return %arg0, %c0_i32, %c0_i32_0 : i32, i32, i32
  }
}

module attributes {stable_mosaic.version = 11 : i64} {
  func.func @_dwconv_kernel(%arg0: i32, %arg1: memref<16x9xf32, #tpu.memory_space<vmem>>, %arg2: memref<16x1xf32, #tpu.memory_space<vmem>>, %arg3: memref<1x4x16x13xbf16, #tpu.memory_space<vmem>>, %arg4: memref<1x16x9xbf16, #tpu.memory_space<vmem>>) attributes {dimension_semantics = [#tpu.dimension_semantics<parallel>], iteration_bounds = array<i64: 2>, scalar_prefetch = 0 : i64, scratch_operands = 0 : i64, tpu.core_type = #tpu.core_type<tc>, window_params = [{pipeline_mode = #tpu.pipeline_mode<synchronous>, transform_indices = @transform_0, window_bounds = array<i64: 16, 9>}, {pipeline_mode = #tpu.pipeline_mode<synchronous>, transform_indices = @transform_1, window_bounds = array<i64: 16, 1>}, {transform_indices = @transform_2, window_bounds = array<i64: 1, 4, 16, 13>}, {transform_indices = @transform_3, window_bounds = array<i64: 1, 16, 9>}]} {
    %c0 = arith.constant 0 : index
    %c0_0 = arith.constant 0 : index
    %c0_1 = arith.constant 0 : index
    %c0_2 = arith.constant 0 : index
    %0 = vector.load %arg3[%c0, %c0_0, %c0_1, %c0_2] : memref<1x4x16x13xbf16, #tpu.memory_space<vmem>>, vector<1x4x16x13xbf16>
    %1 = vector.shape_cast %0 : vector<1x4x16x13xbf16> to vector<4x16x13xbf16>
    %c0_3 = arith.constant 0 : index
    %c0_4 = arith.constant 0 : index
    %2 = vector.load %arg1[%c0_3, %c0_4] : memref<16x9xf32, #tpu.memory_space<vmem>>, vector<16x9xf32>
    %c0_5 = arith.constant 0 : index
    %c0_6 = arith.constant 0 : index
    %3 = vector.load %arg2[%c0_5, %c0_6] : memref<16x1xf32, #tpu.memory_space<vmem>>, vector<16x1xf32>
    %4 = vector.extract_strided_slice %1 {offsets = [0, 0, 0], sizes = [1, 16, 9], strides = [1, 1, 1]} : vector<4x16x13xbf16> to vector<1x16x9xbf16>
    %5 = vector.shape_cast %4 : vector<1x16x9xbf16> to vector<16x9xbf16>
    %6 = arith.extf %5 : vector<16x9xbf16> to vector<16x9xf32>
    %7 = vector.extract_strided_slice %2 {offsets = [0, 0], sizes = [16, 1], strides = [1, 1]} : vector<16x9xf32> to vector<16x1xf32>
    %8 = vector.broadcast %7 : vector<16x1xf32> to vector<16x9xf32>
    %9 = arith.mulf %6, %8 : vector<16x9xf32>
    %10 = vector.broadcast %3 : vector<16x1xf32> to vector<16x9xf32>
    %11 = arith.addf %10, %9 : vector<16x9xf32>
    %12 = vector.extract_strided_slice %1 {offsets = [1, 0, 0], sizes = [1, 16, 9], strides = [1, 1, 1]} : vector<4x16x13xbf16> to vector<1x16x9xbf16>
    %13 = vector.shape_cast %12 : vector<1x16x9xbf16> to vector<16x9xbf16>
    %14 = arith.extf %13 : vector<16x9xbf16> to vector<16x9xf32>
    %15 = vector.extract_strided_slice %2 {offsets = [0, 1], sizes = [16, 1], strides = [1, 1]} : vector<16x9xf32> to vector<16x1xf32>
    %16 = vector.broadcast %15 : vector<16x1xf32> to vector<16x9xf32>
    %17 = arith.mulf %14, %16 : vector<16x9xf32>
    %18 = arith.addf %11, %17 : vector<16x9xf32>
    %19 = vector.extract_strided_slice %1 {offsets = [0, 0, 1], sizes = [1, 16, 9], strides = [1, 1, 1]} : vector<4x16x13xbf16> to vector<1x16x9xbf16>
    %20 = vector.shape_cast %19 : vector<1x16x9xbf16> to vector<16x9xbf16>
    %21 = arith.extf %20 : vector<16x9xbf16> to vector<16x9xf32>
    %22 = vector.extract_strided_slice %2 {offsets = [0, 2], sizes = [16, 1], strides = [1, 1]} : vector<16x9xf32> to vector<16x1xf32>
    %23 = vector.broadcast %22 : vector<16x1xf32> to vector<16x9xf32>
    %24 = arith.mulf %21, %23 : vector<16x9xf32>
    %25 = arith.addf %18, %24 : vector<16x9xf32>
    %26 = vector.extract_strided_slice %1 {offsets = [2, 0, 0], sizes = [1, 16, 9], strides = [1, 1, 1]} : vector<4x16x13xbf16> to vector<1x16x9xbf16>
    %27 = vector.shape_cast %26 : vector<1x16x9xbf16> to vector<16x9xbf16>
    %28 = arith.extf %27 : vector<16x9xbf16> to vector<16x9xf32>
    %29 = vector.extract_strided_slice %2 {offsets = [0, 3], sizes = [16, 1], strides = [1, 1]} : vector<16x9xf32> to vector<16x1xf32>
    %30 = vector.broadcast %29 : vector<16x1xf32> to vector<16x9xf32>
    %31 = arith.mulf %28, %30 : vector<16x9xf32>
    %32 = arith.addf %25, %31 : vector<16x9xf32>
    %33 = vector.extract_strided_slice %1 {offsets = [3, 0, 0], sizes = [1, 16, 9], strides = [1, 1, 1]} : vector<4x16x13xbf16> to vector<1x16x9xbf16>
    %34 = vector.shape_cast %33 : vector<1x16x9xbf16> to vector<16x9xbf16>
    %35 = arith.extf %34 : vector<16x9xbf16> to vector<16x9xf32>
    %36 = vector.extract_strided_slice %2 {offsets = [0, 4], sizes = [16, 1], strides = [1, 1]} : vector<16x9xf32> to vector<16x1xf32>
    %37 = vector.broadcast %36 : vector<16x1xf32> to vector<16x9xf32>
    %38 = arith.mulf %35, %37 : vector<16x9xf32>
    %39 = arith.addf %32, %38 : vector<16x9xf32>
    %40 = vector.extract_strided_slice %1 {offsets = [2, 0, 1], sizes = [1, 16, 9], strides = [1, 1, 1]} : vector<4x16x13xbf16> to vector<1x16x9xbf16>
    %41 = vector.shape_cast %40 : vector<1x16x9xbf16> to vector<16x9xbf16>
    %42 = arith.extf %41 : vector<16x9xbf16> to vector<16x9xf32>
    %43 = vector.extract_strided_slice %2 {offsets = [0, 5], sizes = [16, 1], strides = [1, 1]} : vector<16x9xf32> to vector<16x1xf32>
    %44 = vector.broadcast %43 : vector<16x1xf32> to vector<16x9xf32>
    %45 = arith.mulf %42, %44 : vector<16x9xf32>
    %46 = arith.addf %39, %45 : vector<16x9xf32>
    %47 = vector.extract_strided_slice %1 {offsets = [0, 0, 3], sizes = [1, 16, 9], strides = [1, 1, 1]} : vector<4x16x13xbf16> to vector<1x16x9xbf16>
    %48 = vector.shape_cast %47 : vector<1x16x9xbf16> to vector<16x9xbf16>
    %49 = arith.extf %48 : vector<16x9xbf16> to vector<16x9xf32>
    %50 = vector.extract_strided_slice %2 {offsets = [0, 6], sizes = [16, 1], strides = [1, 1]} : vector<16x9xf32> to vector<16x1xf32>
    %51 = vector.broadcast %50 : vector<16x1xf32> to vector<16x9xf32>
    %52 = arith.mulf %49, %51 : vector<16x9xf32>
    %53 = arith.addf %46, %52 : vector<16x9xf32>
    %54 = vector.extract_strided_slice %1 {offsets = [1, 0, 3], sizes = [1, 16, 9], strides = [1, 1, 1]} : vector<4x16x13xbf16> to vector<1x16x9xbf16>
    %55 = vector.shape_cast %54 : vector<1x16x9xbf16> to vector<16x9xbf16>
    %56 = arith.extf %55 : vector<16x9xbf16> to vector<16x9xf32>
    %57 = vector.extract_strided_slice %2 {offsets = [0, 7], sizes = [16, 1], strides = [1, 1]} : vector<16x9xf32> to vector<16x1xf32>
    %58 = vector.broadcast %57 : vector<16x1xf32> to vector<16x9xf32>
    %59 = arith.mulf %56, %58 : vector<16x9xf32>
    %60 = arith.addf %53, %59 : vector<16x9xf32>
    %61 = vector.extract_strided_slice %1 {offsets = [0, 0, 4], sizes = [1, 16, 9], strides = [1, 1, 1]} : vector<4x16x13xbf16> to vector<1x16x9xbf16>
    %62 = vector.shape_cast %61 : vector<1x16x9xbf16> to vector<16x9xbf16>
    %63 = arith.extf %62 : vector<16x9xbf16> to vector<16x9xf32>
    %64 = vector.extract_strided_slice %2 {offsets = [0, 8], sizes = [16, 1], strides = [1, 1]} : vector<16x9xf32> to vector<16x1xf32>
    %65 = vector.broadcast %64 : vector<16x1xf32> to vector<16x9xf32>
    %66 = arith.mulf %63, %65 : vector<16x9xf32>
    %67 = arith.addf %60, %66 : vector<16x9xf32>
    %68 = arith.truncf %67 : vector<16x9xf32> to vector<16x9xbf16>
    %c0_7 = arith.constant 0 : index
    %c0_8 = arith.constant 0 : index
    %c0_9 = arith.constant 0 : index
    %69 = vector.load %arg4[%c0_7, %c0_8, %c0_9] : memref<1x16x9xbf16, #tpu.memory_space<vmem>>, vector<1x16x9xbf16>
    %70 = vector.shape_cast %69 : vector<1x16x9xbf16> to vector<16x9xbf16>
    %71 = vector.shape_cast %68 : vector<16x9xbf16> to vector<1x16x9xbf16>
    tpu.vector_store %arg4[%c0_7, %c0_8, %c0_9], %71 {strides = array<i32>} : memref<1x16x9xbf16, #tpu.memory_space<vmem>>, vector<1x16x9xbf16>,
    return
  }
  func.func @transform_0(%arg0: i32) -> (i32, i32) {
    %c0_i32 = arith.constant 0 : i32
    %c0_i32_0 = arith.constant 0 : i32
    %c0_i32_1 = arith.constant 0 : i32
    return %c0_i32, %c0_i32_0 : i32, i32
  }
  func.func @transform_1(%arg0: i32) -> (i32, i32) {
    %c0_i32 = arith.constant 0 : i32
    %c0_i32_0 = arith.constant 0 : i32
    %c0_i32_1 = arith.constant 0 : i32
    return %c0_i32, %c0_i32_0 : i32, i32
  }
  func.func @transform_2(%arg0: i32) -> (i32, i32, i32, i32) {
    %c0_i32 = arith.constant 0 : i32
    %c0_i32_0 = arith.constant 0 : i32
    %c0_i32_1 = arith.constant 0 : i32
    %c0_i32_2 = arith.constant 0 : i32
    return %arg0, %c0_i32, %c0_i32_0, %c0_i32_1 : i32, i32, i32, i32
  }
  func.func @transform_3(%arg0: i32) -> (i32, i32, i32) {
    %c0_i32 = arith.constant 0 : i32
    %c0_i32_0 = arith.constant 0 : i32
    %c0_i32_1 = arith.constant 0 : i32
    return %arg0, %c0_i32, %c0_i32_0 : i32, i32, i32
  }
}

module attributes {stable_mosaic.version = 11 : i64} {
  func.func @_sgcn_kernel(%arg0: i32, %arg1: memref<8x16xbf16, #tpu.memory_space<vmem>>, %arg2: memref<8x1xf32, #tpu.memory_space<vmem>>, %arg3: memref<8x16xbf16, #tpu.memory_space<vmem>>, %arg4: memref<8x1xf32, #tpu.memory_space<vmem>>, %arg5: memref<8x16xbf16, #tpu.memory_space<vmem>>, %arg6: memref<8x1xf32, #tpu.memory_space<vmem>>, %arg7: memref<8x8xbf16, #tpu.memory_space<vmem>>, %arg8: memref<8x1xf32, #tpu.memory_space<vmem>>, %arg9: memref<16x8xbf16, #tpu.memory_space<vmem>>, %arg10: memref<16x1xf32, #tpu.memory_space<vmem>>, %arg11: memref<1x16x4xbf16, #tpu.memory_space<vmem>>, %arg12: memref<1x16x4xbf16, #tpu.memory_space<vmem>>) attributes {dimension_semantics = [#tpu.dimension_semantics<parallel>], iteration_bounds = array<i64: 2>, scalar_prefetch = 0 : i64, scratch_operands = 0 : i64, tpu.core_type = #tpu.core_type<tc>, window_params = [{pipeline_mode = #tpu.pipeline_mode<synchronous>, transform_indices = @transform_0, window_bounds = array<i64: 8, 16>}, {pipeline_mode = #tpu.pipeline_mode<synchronous>, transform_indices = @transform_1, window_bounds = array<i64: 8, 1>}, {pipeline_mode = #tpu.pipeline_mode<synchronous>, transform_indices = @transform_2, window_bounds = array<i64: 8, 16>}, {pipeline_mode = #tpu.pipeline_mode<synchronous>, transform_indices = @transform_3, window_bounds = array<i64: 8, 1>}, {pipeline_mode = #tpu.pipeline_mode<synchronous>, transform_indices = @transform_4, window_bounds = array<i64: 8, 16>}, {pipeline_mode = #tpu.pipeline_mode<synchronous>, transform_indices = @transform_5, window_bounds = array<i64: 8, 1>}, {pipeline_mode = #tpu.pipeline_mode<synchronous>, transform_indices = @transform_6, window_bounds = array<i64: 8, 8>}, {pipeline_mode = #tpu.pipeline_mode<synchronous>, transform_indices = @transform_7, window_bounds = array<i64: 8, 1>}, {pipeline_mode = #tpu.pipeline_mode<synchronous>, transform_indices = @transform_8, window_bounds = array<i64: 16, 8>}, {pipeline_mode = #tpu.pipeline_mode<synchronous>, transform_indices = @transform_9, window_bounds = array<i64: 16, 1>}, {transform_indices = @transform_10, window_bounds = array<i64: 1, 16, 4>}, {transform_indices = @transform_11, window_bounds = array<i64: 1, 16, 4>}]} {
    %c0 = arith.constant 0 : index
    %c0_0 = arith.constant 0 : index
    %c0_1 = arith.constant 0 : index
    %0 = vector.load %arg11[%c0, %c0_0, %c0_1] : memref<1x16x4xbf16, #tpu.memory_space<vmem>>, vector<1x16x4xbf16>
    %1 = vector.shape_cast %0 : vector<1x16x4xbf16> to vector<16x4xbf16>
    %c0_2 = arith.constant 0 : index
    %c0_3 = arith.constant 0 : index
    %2 = vector.load %arg1[%c0_2, %c0_3] : memref<8x16xbf16, #tpu.memory_space<vmem>>, vector<8x16xbf16>
    %cst = arith.constant dense<0.000000e+00> : vector<8x4xf32>
    %3 = tpu.matmul %2, %1, %cst {dimension_numbers = #tpu.dot_dimension_numbers<[1], [0], [0], [1], [0, 0, 1, 1], [], []>} : vector<8x16xbf16>, vector<16x4xbf16>, vector<8x4xf32> -> vector<8x4xf32>
    %c0_4 = arith.constant 0 : index
    %c0_5 = arith.constant 0 : index
    %4 = vector.load %arg2[%c0_4, %c0_5] : memref<8x1xf32, #tpu.memory_space<vmem>>, vector<8x1xf32>
    %5 = vector.broadcast %4 : vector<8x1xf32> to vector<8x4xf32>
    %6 = arith.addf %3, %5 : vector<8x4xf32>
    %c0_6 = arith.constant 0 : index
    %c0_7 = arith.constant 0 : index
    %7 = vector.load %arg3[%c0_6, %c0_7] : memref<8x16xbf16, #tpu.memory_space<vmem>>, vector<8x16xbf16>
    %cst_8 = arith.constant dense<0.000000e+00> : vector<8x4xf32>
    %8 = tpu.matmul %7, %1, %cst_8 {dimension_numbers = #tpu.dot_dimension_numbers<[1], [0], [0], [1], [0, 0, 1, 1], [], []>} : vector<8x16xbf16>, vector<16x4xbf16>, vector<8x4xf32> -> vector<8x4xf32>
    %c0_9 = arith.constant 0 : index
    %c0_10 = arith.constant 0 : index
    %9 = vector.load %arg4[%c0_9, %c0_10] : memref<8x1xf32, #tpu.memory_space<vmem>>, vector<8x1xf32>
    %10 = vector.broadcast %9 : vector<8x1xf32> to vector<8x4xf32>
    %11 = arith.addf %8, %10 : vector<8x4xf32>
    %c0_11 = arith.constant 0 : index
    %c0_12 = arith.constant 0 : index
    %12 = vector.load %arg5[%c0_11, %c0_12] : memref<8x16xbf16, #tpu.memory_space<vmem>>, vector<8x16xbf16>
    %cst_13 = arith.constant dense<0.000000e+00> : vector<8x4xf32>
    %13 = tpu.matmul %12, %1, %cst_13 {dimension_numbers = #tpu.dot_dimension_numbers<[1], [0], [0], [1], [0, 0, 1, 1], [], []>} : vector<8x16xbf16>, vector<16x4xbf16>, vector<8x4xf32> -> vector<8x4xf32>
    %c0_14 = arith.constant 0 : index
    %c0_15 = arith.constant 0 : index
    %14 = vector.load %arg6[%c0_14, %c0_15] : memref<8x1xf32, #tpu.memory_space<vmem>>, vector<8x1xf32>
    %15 = vector.broadcast %14 : vector<8x1xf32> to vector<8x4xf32>
    %16 = arith.addf %13, %15 : vector<8x4xf32>
    %17 = arith.truncf %16 : vector<8x4xf32> to vector<8x4xbf16>
    %18 = arith.truncf %11 : vector<8x4xf32> to vector<8x4xbf16>
    %cst_16 = arith.constant dense<0.000000e+00> : vector<8x8xf32>
    %19 = tpu.matmul %17, %18, %cst_16 {dimension_numbers = #tpu.dot_dimension_numbers<[1], [1], [0], [0], [0, 0, 1, 0], [], []>} : vector<8x4xbf16>, vector<8x4xbf16>, vector<8x8xf32> -> vector<8x8xf32>
    %cst_17 = arith.constant dense<0xFF800000> : vector<8xf32>
    %20 = vector.multi_reduction <maximumf>, %19, %cst_17 [1] : vector<8x8xf32> to vector<8xf32>
    %21 = vector.shape_cast %20 : vector<8xf32> to vector<8x1xf32>
    %22 = vector.broadcast %21 : vector<8x1xf32> to vector<8x8xf32>
    %23 = arith.subf %19, %22 : vector<8x8xf32>
    %24 = math.exp %23 : vector<8x8xf32>
    %cst_18 = arith.constant dense<0.000000e+00> : vector<8xf32>
    %25 = vector.multi_reduction <add>, %24, %cst_18 [1] : vector<8x8xf32> to vector<8xf32>
    %26 = vector.shape_cast %25 : vector<8xf32> to vector<8x1xf32>
    %27 = tpu.reciprocal %26 : vector<8x1xf32> -> vector<8x1xf32>
    %28 = vector.broadcast %27 : vector<8x1xf32> to vector<8x8xf32>
    %29 = arith.mulf %24, %28 : vector<8x8xf32>
    %30 = arith.truncf %29 : vector<8x8xf32> to vector<8x8xbf16>
    %31 = arith.truncf %6 : vector<8x4xf32> to vector<8x4xbf16>
    %cst_19 = arith.constant dense<0.000000e+00> : vector<8x4xf32>
    %32 = tpu.matmul %30, %31, %cst_19 {dimension_numbers = #tpu.dot_dimension_numbers<[0], [0], [1], [1], [0, 1, 1, 1], [], []>} : vector<8x8xbf16>, vector<8x4xbf16>, vector<8x4xf32> -> vector<8x4xf32>
    %c0_20 = arith.constant 0 : index
    %c0_21 = arith.constant 0 : index
    %33 = vector.load %arg7[%c0_20, %c0_21] : memref<8x8xbf16, #tpu.memory_space<vmem>>, vector<8x8xbf16>
    %34 = arith.truncf %32 : vector<8x4xf32> to vector<8x4xbf16>
    %cst_22 = arith.constant dense<0.000000e+00> : vector<8x4xf32>
    %35 = tpu.matmul %33, %34, %cst_22 {dimension_numbers = #tpu.dot_dimension_numbers<[1], [0], [0], [1], [0, 0, 1, 1], [], []>} : vector<8x8xbf16>, vector<8x4xbf16>, vector<8x4xf32> -> vector<8x4xf32>
    %c0_23 = arith.constant 0 : index
    %c0_24 = arith.constant 0 : index
    %36 = vector.load %arg8[%c0_23, %c0_24] : memref<8x1xf32, #tpu.memory_space<vmem>>, vector<8x1xf32>
    %37 = vector.broadcast %36 : vector<8x1xf32> to vector<8x4xf32>
    %38 = arith.addf %35, %37 : vector<8x4xf32>
    %c0_25 = arith.constant 0 : index
    %c0_26 = arith.constant 0 : index
    %39 = vector.load %arg9[%c0_25, %c0_26] : memref<16x8xbf16, #tpu.memory_space<vmem>>, vector<16x8xbf16>
    %40 = arith.truncf %38 : vector<8x4xf32> to vector<8x4xbf16>
    %cst_27 = arith.constant dense<0.000000e+00> : vector<16x4xf32>
    %41 = tpu.matmul %39, %40, %cst_27 {dimension_numbers = #tpu.dot_dimension_numbers<[1], [0], [0], [1], [0, 0, 1, 1], [], []>} : vector<16x8xbf16>, vector<8x4xbf16>, vector<16x4xf32> -> vector<16x4xf32>
    %c0_28 = arith.constant 0 : index
    %c0_29 = arith.constant 0 : index
    %42 = vector.load %arg10[%c0_28, %c0_29] : memref<16x1xf32, #tpu.memory_space<vmem>>, vector<16x1xf32>
    %43 = vector.broadcast %42 : vector<16x1xf32> to vector<16x4xf32>
    %44 = arith.addf %41, %43 : vector<16x4xf32>
    %45 = arith.extf %1 : vector<16x4xbf16> to vector<16x4xf32>
    %46 = arith.addf %44, %45 : vector<16x4xf32>
    %cst_30 = arith.constant 0.000000e+00 : f32
    %47 = vector.broadcast %cst_30 : f32 to vector<16x4xf32>
    %48 = arith.maximumf %46, %47 : vector<16x4xf32>
    %49 = arith.truncf %48 : vector<16x4xf32> to vector<16x4xbf16>
    %c0_31 = arith.constant 0 : index
    %c0_32 = arith.constant 0 : index
    %c0_33 = arith.constant 0 : index
    %50 = vector.load %arg12[%c0_31, %c0_32, %c0_33] : memref<1x16x4xbf16, #tpu.memory_space<vmem>>, vector<1x16x4xbf16>
    %51 = vector.shape_cast %50 : vector<1x16x4xbf16> to vector<16x4xbf16>
    %52 = vector.shape_cast %49 : vector<16x4xbf16> to vector<1x16x4xbf16>
    tpu.vector_store %arg12[%c0_31, %c0_32, %c0_33], %52 {strides = array<i32>} : memref<1x16x4xbf16, #tpu.memory_space<vmem>>, vector<1x16x4xbf16>,
    return
  }
  func.func @transform_0(%arg0: i32) -> (i32, i32) {
    %c0_i32 = arith.constant 0 : i32
    %c0_i32_0 = arith.constant 0 : i32
    %c0_i32_1 = arith.constant 0 : i32
    return %c0_i32, %c0_i32_0 : i32, i32
  }
  func.func @transform_1(%arg0: i32) -> (i32, i32) {
    %c0_i32 = arith.constant 0 : i32
    %c0_i32_0 = arith.constant 0 : i32
    %c0_i32_1 = arith.constant 0 : i32
    return %c0_i32, %c0_i32_0 : i32, i32
  }
  func.func @transform_2(%arg0: i32) -> (i32, i32) {
    %c0_i32 = arith.constant 0 : i32
    %c0_i32_0 = arith.constant 0 : i32
    %c0_i32_1 = arith.constant 0 : i32
    return %c0_i32, %c0_i32_0 : i32, i32
  }
  func.func @transform_3(%arg0: i32) -> (i32, i32) {
    %c0_i32 = arith.constant 0 : i32
    %c0_i32_0 = arith.constant 0 : i32
    %c0_i32_1 = arith.constant 0 : i32
    return %c0_i32, %c0_i32_0 : i32, i32
  }
  func.func @transform_4(%arg0: i32) -> (i32, i32) {
    %c0_i32 = arith.constant 0 : i32
    %c0_i32_0 = arith.constant 0 : i32
    %c0_i32_1 = arith.constant 0 : i32
    return %c0_i32, %c0_i32_0 : i32, i32
  }
  func.func @transform_5(%arg0: i32) -> (i32, i32) {
    %c0_i32 = arith.constant 0 : i32
    %c0_i32_0 = arith.constant 0 : i32
    %c0_i32_1 = arith.constant 0 : i32
    return %c0_i32, %c0_i32_0 : i32, i32
  }
  func.func @transform_6(%arg0: i32) -> (i32, i32) {
    %c0_i32 = arith.constant 0 : i32
    %c0_i32_0 = arith.constant 0 : i32
    %c0_i32_1 = arith.constant 0 : i32
    return %c0_i32, %c0_i32_0 : i32, i32
  }
  func.func @transform_7(%arg0: i32) -> (i32, i32) {
    %c0_i32 = arith.constant 0 : i32
    %c0_i32_0 = arith.constant 0 : i32
    %c0_i32_1 = arith.constant 0 : i32
    return %c0_i32, %c0_i32_0 : i32, i32
  }
  func.func @transform_8(%arg0: i32) -> (i32, i32) {
    %c0_i32 = arith.constant 0 : i32
    %c0_i32_0 = arith.constant 0 : i32
    %c0_i32_1 = arith.constant 0 : i32
    return %c0_i32, %c0_i32_0 : i32, i32
  }
  func.func @transform_9(%arg0: i32) -> (i32, i32) {
    %c0_i32 = arith.constant 0 : i32
    %c0_i32_0 = arith.constant 0 : i32
    %c0_i32_1 = arith.constant 0 : i32
    return %c0_i32, %c0_i32_0 : i32, i32
  }
  func.func @transform_10(%arg0: i32) -> (i32, i32, i32) {
    %c0_i32 = arith.constant 0 : i32
    %c0_i32_0 = arith.constant 0 : i32
    %c0_i32_1 = arith.constant 0 : i32
    return %arg0, %c0_i32, %c0_i32_0 : i32, i32, i32
  }
  func.func @transform_11(%arg0: i32) -> (i32, i32, i32) {
    %c0_i32 = arith.constant 0 : i32
    %c0_i32_0 = arith.constant 0 : i32
    %c0_i32_1 = arith.constant 0 : i32
    return %arg0, %c0_i32, %c0_i32_0 : i32, i32, i32
  }
}

module attributes {stable_mosaic.version = 11 : i64} {
  func.func @_mm_rhs_kernel(%arg0: i32, %arg1: memref<64x2xbf16, #tpu.memory_space<vmem>>, %arg2: memref<2x16xbf16, #tpu.memory_space<vmem>>, %arg3: memref<64x16xbf16, #tpu.memory_space<vmem>>) attributes {dimension_semantics = [#tpu.dimension_semantics<parallel>], iteration_bounds = array<i64: 1>, scalar_prefetch = 0 : i64, scratch_operands = 0 : i64, tpu.core_type = #tpu.core_type<tc>, window_params = [{transform_indices = @transform_0, window_bounds = array<i64: 64, 2>}, {pipeline_mode = #tpu.pipeline_mode<synchronous>, transform_indices = @transform_1, window_bounds = array<i64: 2, 16>}, {transform_indices = @transform_2, window_bounds = array<i64: 64, 16>}]} {
    %c0 = arith.constant 0 : index
    %c0_0 = arith.constant 0 : index
    %0 = vector.load %arg1[%c0, %c0_0] : memref<64x2xbf16, #tpu.memory_space<vmem>>, vector<64x2xbf16>
    %c0_1 = arith.constant 0 : index
    %c0_2 = arith.constant 0 : index
    %1 = vector.load %arg2[%c0_1, %c0_2] : memref<2x16xbf16, #tpu.memory_space<vmem>>, vector<2x16xbf16>
    %cst = arith.constant dense<0.000000e+00> : vector<64x16xf32>
    %2 = tpu.matmul %0, %1, %cst {dimension_numbers = #tpu.dot_dimension_numbers<[1], [0], [0], [1], [0, 0, 1, 1], [], []>} : vector<64x2xbf16>, vector<2x16xbf16>, vector<64x16xf32> -> vector<64x16xf32>
    %3 = arith.truncf %2 : vector<64x16xf32> to vector<64x16xbf16>
    %c0_3 = arith.constant 0 : index
    %c0_4 = arith.constant 0 : index
    %4 = vector.load %arg3[%c0_3, %c0_4] : memref<64x16xbf16, #tpu.memory_space<vmem>>, vector<64x16xbf16>
    tpu.vector_store %arg3[%c0_3, %c0_4], %3 {strides = array<i32>} : memref<64x16xbf16, #tpu.memory_space<vmem>>, vector<64x16xbf16>,
    return
  }
  func.func @transform_0(%arg0: i32) -> (i32, i32) {
    %c0_i32 = arith.constant 0 : i32
    %c0_i32_0 = arith.constant 0 : i32
    return %arg0, %c0_i32 : i32, i32
  }
  func.func @transform_1(%arg0: i32) -> (i32, i32) {
    %c0_i32 = arith.constant 0 : i32
    %c0_i32_0 = arith.constant 0 : i32
    %c0_i32_1 = arith.constant 0 : i32
    return %c0_i32, %c0_i32_0 : i32, i32
  }
  func.func @transform_2(%arg0: i32) -> (i32, i32) {
    %c0_i32 = arith.constant 0 : i32
    %c0_i32_0 = arith.constant 0 : i32
    return %arg0, %c0_i32 : i32, i32
  }
}

module attributes {stable_mosaic.version = 11 : i64} {
  func.func @_mm_rhs_res_kernel(%arg0: i32, %arg1: memref<512x2xbf16, #tpu.memory_space<vmem>>, %arg2: memref<2x16xbf16, #tpu.memory_space<vmem>>, %arg3: memref<512x16xbf16, #tpu.memory_space<vmem>>, %arg4: memref<512x16xbf16, #tpu.memory_space<vmem>>) attributes {dimension_semantics = [#tpu.dimension_semantics<parallel>], iteration_bounds = array<i64: 1>, scalar_prefetch = 0 : i64, scratch_operands = 0 : i64, tpu.core_type = #tpu.core_type<tc>, window_params = [{transform_indices = @transform_0, window_bounds = array<i64: 512, 2>}, {pipeline_mode = #tpu.pipeline_mode<synchronous>, transform_indices = @transform_1, window_bounds = array<i64: 2, 16>}, {transform_indices = @transform_2, window_bounds = array<i64: 512, 16>}, {transform_indices = @transform_3, window_bounds = array<i64: 512, 16>}]} {
    %c0 = arith.constant 0 : index
    %c0_0 = arith.constant 0 : index
    %0 = vector.load %arg1[%c0, %c0_0] : memref<512x2xbf16, #tpu.memory_space<vmem>>, vector<512x2xbf16>
    %c0_1 = arith.constant 0 : index
    %c0_2 = arith.constant 0 : index
    %1 = vector.load %arg2[%c0_1, %c0_2] : memref<2x16xbf16, #tpu.memory_space<vmem>>, vector<2x16xbf16>
    %cst = arith.constant dense<0.000000e+00> : vector<512x16xf32>
    %2 = tpu.matmul %0, %1, %cst {dimension_numbers = #tpu.dot_dimension_numbers<[1], [0], [0], [1], [0, 0, 1, 1], [], []>} : vector<512x2xbf16>, vector<2x16xbf16>, vector<512x16xf32> -> vector<512x16xf32>
    %c0_3 = arith.constant 0 : index
    %c0_4 = arith.constant 0 : index
    %3 = vector.load %arg3[%c0_3, %c0_4] : memref<512x16xbf16, #tpu.memory_space<vmem>>, vector<512x16xbf16>
    %4 = arith.extf %3 : vector<512x16xbf16> to vector<512x16xf32>
    %5 = arith.mulf %4, %2 : vector<512x16xf32>
    %6 = arith.addf %5, %4 : vector<512x16xf32>
    %7 = arith.truncf %6 : vector<512x16xf32> to vector<512x16xbf16>
    %c0_5 = arith.constant 0 : index
    %c0_6 = arith.constant 0 : index
    %8 = vector.load %arg4[%c0_5, %c0_6] : memref<512x16xbf16, #tpu.memory_space<vmem>>, vector<512x16xbf16>
    tpu.vector_store %arg4[%c0_5, %c0_6], %7 {strides = array<i32>} : memref<512x16xbf16, #tpu.memory_space<vmem>>, vector<512x16xbf16>,
    return
  }
  func.func @transform_0(%arg0: i32) -> (i32, i32) {
    %c0_i32 = arith.constant 0 : i32
    %c0_i32_0 = arith.constant 0 : i32
    return %arg0, %c0_i32 : i32, i32
  }
  func.func @transform_1(%arg0: i32) -> (i32, i32) {
    %c0_i32 = arith.constant 0 : i32
    %c0_i32_0 = arith.constant 0 : i32
    %c0_i32_1 = arith.constant 0 : i32
    return %c0_i32, %c0_i32_0 : i32, i32
  }
  func.func @transform_2(%arg0: i32) -> (i32, i32) {
    %c0_i32 = arith.constant 0 : i32
    %c0_i32_0 = arith.constant 0 : i32
    return %arg0, %c0_i32 : i32, i32
  }
  func.func @transform_3(%arg0: i32) -> (i32, i32) {
    %c0_i32 = arith.constant 0 : i32
    %c0_i32_0 = arith.constant 0 : i32
    return %arg0, %c0_i32 : i32, i32
  }
}

module attributes {stable_mosaic.version = 11 : i64} {
  func.func @_mm_lhs_kernel(%arg0: i32, %arg1: i32, %arg2: memref<16x16xbf16, #tpu.memory_space<vmem>>, %arg3: memref<16x16xbf16, #tpu.memory_space<vmem>>, %arg4: memref<16x1xf32, #tpu.memory_space<vmem>>, %arg5: memref<1x16x256xbf16, #tpu.memory_space<vmem>>, %arg6: memref<1x16x256xbf16, #tpu.memory_space<vmem>>, %arg7: memref<1x16x256xbf16, #tpu.memory_space<vmem>>) attributes {dimension_semantics = [#tpu.dimension_semantics<parallel>, #tpu.dimension_semantics<parallel>], iteration_bounds = array<i64: 2, 1>, scalar_prefetch = 0 : i64, scratch_operands = 0 : i64, tpu.core_type = #tpu.core_type<tc>, window_params = [{pipeline_mode = #tpu.pipeline_mode<synchronous>, transform_indices = @transform_0, window_bounds = array<i64: 16, 16>}, {pipeline_mode = #tpu.pipeline_mode<synchronous>, transform_indices = @transform_1, window_bounds = array<i64: 16, 16>}, {pipeline_mode = #tpu.pipeline_mode<synchronous>, transform_indices = @transform_2, window_bounds = array<i64: 16, 1>}, {transform_indices = @transform_3, window_bounds = array<i64: 1, 16, 256>}, {transform_indices = @transform_4, window_bounds = array<i64: 1, 16, 256>}, {transform_indices = @transform_5, window_bounds = array<i64: 1, 16, 256>}]} {
    %c0 = arith.constant 0 : index
    %c0_0 = arith.constant 0 : index
    %0 = vector.load %arg4[%c0, %c0_0] : memref<16x1xf32, #tpu.memory_space<vmem>>, vector<16x1xf32>
    %c0_1 = arith.constant 0 : index
    %c0_2 = arith.constant 0 : index
    %1 = vector.load %arg2[%c0_1, %c0_2] : memref<16x16xbf16, #tpu.memory_space<vmem>>, vector<16x16xbf16>
    %c0_3 = arith.constant 0 : index
    %c0_4 = arith.constant 0 : index
    %c0_5 = arith.constant 0 : index
    %2 = vector.load %arg5[%c0_3, %c0_4, %c0_5] : memref<1x16x256xbf16, #tpu.memory_space<vmem>>, vector<1x16x256xbf16>
    %3 = vector.shape_cast %2 : vector<1x16x256xbf16> to vector<16x256xbf16>
    %cst = arith.constant dense<0.000000e+00> : vector<16x256xf32>
    %4 = tpu.matmul %1, %3, %cst {dimension_numbers = #tpu.dot_dimension_numbers<[1], [0], [0], [1], [0, 0, 1, 1], [], []>} : vector<16x16xbf16>, vector<16x256xbf16>, vector<16x256xf32> -> vector<16x256xf32>
    %5 = vector.broadcast %0 : vector<16x1xf32> to vector<16x256xf32>
    %6 = arith.addf %5, %4 : vector<16x256xf32>
    %c0_6 = arith.constant 0 : index
    %c0_7 = arith.constant 0 : index
    %7 = vector.load %arg3[%c0_6, %c0_7] : memref<16x16xbf16, #tpu.memory_space<vmem>>, vector<16x16xbf16>
    %c0_8 = arith.constant 0 : index
    %c0_9 = arith.constant 0 : index
    %c0_10 = arith.constant 0 : index
    %8 = vector.load %arg6[%c0_8, %c0_9, %c0_10] : memref<1x16x256xbf16, #tpu.memory_space<vmem>>, vector<1x16x256xbf16>
    %9 = vector.shape_cast %8 : vector<1x16x256xbf16> to vector<16x256xbf16>
    %cst_11 = arith.constant dense<0.000000e+00> : vector<16x256xf32>
    %10 = tpu.matmul %7, %9, %cst_11 {dimension_numbers = #tpu.dot_dimension_numbers<[1], [0], [0], [1], [0, 0, 1, 1], [], []>} : vector<16x16xbf16>, vector<16x256xbf16>, vector<16x256xf32> -> vector<16x256xf32>
    %11 = arith.addf %6, %10 : vector<16x256xf32>
    %12 = arith.truncf %11 : vector<16x256xf32> to vector<16x256xbf16>
    %c0_12 = arith.constant 0 : index
    %c0_13 = arith.constant 0 : index
    %c0_14 = arith.constant 0 : index
    %13 = vector.load %arg7[%c0_12, %c0_13, %c0_14] : memref<1x16x256xbf16, #tpu.memory_space<vmem>>, vector<1x16x256xbf16>
    %14 = vector.shape_cast %13 : vector<1x16x256xbf16> to vector<16x256xbf16>
    %15 = vector.shape_cast %12 : vector<16x256xbf16> to vector<1x16x256xbf16>
    tpu.vector_store %arg7[%c0_12, %c0_13, %c0_14], %15 {strides = array<i32>} : memref<1x16x256xbf16, #tpu.memory_space<vmem>>, vector<1x16x256xbf16>,
    return
  }
  func.func @transform_0(%arg0: i32, %arg1: i32) -> (i32, i32) {
    %c0_i32 = arith.constant 0 : i32
    %c0_i32_0 = arith.constant 0 : i32
    %c0_i32_1 = arith.constant 0 : i32
    return %c0_i32, %c0_i32_0 : i32, i32
  }
  func.func @transform_1(%arg0: i32, %arg1: i32) -> (i32, i32) {
    %c0_i32 = arith.constant 0 : i32
    %c0_i32_0 = arith.constant 0 : i32
    %c0_i32_1 = arith.constant 0 : i32
    return %c0_i32, %c0_i32_0 : i32, i32
  }
  func.func @transform_2(%arg0: i32, %arg1: i32) -> (i32, i32) {
    %c0_i32 = arith.constant 0 : i32
    %c0_i32_0 = arith.constant 0 : i32
    %c0_i32_1 = arith.constant 0 : i32
    return %c0_i32, %c0_i32_0 : i32, i32
  }
  func.func @transform_3(%arg0: i32, %arg1: i32) -> (i32, i32, i32) {
    %c0_i32 = arith.constant 0 : i32
    %c0_i32_0 = arith.constant 0 : i32
    return %arg0, %c0_i32, %arg1 : i32, i32, i32
  }
  func.func @transform_4(%arg0: i32, %arg1: i32) -> (i32, i32, i32) {
    %c0_i32 = arith.constant 0 : i32
    %c0_i32_0 = arith.constant 0 : i32
    return %arg0, %c0_i32, %arg1 : i32, i32, i32
  }
  func.func @transform_5(%arg0: i32, %arg1: i32) -> (i32, i32, i32) {
    %c0_i32 = arith.constant 0 : i32
    %c0_i32_0 = arith.constant 0 : i32
    return %arg0, %c0_i32, %arg1 : i32, i32, i32
  }
}

module attributes {stable_mosaic.version = 11 : i64} {
  func.func @_graph_kernel(%arg0: i32, %arg1: memref<8x16xbf16, #tpu.memory_space<vmem>>, %arg2: memref<8x1xf32, #tpu.memory_space<vmem>>, %arg3: memref<4x16xbf16, #tpu.memory_space<vmem>>, %arg4: memref<4x1xf32, #tpu.memory_space<vmem>>, %arg5: memref<4x4xbf16, #tpu.memory_space<vmem>>, %arg6: memref<1x4xf32, #tpu.memory_space<vmem>>, %arg7: memref<8x8xbf16, #tpu.memory_space<vmem>>, %arg8: memref<8x1xf32, #tpu.memory_space<vmem>>, %arg9: memref<16x8xbf16, #tpu.memory_space<vmem>>, %arg10: memref<16x1xf32, #tpu.memory_space<vmem>>, %arg11: memref<1x16x256xbf16, #tpu.memory_space<vmem>>, %arg12: memref<1x16x256xbf16, #tpu.memory_space<vmem>>) attributes {dimension_semantics = [#tpu.dimension_semantics<parallel>], iteration_bounds = array<i64: 2>, scalar_prefetch = 0 : i64, scratch_operands = 0 : i64, tpu.core_type = #tpu.core_type<tc>, window_params = [{pipeline_mode = #tpu.pipeline_mode<synchronous>, transform_indices = @transform_0, window_bounds = array<i64: 8, 16>}, {pipeline_mode = #tpu.pipeline_mode<synchronous>, transform_indices = @transform_1, window_bounds = array<i64: 8, 1>}, {pipeline_mode = #tpu.pipeline_mode<synchronous>, transform_indices = @transform_2, window_bounds = array<i64: 4, 16>}, {pipeline_mode = #tpu.pipeline_mode<synchronous>, transform_indices = @transform_3, window_bounds = array<i64: 4, 1>}, {pipeline_mode = #tpu.pipeline_mode<synchronous>, transform_indices = @transform_4, window_bounds = array<i64: 4, 4>}, {pipeline_mode = #tpu.pipeline_mode<synchronous>, transform_indices = @transform_5, window_bounds = array<i64: 1, 4>}, {pipeline_mode = #tpu.pipeline_mode<synchronous>, transform_indices = @transform_6, window_bounds = array<i64: 8, 8>}, {pipeline_mode = #tpu.pipeline_mode<synchronous>, transform_indices = @transform_7, window_bounds = array<i64: 8, 1>}, {pipeline_mode = #tpu.pipeline_mode<synchronous>, transform_indices = @transform_8, window_bounds = array<i64: 16, 8>}, {pipeline_mode = #tpu.pipeline_mode<synchronous>, transform_indices = @transform_9, window_bounds = array<i64: 16, 1>}, {transform_indices = @transform_10, window_bounds = array<i64: 1, 16, 256>}, {transform_indices = @transform_11, window_bounds = array<i64: 1, 16, 256>}]} {
    %c0 = arith.constant 0 : index
    %c0_0 = arith.constant 0 : index
    %c0_1 = arith.constant 0 : index
    %0 = vector.load %arg11[%c0, %c0_0, %c0_1] : memref<1x16x256xbf16, #tpu.memory_space<vmem>>, vector<1x16x256xbf16>
    %1 = vector.shape_cast %0 : vector<1x16x256xbf16> to vector<16x256xbf16>
    %c0_2 = arith.constant 0 : index
    %c0_3 = arith.constant 0 : index
    %2 = vector.load %arg1[%c0_2, %c0_3] : memref<8x16xbf16, #tpu.memory_space<vmem>>, vector<8x16xbf16>
    %cst = arith.constant dense<0.000000e+00> : vector<8x256xf32>
    %3 = tpu.matmul %2, %1, %cst {dimension_numbers = #tpu.dot_dimension_numbers<[1], [0], [0], [1], [0, 0, 1, 1], [], []>} : vector<8x16xbf16>, vector<16x256xbf16>, vector<8x256xf32> -> vector<8x256xf32>
    %c0_4 = arith.constant 0 : index
    %c0_5 = arith.constant 0 : index
    %4 = vector.load %arg2[%c0_4, %c0_5] : memref<8x1xf32, #tpu.memory_space<vmem>>, vector<8x1xf32>
    %5 = vector.broadcast %4 : vector<8x1xf32> to vector<8x256xf32>
    %6 = arith.addf %3, %5 : vector<8x256xf32>
    %c0_6 = arith.constant 0 : index
    %c0_7 = arith.constant 0 : index
    %7 = vector.load %arg3[%c0_6, %c0_7] : memref<4x16xbf16, #tpu.memory_space<vmem>>, vector<4x16xbf16>
    %cst_8 = arith.constant dense<0.000000e+00> : vector<4x256xf32>
    %8 = tpu.matmul %7, %1, %cst_8 {dimension_numbers = #tpu.dot_dimension_numbers<[1], [0], [0], [1], [0, 0, 1, 1], [], []>} : vector<4x16xbf16>, vector<16x256xbf16>, vector<4x256xf32> -> vector<4x256xf32>
    %c0_9 = arith.constant 0 : index
    %c0_10 = arith.constant 0 : index
    %9 = vector.load %arg4[%c0_9, %c0_10] : memref<4x1xf32, #tpu.memory_space<vmem>>, vector<4x1xf32>
    %10 = vector.broadcast %9 : vector<4x1xf32> to vector<4x256xf32>
    %11 = arith.addf %8, %10 : vector<4x256xf32>
    %12 = arith.truncf %6 : vector<8x256xf32> to vector<8x256xbf16>
    %13 = arith.truncf %11 : vector<4x256xf32> to vector<4x256xbf16>
    %cst_11 = arith.constant dense<0.000000e+00> : vector<8x4xf32>
    %14 = tpu.matmul %12, %13, %cst_11 {dimension_numbers = #tpu.dot_dimension_numbers<[1], [1], [0], [0], [0, 0, 1, 0], [], []>} : vector<8x256xbf16>, vector<4x256xbf16>, vector<8x4xf32> -> vector<8x4xf32>
    %c0_12 = arith.constant 0 : index
    %c0_13 = arith.constant 0 : index
    %15 = vector.load %arg5[%c0_12, %c0_13] : memref<4x4xbf16, #tpu.memory_space<vmem>>, vector<4x4xbf16>
    %16 = arith.truncf %14 : vector<8x4xf32> to vector<8x4xbf16>
    %cst_14 = arith.constant dense<0.000000e+00> : vector<8x4xf32>
    %17 = tpu.matmul %16, %15, %cst_14 {dimension_numbers = #tpu.dot_dimension_numbers<[1], [1], [0], [0], [0, 0, 1, 0], [], []>} : vector<8x4xbf16>, vector<4x4xbf16>, vector<8x4xf32> -> vector<8x4xf32>
    %c0_15 = arith.constant 0 : index
    %c0_16 = arith.constant 0 : index
    %18 = vector.load %arg6[%c0_15, %c0_16] : memref<1x4xf32, #tpu.memory_space<vmem>>, vector<1x4xf32>
    %19 = vector.broadcast %18 : vector<1x4xf32> to vector<8x4xf32>
    %20 = arith.addf %17, %19 : vector<8x4xf32>
    %21 = arith.addf %20, %14 : vector<8x4xf32>
    %c0_17 = arith.constant 0 : index
    %c0_18 = arith.constant 0 : index
    %22 = vector.load %arg7[%c0_17, %c0_18] : memref<8x8xbf16, #tpu.memory_space<vmem>>, vector<8x8xbf16>
    %23 = arith.truncf %21 : vector<8x4xf32> to vector<8x4xbf16>
    %cst_19 = arith.constant dense<0.000000e+00> : vector<8x4xf32>
    %24 = tpu.matmul %22, %23, %cst_19 {dimension_numbers = #tpu.dot_dimension_numbers<[1], [0], [0], [1], [0, 0, 1, 1], [], []>} : vector<8x8xbf16>, vector<8x4xbf16>, vector<8x4xf32> -> vector<8x4xf32>
    %c0_20 = arith.constant 0 : index
    %c0_21 = arith.constant 0 : index
    %25 = vector.load %arg8[%c0_20, %c0_21] : memref<8x1xf32, #tpu.memory_space<vmem>>, vector<8x1xf32>
    %26 = vector.broadcast %25 : vector<8x1xf32> to vector<8x4xf32>
    %27 = arith.addf %24, %26 : vector<8x4xf32>
    %28 = arith.truncf %27 : vector<8x4xf32> to vector<8x4xbf16>
    %29 = arith.truncf %11 : vector<4x256xf32> to vector<4x256xbf16>
    %cst_22 = arith.constant dense<0.000000e+00> : vector<8x256xf32>
    %30 = tpu.matmul %28, %29, %cst_22 {dimension_numbers = #tpu.dot_dimension_numbers<[1], [0], [0], [1], [0, 0, 1, 1], [], []>} : vector<8x4xbf16>, vector<4x256xbf16>, vector<8x256xf32> -> vector<8x256xf32>
    %c0_23 = arith.constant 0 : index
    %c0_24 = arith.constant 0 : index
    %31 = vector.load %arg9[%c0_23, %c0_24] : memref<16x8xbf16, #tpu.memory_space<vmem>>, vector<16x8xbf16>
    %32 = arith.truncf %30 : vector<8x256xf32> to vector<8x256xbf16>
    %cst_25 = arith.constant dense<0.000000e+00> : vector<16x256xf32>
    %33 = tpu.matmul %31, %32, %cst_25 {dimension_numbers = #tpu.dot_dimension_numbers<[1], [0], [0], [1], [0, 0, 1, 1], [], []>} : vector<16x8xbf16>, vector<8x256xbf16>, vector<16x256xf32> -> vector<16x256xf32>
    %c0_26 = arith.constant 0 : index
    %c0_27 = arith.constant 0 : index
    %34 = vector.load %arg10[%c0_26, %c0_27] : memref<16x1xf32, #tpu.memory_space<vmem>>, vector<16x1xf32>
    %35 = vector.broadcast %34 : vector<16x1xf32> to vector<16x256xf32>
    %36 = arith.addf %33, %35 : vector<16x256xf32>
    %37 = arith.extf %1 : vector<16x256xbf16> to vector<16x256xf32>
    %38 = arith.addf %37, %36 : vector<16x256xf32>
    %cst_28 = arith.constant 0.000000e+00 : f32
    %39 = vector.broadcast %cst_28 : f32 to vector<16x256xf32>
    %40 = arith.maximumf %38, %39 : vector<16x256xf32>
    %41 = arith.truncf %40 : vector<16x256xf32> to vector<16x256xbf16>
    %c0_29 = arith.constant 0 : index
    %c0_30 = arith.constant 0 : index
    %c0_31 = arith.constant 0 : index
    %42 = vector.load %arg12[%c0_29, %c0_30, %c0_31] : memref<1x16x256xbf16, #tpu.memory_space<vmem>>, vector<1x16x256xbf16>
    %43 = vector.shape_cast %42 : vector<1x16x256xbf16> to vector<16x256xbf16>
    %44 = vector.shape_cast %41 : vector<16x256xbf16> to vector<1x16x256xbf16>
    tpu.vector_store %arg12[%c0_29, %c0_30, %c0_31], %44 {strides = array<i32>} : memref<1x16x256xbf16, #tpu.memory_space<vmem>>, vector<1x16x256xbf16>,
    return
  }
  func.func @transform_0(%arg0: i32) -> (i32, i32) {
    %c0_i32 = arith.constant 0 : i32
    %c0_i32_0 = arith.constant 0 : i32
    %c0_i32_1 = arith.constant 0 : i32
    return %c0_i32, %c0_i32_0 : i32, i32
  }
  func.func @transform_1(%arg0: i32) -> (i32, i32) {
    %c0_i32 = arith.constant 0 : i32
    %c0_i32_0 = arith.constant 0 : i32
    %c0_i32_1 = arith.constant 0 : i32
    return %c0_i32, %c0_i32_0 : i32, i32
  }
  func.func @transform_2(%arg0: i32) -> (i32, i32) {
    %c0_i32 = arith.constant 0 : i32
    %c0_i32_0 = arith.constant 0 : i32
    %c0_i32_1 = arith.constant 0 : i32
    return %c0_i32, %c0_i32_0 : i32, i32
  }
  func.func @transform_3(%arg0: i32) -> (i32, i32) {
    %c0_i32 = arith.constant 0 : i32
    %c0_i32_0 = arith.constant 0 : i32
    %c0_i32_1 = arith.constant 0 : i32
    return %c0_i32, %c0_i32_0 : i32, i32
  }
  func.func @transform_4(%arg0: i32) -> (i32, i32) {
    %c0_i32 = arith.constant 0 : i32
    %c0_i32_0 = arith.constant 0 : i32
    %c0_i32_1 = arith.constant 0 : i32
    return %c0_i32, %c0_i32_0 : i32, i32
  }
  func.func @transform_5(%arg0: i32) -> (i32, i32) {
    %c0_i32 = arith.constant 0 : i32
    %c0_i32_0 = arith.constant 0 : i32
    %c0_i32_1 = arith.constant 0 : i32
    return %c0_i32, %c0_i32_0 : i32, i32
  }
  func.func @transform_6(%arg0: i32) -> (i32, i32) {
    %c0_i32 = arith.constant 0 : i32
    %c0_i32_0 = arith.constant 0 : i32
    %c0_i32_1 = arith.constant 0 : i32
    return %c0_i32, %c0_i32_0 : i32, i32
  }
  func.func @transform_7(%arg0: i32) -> (i32, i32) {
    %c0_i32 = arith.constant 0 : i32
    %c0_i32_0 = arith.constant 0 : i32
    %c0_i32_1 = arith.constant 0 : i32
    return %c0_i32, %c0_i32_0 : i32, i32
  }
  func.func @transform_8(%arg0: i32) -> (i32, i32) {
    %c0_i32 = arith.constant 0 : i32
    %c0_i32_0 = arith.constant 0 : i32
    %c0_i32_1 = arith.constant 0 : i32
    return %c0_i32, %c0_i32_0 : i32, i32
  }
  func.func @transform_9(%arg0: i32) -> (i32, i32) {
    %c0_i32 = arith.constant 0 : i32
    %c0_i32_0 = arith.constant 0 : i32
    %c0_i32_1 = arith.constant 0 : i32
    return %c0_i32, %c0_i32_0 : i32, i32
  }
  func.func @transform_10(%arg0: i32) -> (i32, i32, i32) {
    %c0_i32 = arith.constant 0 : i32
    %c0_i32_0 = arith.constant 0 : i32
    %c0_i32_1 = arith.constant 0 : i32
    return %arg0, %c0_i32, %c0_i32_0 : i32, i32, i32
  }
  func.func @transform_11(%arg0: i32) -> (i32, i32, i32) {
    %c0_i32 = arith.constant 0 : i32
    %c0_i32_0 = arith.constant 0 : i32
    %c0_i32_1 = arith.constant 0 : i32
    return %arg0, %c0_i32, %c0_i32_0 : i32, i32, i32
  }
}

module attributes {stable_mosaic.version = 11 : i64} {
  func.func @_conv3x3_kernel(%arg0: i32, %arg1: memref<1x256xf32, #tpu.memory_space<vmem>>, %arg2: memref<1x256xf32, #tpu.memory_space<vmem>>, %arg3: memref<9x16x8xbf16, #tpu.memory_space<vmem>>, %arg4: memref<9x16x16xbf16, #tpu.memory_space<vmem>>, %arg5: memref<16x1xf32, #tpu.memory_space<vmem>>, %arg6: memref<1x8x291xbf16, #tpu.memory_space<vmem>>, %arg7: memref<1x16x291xbf16, #tpu.memory_space<vmem>>, %arg8: memref<1x16x256xbf16, #tpu.memory_space<vmem>>) attributes {dimension_semantics = [#tpu.dimension_semantics<parallel>], iteration_bounds = array<i64: 2>, scalar_prefetch = 0 : i64, scratch_operands = 0 : i64, tpu.core_type = #tpu.core_type<tc>, window_params = [{pipeline_mode = #tpu.pipeline_mode<synchronous>, transform_indices = @transform_0, window_bounds = array<i64: 1, 256>}, {pipeline_mode = #tpu.pipeline_mode<synchronous>, transform_indices = @transform_1, window_bounds = array<i64: 1, 256>}, {pipeline_mode = #tpu.pipeline_mode<synchronous>, transform_indices = @transform_2, window_bounds = array<i64: 9, 16, 8>}, {pipeline_mode = #tpu.pipeline_mode<synchronous>, transform_indices = @transform_3, window_bounds = array<i64: 9, 16, 16>}, {pipeline_mode = #tpu.pipeline_mode<synchronous>, transform_indices = @transform_4, window_bounds = array<i64: 16, 1>}, {transform_indices = @transform_5, window_bounds = array<i64: 1, 8, 291>}, {transform_indices = @transform_6, window_bounds = array<i64: 1, 16, 291>}, {transform_indices = @transform_7, window_bounds = array<i64: 1, 16, 256>}]} {
    %c0 = arith.constant 0 : index
    %c0_0 = arith.constant 0 : index
    %0 = vector.load %arg1[%c0, %c0_0] : memref<1x256xf32, #tpu.memory_space<vmem>>, vector<1x256xf32>
    %c0_1 = arith.constant 0 : index
    %c0_2 = arith.constant 0 : index
    %1 = vector.load %arg2[%c0_1, %c0_2] : memref<1x256xf32, #tpu.memory_space<vmem>>, vector<1x256xf32>
    %c0_3 = arith.constant 0 : index
    %c0_4 = arith.constant 0 : index
    %c0_5 = arith.constant 0 : index
    %2 = vector.load %arg6[%c0_3, %c0_4, %c0_5] : memref<1x8x291xbf16, #tpu.memory_space<vmem>>, vector<1x8x291xbf16>
    %3 = vector.shape_cast %2 : vector<1x8x291xbf16> to vector<8x291xbf16>
    %c0_6 = arith.constant 0 : index
    %c0_7 = arith.constant 0 : index
    %c0_8 = arith.constant 0 : index
    %4 = vector.load %arg7[%c0_6, %c0_7, %c0_8] : memref<1x16x291xbf16, #tpu.memory_space<vmem>>, vector<1x16x291xbf16>
    %5 = vector.shape_cast %4 : vector<1x16x291xbf16> to vector<16x291xbf16>
    %c1 = arith.constant 1 : index
    %c0_9 = arith.constant 0 : index
    %c0_10 = arith.constant 0 : index
    %6 = vector.load %arg3[%c1, %c0_9, %c0_10] : memref<9x16x8xbf16, #tpu.memory_space<vmem>>, vector<1x16x8xbf16>
    %7 = vector.shape_cast %6 : vector<1x16x8xbf16> to vector<16x8xbf16>
    %8 = vector.extract_strided_slice %3 {offsets = [0, 1], sizes = [8, 256], strides = [1, 1]} : vector<8x291xbf16> to vector<8x256xbf16>
    %cst = arith.constant dense<0.000000e+00> : vector<16x256xf32>
    %9 = tpu.matmul %7, %8, %cst {dimension_numbers = #tpu.dot_dimension_numbers<[1], [0], [0], [1], [0, 0, 1, 1], [], []>} : vector<16x8xbf16>, vector<8x256xbf16>, vector<16x256xf32> -> vector<16x256xf32>
    %c1_11 = arith.constant 1 : index
    %c0_12 = arith.constant 0 : index
    %c0_13 = arith.constant 0 : index
    %10 = vector.load %arg4[%c1_11, %c0_12, %c0_13] : memref<9x16x16xbf16, #tpu.memory_space<vmem>>, vector<1x16x16xbf16>
    %11 = vector.shape_cast %10 : vector<1x16x16xbf16> to vector<16x16xbf16>
    %12 = vector.extract_strided_slice %5 {offsets = [0, 1], sizes = [16, 256], strides = [1, 1]} : vector<16x291xbf16> to vector<16x256xbf16>
    %cst_14 = arith.constant dense<0.000000e+00> : vector<16x256xf32>
    %13 = tpu.matmul %11, %12, %cst_14 {dimension_numbers = #tpu.dot_dimension_numbers<[1], [0], [0], [1], [0, 0, 1, 1], [], []>} : vector<16x16xbf16>, vector<16x256xbf16>, vector<16x256xf32> -> vector<16x256xf32>
    %14 = arith.addf %9, %13 : vector<16x256xf32>
    %c4 = arith.constant 4 : index
    %c0_15 = arith.constant 0 : index
    %c0_16 = arith.constant 0 : index
    %15 = vector.load %arg3[%c4, %c0_15, %c0_16] : memref<9x16x8xbf16, #tpu.memory_space<vmem>>, vector<1x16x8xbf16>
    %16 = vector.shape_cast %15 : vector<1x16x8xbf16> to vector<16x8xbf16>
    %17 = vector.extract_strided_slice %3 {offsets = [0, 17], sizes = [8, 256], strides = [1, 1]} : vector<8x291xbf16> to vector<8x256xbf16>
    %cst_17 = arith.constant dense<0.000000e+00> : vector<16x256xf32>
    %18 = tpu.matmul %16, %17, %cst_17 {dimension_numbers = #tpu.dot_dimension_numbers<[1], [0], [0], [1], [0, 0, 1, 1], [], []>} : vector<16x8xbf16>, vector<8x256xbf16>, vector<16x256xf32> -> vector<16x256xf32>
    %19 = arith.addf %14, %18 : vector<16x256xf32>
    %c4_18 = arith.constant 4 : index
    %c0_19 = arith.constant 0 : index
    %c0_20 = arith.constant 0 : index
    %20 = vector.load %arg4[%c4_18, %c0_19, %c0_20] : memref<9x16x16xbf16, #tpu.memory_space<vmem>>, vector<1x16x16xbf16>
    %21 = vector.shape_cast %20 : vector<1x16x16xbf16> to vector<16x16xbf16>
    %22 = vector.extract_strided_slice %5 {offsets = [0, 17], sizes = [16, 256], strides = [1, 1]} : vector<16x291xbf16> to vector<16x256xbf16>
    %cst_21 = arith.constant dense<0.000000e+00> : vector<16x256xf32>
    %23 = tpu.matmul %21, %22, %cst_21 {dimension_numbers = #tpu.dot_dimension_numbers<[1], [0], [0], [1], [0, 0, 1, 1], [], []>} : vector<16x16xbf16>, vector<16x256xbf16>, vector<16x256xf32> -> vector<16x256xf32>
    %24 = arith.addf %19, %23 : vector<16x256xf32>
    %c7 = arith.constant 7 : index
    %c0_22 = arith.constant 0 : index
    %c0_23 = arith.constant 0 : index
    %25 = vector.load %arg3[%c7, %c0_22, %c0_23] : memref<9x16x8xbf16, #tpu.memory_space<vmem>>, vector<1x16x8xbf16>
    %26 = vector.shape_cast %25 : vector<1x16x8xbf16> to vector<16x8xbf16>
    %27 = vector.extract_strided_slice %3 {offsets = [0, 33], sizes = [8, 256], strides = [1, 1]} : vector<8x291xbf16> to vector<8x256xbf16>
    %cst_24 = arith.constant dense<0.000000e+00> : vector<16x256xf32>
    %28 = tpu.matmul %26, %27, %cst_24 {dimension_numbers = #tpu.dot_dimension_numbers<[1], [0], [0], [1], [0, 0, 1, 1], [], []>} : vector<16x8xbf16>, vector<8x256xbf16>, vector<16x256xf32> -> vector<16x256xf32>
    %29 = arith.addf %24, %28 : vector<16x256xf32>
    %c7_25 = arith.constant 7 : index
    %c0_26 = arith.constant 0 : index
    %c0_27 = arith.constant 0 : index
    %30 = vector.load %arg4[%c7_25, %c0_26, %c0_27] : memref<9x16x16xbf16, #tpu.memory_space<vmem>>, vector<1x16x16xbf16>
    %31 = vector.shape_cast %30 : vector<1x16x16xbf16> to vector<16x16xbf16>
    %32 = vector.extract_strided_slice %5 {offsets = [0, 33], sizes = [16, 256], strides = [1, 1]} : vector<16x291xbf16> to vector<16x256xbf16>
    %cst_28 = arith.constant dense<0.000000e+00> : vector<16x256xf32>
    %33 = tpu.matmul %31, %32, %cst_28 {dimension_numbers = #tpu.dot_dimension_numbers<[1], [0], [0], [1], [0, 0, 1, 1], [], []>} : vector<16x16xbf16>, vector<16x256xbf16>, vector<16x256xf32> -> vector<16x256xf32>
    %34 = arith.addf %29, %33 : vector<16x256xf32>
    %c0_29 = arith.constant 0 : index
    %c0_30 = arith.constant 0 : index
    %35 = vector.load %arg5[%c0_29, %c0_30] : memref<16x1xf32, #tpu.memory_space<vmem>>, vector<16x1xf32>
    %36 = vector.broadcast %35 : vector<16x1xf32> to vector<16x256xf32>
    %37 = arith.addf %34, %36 : vector<16x256xf32>
    %c0_31 = arith.constant 0 : index
    %c0_32 = arith.constant 0 : index
    %c0_33 = arith.constant 0 : index
    %38 = vector.load %arg3[%c0_31, %c0_32, %c0_33] : memref<9x16x8xbf16, #tpu.memory_space<vmem>>, vector<1x16x8xbf16>
    %39 = vector.shape_cast %38 : vector<1x16x8xbf16> to vector<16x8xbf16>
    %40 = vector.extract_strided_slice %3 {offsets = [0, 0], sizes = [8, 256], strides = [1, 1]} : vector<8x291xbf16> to vector<8x256xbf16>
    %cst_34 = arith.constant dense<0.000000e+00> : vector<16x256xf32>
    %41 = tpu.matmul %39, %40, %cst_34 {dimension_numbers = #tpu.dot_dimension_numbers<[1], [0], [0], [1], [0, 0, 1, 1], [], []>} : vector<16x8xbf16>, vector<8x256xbf16>, vector<16x256xf32> -> vector<16x256xf32>
    %c0_35 = arith.constant 0 : index
    %c0_36 = arith.constant 0 : index
    %c0_37 = arith.constant 0 : index
    %42 = vector.load %arg4[%c0_35, %c0_36, %c0_37] : memref<9x16x16xbf16, #tpu.memory_space<vmem>>, vector<1x16x16xbf16>
    %43 = vector.shape_cast %42 : vector<1x16x16xbf16> to vector<16x16xbf16>
    %44 = vector.extract_strided_slice %5 {offsets = [0, 0], sizes = [16, 256], strides = [1, 1]} : vector<16x291xbf16> to vector<16x256xbf16>
    %cst_38 = arith.constant dense<0.000000e+00> : vector<16x256xf32>
    %45 = tpu.matmul %43, %44, %cst_38 {dimension_numbers = #tpu.dot_dimension_numbers<[1], [0], [0], [1], [0, 0, 1, 1], [], []>} : vector<16x16xbf16>, vector<16x256xbf16>, vector<16x256xf32> -> vector<16x256xf32>
    %46 = arith.addf %41, %45 : vector<16x256xf32>
    %c3 = arith.constant 3 : index
    %c0_39 = arith.constant 0 : index
    %c0_40 = arith.constant 0 : index
    %47 = vector.load %arg3[%c3, %c0_39, %c0_40] : memref<9x16x8xbf16, #tpu.memory_space<vmem>>, vector<1x16x8xbf16>
    %48 = vector.shape_cast %47 : vector<1x16x8xbf16> to vector<16x8xbf16>
    %49 = vector.extract_strided_slice %3 {offsets = [0, 16], sizes = [8, 256], strides = [1, 1]} : vector<8x291xbf16> to vector<8x256xbf16>
    %cst_41 = arith.constant dense<0.000000e+00> : vector<16x256xf32>
    %50 = tpu.matmul %48, %49, %cst_41 {dimension_numbers = #tpu.dot_dimension_numbers<[1], [0], [0], [1], [0, 0, 1, 1], [], []>} : vector<16x8xbf16>, vector<8x256xbf16>, vector<16x256xf32> -> vector<16x256xf32>
    %51 = arith.addf %46, %50 : vector<16x256xf32>
    %c3_42 = arith.constant 3 : index
    %c0_43 = arith.constant 0 : index
    %c0_44 = arith.constant 0 : index
    %52 = vector.load %arg4[%c3_42, %c0_43, %c0_44] : memref<9x16x16xbf16, #tpu.memory_space<vmem>>, vector<1x16x16xbf16>
    %53 = vector.shape_cast %52 : vector<1x16x16xbf16> to vector<16x16xbf16>
    %54 = vector.extract_strided_slice %5 {offsets = [0, 16], sizes = [16, 256], strides = [1, 1]} : vector<16x291xbf16> to vector<16x256xbf16>
    %cst_45 = arith.constant dense<0.000000e+00> : vector<16x256xf32>
    %55 = tpu.matmul %53, %54, %cst_45 {dimension_numbers = #tpu.dot_dimension_numbers<[1], [0], [0], [1], [0, 0, 1, 1], [], []>} : vector<16x16xbf16>, vector<16x256xbf16>, vector<16x256xf32> -> vector<16x256xf32>
    %56 = arith.addf %51, %55 : vector<16x256xf32>
    %c6 = arith.constant 6 : index
    %c0_46 = arith.constant 0 : index
    %c0_47 = arith.constant 0 : index
    %57 = vector.load %arg3[%c6, %c0_46, %c0_47] : memref<9x16x8xbf16, #tpu.memory_space<vmem>>, vector<1x16x8xbf16>
    %58 = vector.shape_cast %57 : vector<1x16x8xbf16> to vector<16x8xbf16>
    %59 = vector.extract_strided_slice %3 {offsets = [0, 32], sizes = [8, 256], strides = [1, 1]} : vector<8x291xbf16> to vector<8x256xbf16>
    %cst_48 = arith.constant dense<0.000000e+00> : vector<16x256xf32>
    %60 = tpu.matmul %58, %59, %cst_48 {dimension_numbers = #tpu.dot_dimension_numbers<[1], [0], [0], [1], [0, 0, 1, 1], [], []>} : vector<16x8xbf16>, vector<8x256xbf16>, vector<16x256xf32> -> vector<16x256xf32>
    %61 = arith.addf %56, %60 : vector<16x256xf32>
    %c6_49 = arith.constant 6 : index
    %c0_50 = arith.constant 0 : index
    %c0_51 = arith.constant 0 : index
    %62 = vector.load %arg4[%c6_49, %c0_50, %c0_51] : memref<9x16x16xbf16, #tpu.memory_space<vmem>>, vector<1x16x16xbf16>
    %63 = vector.shape_cast %62 : vector<1x16x16xbf16> to vector<16x16xbf16>
    %64 = vector.extract_strided_slice %5 {offsets = [0, 32], sizes = [16, 256], strides = [1, 1]} : vector<16x291xbf16> to vector<16x256xbf16>
    %cst_52 = arith.constant dense<0.000000e+00> : vector<16x256xf32>
    %65 = tpu.matmul %63, %64, %cst_52 {dimension_numbers = #tpu.dot_dimension_numbers<[1], [0], [0], [1], [0, 0, 1, 1], [], []>} : vector<16x16xbf16>, vector<16x256xbf16>, vector<16x256xf32> -> vector<16x256xf32>
    %66 = arith.addf %61, %65 : vector<16x256xf32>
    %67 = vector.broadcast %0 : vector<1x256xf32> to vector<16x256xf32>
    %68 = arith.mulf %66, %67 : vector<16x256xf32>
    %69 = arith.addf %37, %68 : vector<16x256xf32>
    %c2 = arith.constant 2 : index
    %c0_53 = arith.constant 0 : index
    %c0_54 = arith.constant 0 : index
    %70 = vector.load %arg3[%c2, %c0_53, %c0_54] : memref<9x16x8xbf16, #tpu.memory_space<vmem>>, vector<1x16x8xbf16>
    %71 = vector.shape_cast %70 : vector<1x16x8xbf16> to vector<16x8xbf16>
    %72 = vector.extract_strided_slice %3 {offsets = [0, 2], sizes = [8, 256], strides = [1, 1]} : vector<8x291xbf16> to vector<8x256xbf16>
    %cst_55 = arith.constant dense<0.000000e+00> : vector<16x256xf32>
    %73 = tpu.matmul %71, %72, %cst_55 {dimension_numbers = #tpu.dot_dimension_numbers<[1], [0], [0], [1], [0, 0, 1, 1], [], []>} : vector<16x8xbf16>, vector<8x256xbf16>, vector<16x256xf32> -> vector<16x256xf32>
    %c2_56 = arith.constant 2 : index
    %c0_57 = arith.constant 0 : index
    %c0_58 = arith.constant 0 : index
    %74 = vector.load %arg4[%c2_56, %c0_57, %c0_58] : memref<9x16x16xbf16, #tpu.memory_space<vmem>>, vector<1x16x16xbf16>
    %75 = vector.shape_cast %74 : vector<1x16x16xbf16> to vector<16x16xbf16>
    %76 = vector.extract_strided_slice %5 {offsets = [0, 2], sizes = [16, 256], strides = [1, 1]} : vector<16x291xbf16> to vector<16x256xbf16>
    %cst_59 = arith.constant dense<0.000000e+00> : vector<16x256xf32>
    %77 = tpu.matmul %75, %76, %cst_59 {dimension_numbers = #tpu.dot_dimension_numbers<[1], [0], [0], [1], [0, 0, 1, 1], [], []>} : vector<16x16xbf16>, vector<16x256xbf16>, vector<16x256xf32> -> vector<16x256xf32>
    %78 = arith.addf %73, %77 : vector<16x256xf32>
    %c5 = arith.constant 5 : index
    %c0_60 = arith.constant 0 : index
    %c0_61 = arith.constant 0 : index
    %79 = vector.load %arg3[%c5, %c0_60, %c0_61] : memref<9x16x8xbf16, #tpu.memory_space<vmem>>, vector<1x16x8xbf16>
    %80 = vector.shape_cast %79 : vector<1x16x8xbf16> to vector<16x8xbf16>
    %81 = vector.extract_strided_slice %3 {offsets = [0, 18], sizes = [8, 256], strides = [1, 1]} : vector<8x291xbf16> to vector<8x256xbf16>
    %cst_62 = arith.constant dense<0.000000e+00> : vector<16x256xf32>
    %82 = tpu.matmul %80, %81, %cst_62 {dimension_numbers = #tpu.dot_dimension_numbers<[1], [0], [0], [1], [0, 0, 1, 1], [], []>} : vector<16x8xbf16>, vector<8x256xbf16>, vector<16x256xf32> -> vector<16x256xf32>
    %83 = arith.addf %78, %82 : vector<16x256xf32>
    %c5_63 = arith.constant 5 : index
    %c0_64 = arith.constant 0 : index
    %c0_65 = arith.constant 0 : index
    %84 = vector.load %arg4[%c5_63, %c0_64, %c0_65] : memref<9x16x16xbf16, #tpu.memory_space<vmem>>, vector<1x16x16xbf16>
    %85 = vector.shape_cast %84 : vector<1x16x16xbf16> to vector<16x16xbf16>
    %86 = vector.extract_strided_slice %5 {offsets = [0, 18], sizes = [16, 256], strides = [1, 1]} : vector<16x291xbf16> to vector<16x256xbf16>
    %cst_66 = arith.constant dense<0.000000e+00> : vector<16x256xf32>
    %87 = tpu.matmul %85, %86, %cst_66 {dimension_numbers = #tpu.dot_dimension_numbers<[1], [0], [0], [1], [0, 0, 1, 1], [], []>} : vector<16x16xbf16>, vector<16x256xbf16>, vector<16x256xf32> -> vector<16x256xf32>
    %88 = arith.addf %83, %87 : vector<16x256xf32>
    %c8 = arith.constant 8 : index
    %c0_67 = arith.constant 0 : index
    %c0_68 = arith.constant 0 : index
    %89 = vector.load %arg3[%c8, %c0_67, %c0_68] : memref<9x16x8xbf16, #tpu.memory_space<vmem>>, vector<1x16x8xbf16>
    %90 = vector.shape_cast %89 : vector<1x16x8xbf16> to vector<16x8xbf16>
    %91 = vector.extract_strided_slice %3 {offsets = [0, 34], sizes = [8, 256], strides = [1, 1]} : vector<8x291xbf16> to vector<8x256xbf16>
    %cst_69 = arith.constant dense<0.000000e+00> : vector<16x256xf32>
    %92 = tpu.matmul %90, %91, %cst_69 {dimension_numbers = #tpu.dot_dimension_numbers<[1], [0], [0], [1], [0, 0, 1, 1], [], []>} : vector<16x8xbf16>, vector<8x256xbf16>, vector<16x256xf32> -> vector<16x256xf32>
    %93 = arith.addf %88, %92 : vector<16x256xf32>
    %c8_70 = arith.constant 8 : index
    %c0_71 = arith.constant 0 : index
    %c0_72 = arith.constant 0 : index
    %94 = vector.load %arg4[%c8_70, %c0_71, %c0_72] : memref<9x16x16xbf16, #tpu.memory_space<vmem>>, vector<1x16x16xbf16>
    %95 = vector.shape_cast %94 : vector<1x16x16xbf16> to vector<16x16xbf16>
    %96 = vector.extract_strided_slice %5 {offsets = [0, 34], sizes = [16, 256], strides = [1, 1]} : vector<16x291xbf16> to vector<16x256xbf16>
    %cst_73 = arith.constant dense<0.000000e+00> : vector<16x256xf32>
    %97 = tpu.matmul %95, %96, %cst_73 {dimension_numbers = #tpu.dot_dimension_numbers<[1], [0], [0], [1], [0, 0, 1, 1], [], []>} : vector<16x16xbf16>, vector<16x256xbf16>, vector<16x256xf32> -> vector<16x256xf32>
    %98 = arith.addf %93, %97 : vector<16x256xf32>
    %99 = vector.broadcast %1 : vector<1x256xf32> to vector<16x256xf32>
    %100 = arith.mulf %98, %99 : vector<16x256xf32>
    %101 = arith.addf %69, %100 : vector<16x256xf32>
    %cst_74 = arith.constant 0.000000e+00 : f32
    %102 = vector.broadcast %cst_74 : f32 to vector<16x256xf32>
    %103 = arith.maximumf %101, %102 : vector<16x256xf32>
    %104 = arith.truncf %103 : vector<16x256xf32> to vector<16x256xbf16>
    %c0_75 = arith.constant 0 : index
    %c0_76 = arith.constant 0 : index
    %c0_77 = arith.constant 0 : index
    %105 = vector.load %arg8[%c0_75, %c0_76, %c0_77] : memref<1x16x256xbf16, #tpu.memory_space<vmem>>, vector<1x16x256xbf16>
    %106 = vector.shape_cast %105 : vector<1x16x256xbf16> to vector<16x256xbf16>
    %107 = vector.shape_cast %104 : vector<16x256xbf16> to vector<1x16x256xbf16>
    tpu.vector_store %arg8[%c0_75, %c0_76, %c0_77], %107 {strides = array<i32>} : memref<1x16x256xbf16, #tpu.memory_space<vmem>>, vector<1x16x256xbf16>,
    return
  }
  func.func @transform_0(%arg0: i32) -> (i32, i32) {
    %c0_i32 = arith.constant 0 : i32
    %c0_i32_0 = arith.constant 0 : i32
    %c0_i32_1 = arith.constant 0 : i32
    return %c0_i32, %c0_i32_0 : i32, i32
  }
  func.func @transform_1(%arg0: i32) -> (i32, i32) {
    %c0_i32 = arith.constant 0 : i32
    %c0_i32_0 = arith.constant 0 : i32
    %c0_i32_1 = arith.constant 0 : i32
    return %c0_i32, %c0_i32_0 : i32, i32
  }
  func.func @transform_2(%arg0: i32) -> (i32, i32, i32) {
    %c0_i32 = arith.constant 0 : i32
    %c0_i32_0 = arith.constant 0 : i32
    %c0_i32_1 = arith.constant 0 : i32
    %c0_i32_2 = arith.constant 0 : i32
    return %c0_i32, %c0_i32_0, %c0_i32_1 : i32, i32, i32
  }
  func.func @transform_3(%arg0: i32) -> (i32, i32, i32) {
    %c0_i32 = arith.constant 0 : i32
    %c0_i32_0 = arith.constant 0 : i32
    %c0_i32_1 = arith.constant 0 : i32
    %c0_i32_2 = arith.constant 0 : i32
    return %c0_i32, %c0_i32_0, %c0_i32_1 : i32, i32, i32
  }
  func.func @transform_4(%arg0: i32) -> (i32, i32) {
    %c0_i32 = arith.constant 0 : i32
    %c0_i32_0 = arith.constant 0 : i32
    %c0_i32_1 = arith.constant 0 : i32
    return %c0_i32, %c0_i32_0 : i32, i32
  }
  func.func @transform_5(%arg0: i32) -> (i32, i32, i32) {
    %c0_i32 = arith.constant 0 : i32
    %c0_i32_0 = arith.constant 0 : i32
    %c0_i32_1 = arith.constant 0 : i32
    return %arg0, %c0_i32, %c0_i32_0 : i32, i32, i32
  }
  func.func @transform_6(%arg0: i32) -> (i32, i32, i32) {
    %c0_i32 = arith.constant 0 : i32
    %c0_i32_0 = arith.constant 0 : i32
    %c0_i32_1 = arith.constant 0 : i32
    return %arg0, %c0_i32, %c0_i32_0 : i32, i32, i32
  }
  func.func @transform_7(%arg0: i32) -> (i32, i32, i32) {
    %c0_i32 = arith.constant 0 : i32
    %c0_i32_0 = arith.constant 0 : i32
    %c0_i32_1 = arith.constant 0 : i32
    return %arg0, %c0_i32, %c0_i32_0 : i32, i32, i32
  }
}

module attributes {stable_mosaic.version = 11 : i64} {
  func.func @_conv3x3_kernel(%arg0: i32, %arg1: memref<1x256xf32, #tpu.memory_space<vmem>>, %arg2: memref<1x256xf32, #tpu.memory_space<vmem>>, %arg3: memref<9x16x16xbf16, #tpu.memory_space<vmem>>, %arg4: memref<16x1xf32, #tpu.memory_space<vmem>>, %arg5: memref<1x16x291xbf16, #tpu.memory_space<vmem>>, %arg6: memref<1x16x256xbf16, #tpu.memory_space<vmem>>) attributes {dimension_semantics = [#tpu.dimension_semantics<parallel>], iteration_bounds = array<i64: 2>, scalar_prefetch = 0 : i64, scratch_operands = 0 : i64, tpu.core_type = #tpu.core_type<tc>, window_params = [{pipeline_mode = #tpu.pipeline_mode<synchronous>, transform_indices = @transform_0, window_bounds = array<i64: 1, 256>}, {pipeline_mode = #tpu.pipeline_mode<synchronous>, transform_indices = @transform_1, window_bounds = array<i64: 1, 256>}, {pipeline_mode = #tpu.pipeline_mode<synchronous>, transform_indices = @transform_2, window_bounds = array<i64: 9, 16, 16>}, {pipeline_mode = #tpu.pipeline_mode<synchronous>, transform_indices = @transform_3, window_bounds = array<i64: 16, 1>}, {transform_indices = @transform_4, window_bounds = array<i64: 1, 16, 291>}, {transform_indices = @transform_5, window_bounds = array<i64: 1, 16, 256>}]} {
    %c0 = arith.constant 0 : index
    %c0_0 = arith.constant 0 : index
    %0 = vector.load %arg1[%c0, %c0_0] : memref<1x256xf32, #tpu.memory_space<vmem>>, vector<1x256xf32>
    %c0_1 = arith.constant 0 : index
    %c0_2 = arith.constant 0 : index
    %1 = vector.load %arg2[%c0_1, %c0_2] : memref<1x256xf32, #tpu.memory_space<vmem>>, vector<1x256xf32>
    %c0_3 = arith.constant 0 : index
    %c0_4 = arith.constant 0 : index
    %c0_5 = arith.constant 0 : index
    %2 = vector.load %arg5[%c0_3, %c0_4, %c0_5] : memref<1x16x291xbf16, #tpu.memory_space<vmem>>, vector<1x16x291xbf16>
    %3 = vector.shape_cast %2 : vector<1x16x291xbf16> to vector<16x291xbf16>
    %c1 = arith.constant 1 : index
    %c0_6 = arith.constant 0 : index
    %c0_7 = arith.constant 0 : index
    %4 = vector.load %arg3[%c1, %c0_6, %c0_7] : memref<9x16x16xbf16, #tpu.memory_space<vmem>>, vector<1x16x16xbf16>
    %5 = vector.shape_cast %4 : vector<1x16x16xbf16> to vector<16x16xbf16>
    %6 = vector.extract_strided_slice %3 {offsets = [0, 1], sizes = [16, 256], strides = [1, 1]} : vector<16x291xbf16> to vector<16x256xbf16>
    %cst = arith.constant dense<0.000000e+00> : vector<16x256xf32>
    %7 = tpu.matmul %5, %6, %cst {dimension_numbers = #tpu.dot_dimension_numbers<[1], [0], [0], [1], [0, 0, 1, 1], [], []>} : vector<16x16xbf16>, vector<16x256xbf16>, vector<16x256xf32> -> vector<16x256xf32>
    %c4 = arith.constant 4 : index
    %c0_8 = arith.constant 0 : index
    %c0_9 = arith.constant 0 : index
    %8 = vector.load %arg3[%c4, %c0_8, %c0_9] : memref<9x16x16xbf16, #tpu.memory_space<vmem>>, vector<1x16x16xbf16>
    %9 = vector.shape_cast %8 : vector<1x16x16xbf16> to vector<16x16xbf16>
    %10 = vector.extract_strided_slice %3 {offsets = [0, 17], sizes = [16, 256], strides = [1, 1]} : vector<16x291xbf16> to vector<16x256xbf16>
    %cst_10 = arith.constant dense<0.000000e+00> : vector<16x256xf32>
    %11 = tpu.matmul %9, %10, %cst_10 {dimension_numbers = #tpu.dot_dimension_numbers<[1], [0], [0], [1], [0, 0, 1, 1], [], []>} : vector<16x16xbf16>, vector<16x256xbf16>, vector<16x256xf32> -> vector<16x256xf32>
    %12 = arith.addf %7, %11 : vector<16x256xf32>
    %c7 = arith.constant 7 : index
    %c0_11 = arith.constant 0 : index
    %c0_12 = arith.constant 0 : index
    %13 = vector.load %arg3[%c7, %c0_11, %c0_12] : memref<9x16x16xbf16, #tpu.memory_space<vmem>>, vector<1x16x16xbf16>
    %14 = vector.shape_cast %13 : vector<1x16x16xbf16> to vector<16x16xbf16>
    %15 = vector.extract_strided_slice %3 {offsets = [0, 33], sizes = [16, 256], strides = [1, 1]} : vector<16x291xbf16> to vector<16x256xbf16>
    %cst_13 = arith.constant dense<0.000000e+00> : vector<16x256xf32>
    %16 = tpu.matmul %14, %15, %cst_13 {dimension_numbers = #tpu.dot_dimension_numbers<[1], [0], [0], [1], [0, 0, 1, 1], [], []>} : vector<16x16xbf16>, vector<16x256xbf16>, vector<16x256xf32> -> vector<16x256xf32>
    %17 = arith.addf %12, %16 : vector<16x256xf32>
    %c0_14 = arith.constant 0 : index
    %c0_15 = arith.constant 0 : index
    %18 = vector.load %arg4[%c0_14, %c0_15] : memref<16x1xf32, #tpu.memory_space<vmem>>, vector<16x1xf32>
    %19 = vector.broadcast %18 : vector<16x1xf32> to vector<16x256xf32>
    %20 = arith.addf %17, %19 : vector<16x256xf32>
    %c0_16 = arith.constant 0 : index
    %c0_17 = arith.constant 0 : index
    %c0_18 = arith.constant 0 : index
    %21 = vector.load %arg3[%c0_16, %c0_17, %c0_18] : memref<9x16x16xbf16, #tpu.memory_space<vmem>>, vector<1x16x16xbf16>
    %22 = vector.shape_cast %21 : vector<1x16x16xbf16> to vector<16x16xbf16>
    %23 = vector.extract_strided_slice %3 {offsets = [0, 0], sizes = [16, 256], strides = [1, 1]} : vector<16x291xbf16> to vector<16x256xbf16>
    %cst_19 = arith.constant dense<0.000000e+00> : vector<16x256xf32>
    %24 = tpu.matmul %22, %23, %cst_19 {dimension_numbers = #tpu.dot_dimension_numbers<[1], [0], [0], [1], [0, 0, 1, 1], [], []>} : vector<16x16xbf16>, vector<16x256xbf16>, vector<16x256xf32> -> vector<16x256xf32>
    %c3 = arith.constant 3 : index
    %c0_20 = arith.constant 0 : index
    %c0_21 = arith.constant 0 : index
    %25 = vector.load %arg3[%c3, %c0_20, %c0_21] : memref<9x16x16xbf16, #tpu.memory_space<vmem>>, vector<1x16x16xbf16>
    %26 = vector.shape_cast %25 : vector<1x16x16xbf16> to vector<16x16xbf16>
    %27 = vector.extract_strided_slice %3 {offsets = [0, 16], sizes = [16, 256], strides = [1, 1]} : vector<16x291xbf16> to vector<16x256xbf16>
    %cst_22 = arith.constant dense<0.000000e+00> : vector<16x256xf32>
    %28 = tpu.matmul %26, %27, %cst_22 {dimension_numbers = #tpu.dot_dimension_numbers<[1], [0], [0], [1], [0, 0, 1, 1], [], []>} : vector<16x16xbf16>, vector<16x256xbf16>, vector<16x256xf32> -> vector<16x256xf32>
    %29 = arith.addf %24, %28 : vector<16x256xf32>
    %c6 = arith.constant 6 : index
    %c0_23 = arith.constant 0 : index
    %c0_24 = arith.constant 0 : index
    %30 = vector.load %arg3[%c6, %c0_23, %c0_24] : memref<9x16x16xbf16, #tpu.memory_space<vmem>>, vector<1x16x16xbf16>
    %31 = vector.shape_cast %30 : vector<1x16x16xbf16> to vector<16x16xbf16>
    %32 = vector.extract_strided_slice %3 {offsets = [0, 32], sizes = [16, 256], strides = [1, 1]} : vector<16x291xbf16> to vector<16x256xbf16>
    %cst_25 = arith.constant dense<0.000000e+00> : vector<16x256xf32>
    %33 = tpu.matmul %31, %32, %cst_25 {dimension_numbers = #tpu.dot_dimension_numbers<[1], [0], [0], [1], [0, 0, 1, 1], [], []>} : vector<16x16xbf16>, vector<16x256xbf16>, vector<16x256xf32> -> vector<16x256xf32>
    %34 = arith.addf %29, %33 : vector<16x256xf32>
    %35 = vector.broadcast %0 : vector<1x256xf32> to vector<16x256xf32>
    %36 = arith.mulf %34, %35 : vector<16x256xf32>
    %37 = arith.addf %20, %36 : vector<16x256xf32>
    %c2 = arith.constant 2 : index
    %c0_26 = arith.constant 0 : index
    %c0_27 = arith.constant 0 : index
    %38 = vector.load %arg3[%c2, %c0_26, %c0_27] : memref<9x16x16xbf16, #tpu.memory_space<vmem>>, vector<1x16x16xbf16>
    %39 = vector.shape_cast %38 : vector<1x16x16xbf16> to vector<16x16xbf16>
    %40 = vector.extract_strided_slice %3 {offsets = [0, 2], sizes = [16, 256], strides = [1, 1]} : vector<16x291xbf16> to vector<16x256xbf16>
    %cst_28 = arith.constant dense<0.000000e+00> : vector<16x256xf32>
    %41 = tpu.matmul %39, %40, %cst_28 {dimension_numbers = #tpu.dot_dimension_numbers<[1], [0], [0], [1], [0, 0, 1, 1], [], []>} : vector<16x16xbf16>, vector<16x256xbf16>, vector<16x256xf32> -> vector<16x256xf32>
    %c5 = arith.constant 5 : index
    %c0_29 = arith.constant 0 : index
    %c0_30 = arith.constant 0 : index
    %42 = vector.load %arg3[%c5, %c0_29, %c0_30] : memref<9x16x16xbf16, #tpu.memory_space<vmem>>, vector<1x16x16xbf16>
    %43 = vector.shape_cast %42 : vector<1x16x16xbf16> to vector<16x16xbf16>
    %44 = vector.extract_strided_slice %3 {offsets = [0, 18], sizes = [16, 256], strides = [1, 1]} : vector<16x291xbf16> to vector<16x256xbf16>
    %cst_31 = arith.constant dense<0.000000e+00> : vector<16x256xf32>
    %45 = tpu.matmul %43, %44, %cst_31 {dimension_numbers = #tpu.dot_dimension_numbers<[1], [0], [0], [1], [0, 0, 1, 1], [], []>} : vector<16x16xbf16>, vector<16x256xbf16>, vector<16x256xf32> -> vector<16x256xf32>
    %46 = arith.addf %41, %45 : vector<16x256xf32>
    %c8 = arith.constant 8 : index
    %c0_32 = arith.constant 0 : index
    %c0_33 = arith.constant 0 : index
    %47 = vector.load %arg3[%c8, %c0_32, %c0_33] : memref<9x16x16xbf16, #tpu.memory_space<vmem>>, vector<1x16x16xbf16>
    %48 = vector.shape_cast %47 : vector<1x16x16xbf16> to vector<16x16xbf16>
    %49 = vector.extract_strided_slice %3 {offsets = [0, 34], sizes = [16, 256], strides = [1, 1]} : vector<16x291xbf16> to vector<16x256xbf16>
    %cst_34 = arith.constant dense<0.000000e+00> : vector<16x256xf32>
    %50 = tpu.matmul %48, %49, %cst_34 {dimension_numbers = #tpu.dot_dimension_numbers<[1], [0], [0], [1], [0, 0, 1, 1], [], []>} : vector<16x16xbf16>, vector<16x256xbf16>, vector<16x256xf32> -> vector<16x256xf32>
    %51 = arith.addf %46, %50 : vector<16x256xf32>
    %52 = vector.broadcast %1 : vector<1x256xf32> to vector<16x256xf32>
    %53 = arith.mulf %51, %52 : vector<16x256xf32>
    %54 = arith.addf %37, %53 : vector<16x256xf32>
    %cst_35 = arith.constant 0.000000e+00 : f32
    %55 = vector.broadcast %cst_35 : f32 to vector<16x256xf32>
    %56 = arith.maximumf %54, %55 : vector<16x256xf32>
    %57 = arith.truncf %56 : vector<16x256xf32> to vector<16x256xbf16>
    %c0_36 = arith.constant 0 : index
    %c0_37 = arith.constant 0 : index
    %c0_38 = arith.constant 0 : index
    %58 = vector.load %arg6[%c0_36, %c0_37, %c0_38] : memref<1x16x256xbf16, #tpu.memory_space<vmem>>, vector<1x16x256xbf16>
    %59 = vector.shape_cast %58 : vector<1x16x256xbf16> to vector<16x256xbf16>
    %60 = vector.shape_cast %57 : vector<16x256xbf16> to vector<1x16x256xbf16>
    tpu.vector_store %arg6[%c0_36, %c0_37, %c0_38], %60 {strides = array<i32>} : memref<1x16x256xbf16, #tpu.memory_space<vmem>>, vector<1x16x256xbf16>,
    return
  }
  func.func @transform_0(%arg0: i32) -> (i32, i32) {
    %c0_i32 = arith.constant 0 : i32
    %c0_i32_0 = arith.constant 0 : i32
    %c0_i32_1 = arith.constant 0 : i32
    return %c0_i32, %c0_i32_0 : i32, i32
  }
  func.func @transform_1(%arg0: i32) -> (i32, i32) {
    %c0_i32 = arith.constant 0 : i32
    %c0_i32_0 = arith.constant 0 : i32
    %c0_i32_1 = arith.constant 0 : i32
    return %c0_i32, %c0_i32_0 : i32, i32
  }
  func.func @transform_2(%arg0: i32) -> (i32, i32, i32) {
    %c0_i32 = arith.constant 0 : i32
    %c0_i32_0 = arith.constant 0 : i32
    %c0_i32_1 = arith.constant 0 : i32
    %c0_i32_2 = arith.constant 0 : i32
    return %c0_i32, %c0_i32_0, %c0_i32_1 : i32, i32, i32
  }
  func.func @transform_3(%arg0: i32) -> (i32, i32) {
    %c0_i32 = arith.constant 0 : i32
    %c0_i32_0 = arith.constant 0 : i32
    %c0_i32_1 = arith.constant 0 : i32
    return %c0_i32, %c0_i32_0 : i32, i32
  }
  func.func @transform_4(%arg0: i32) -> (i32, i32, i32) {
    %c0_i32 = arith.constant 0 : i32
    %c0_i32_0 = arith.constant 0 : i32
    %c0_i32_1 = arith.constant 0 : i32
    return %arg0, %c0_i32, %c0_i32_0 : i32, i32, i32
  }
  func.func @transform_5(%arg0: i32) -> (i32, i32, i32) {
    %c0_i32 = arith.constant 0 : i32
    %c0_i32_0 = arith.constant 0 : i32
    %c0_i32_1 = arith.constant 0 : i32
    return %arg0, %c0_i32, %c0_i32_0 : i32, i32, i32
  }
}

module attributes {stable_mosaic.version = 11 : i64} {
  func.func @_mm_lhs_kernel(%arg0: i32, %arg1: i32, %arg2: memref<8x16xbf16, #tpu.memory_space<vmem>>, %arg3: memref<8x1xf32, #tpu.memory_space<vmem>>, %arg4: memref<1x16x256xbf16, #tpu.memory_space<vmem>>, %arg5: memref<1x8x256xf32, #tpu.memory_space<vmem>>) attributes {dimension_semantics = [#tpu.dimension_semantics<parallel>, #tpu.dimension_semantics<parallel>], iteration_bounds = array<i64: 2, 1>, scalar_prefetch = 0 : i64, scratch_operands = 0 : i64, tpu.core_type = #tpu.core_type<tc>, window_params = [{pipeline_mode = #tpu.pipeline_mode<synchronous>, transform_indices = @transform_0, window_bounds = array<i64: 8, 16>}, {pipeline_mode = #tpu.pipeline_mode<synchronous>, transform_indices = @transform_1, window_bounds = array<i64: 8, 1>}, {transform_indices = @transform_2, window_bounds = array<i64: 1, 16, 256>}, {transform_indices = @transform_3, window_bounds = array<i64: 1, 8, 256>}]} {
    %c0 = arith.constant 0 : index
    %c0_0 = arith.constant 0 : index
    %0 = vector.load %arg3[%c0, %c0_0] : memref<8x1xf32, #tpu.memory_space<vmem>>, vector<8x1xf32>
    %c0_1 = arith.constant 0 : index
    %c0_2 = arith.constant 0 : index
    %1 = vector.load %arg2[%c0_1, %c0_2] : memref<8x16xbf16, #tpu.memory_space<vmem>>, vector<8x16xbf16>
    %c0_3 = arith.constant 0 : index
    %c0_4 = arith.constant 0 : index
    %c0_5 = arith.constant 0 : index
    %2 = vector.load %arg4[%c0_3, %c0_4, %c0_5] : memref<1x16x256xbf16, #tpu.memory_space<vmem>>, vector<1x16x256xbf16>
    %3 = vector.shape_cast %2 : vector<1x16x256xbf16> to vector<16x256xbf16>
    %cst = arith.constant dense<0.000000e+00> : vector<8x256xf32>
    %4 = tpu.matmul %1, %3, %cst {dimension_numbers = #tpu.dot_dimension_numbers<[1], [0], [0], [1], [0, 0, 1, 1], [], []>} : vector<8x16xbf16>, vector<16x256xbf16>, vector<8x256xf32> -> vector<8x256xf32>
    %5 = vector.broadcast %0 : vector<8x1xf32> to vector<8x256xf32>
    %6 = arith.addf %5, %4 : vector<8x256xf32>
    %c0_6 = arith.constant 0 : index
    %c0_7 = arith.constant 0 : index
    %c0_8 = arith.constant 0 : index
    %7 = vector.load %arg5[%c0_6, %c0_7, %c0_8] : memref<1x8x256xf32, #tpu.memory_space<vmem>>, vector<1x8x256xf32>
    %8 = vector.shape_cast %7 : vector<1x8x256xf32> to vector<8x256xf32>
    %9 = vector.shape_cast %6 : vector<8x256xf32> to vector<1x8x256xf32>
    tpu.vector_store %arg5[%c0_6, %c0_7, %c0_8], %9 {strides = array<i32>} : memref<1x8x256xf32, #tpu.memory_space<vmem>>, vector<1x8x256xf32>,
    return
  }
  func.func @transform_0(%arg0: i32, %arg1: i32) -> (i32, i32) {
    %c0_i32 = arith.constant 0 : i32
    %c0_i32_0 = arith.constant 0 : i32
    %c0_i32_1 = arith.constant 0 : i32
    return %c0_i32, %c0_i32_0 : i32, i32
  }
  func.func @transform_1(%arg0: i32, %arg1: i32) -> (i32, i32) {
    %c0_i32 = arith.constant 0 : i32
    %c0_i32_0 = arith.constant 0 : i32
    %c0_i32_1 = arith.constant 0 : i32
    return %c0_i32, %c0_i32_0 : i32, i32
  }
  func.func @transform_2(%arg0: i32, %arg1: i32) -> (i32, i32, i32) {
    %c0_i32 = arith.constant 0 : i32
    %c0_i32_0 = arith.constant 0 : i32
    return %arg0, %c0_i32, %arg1 : i32, i32, i32
  }
  func.func @transform_3(%arg0: i32, %arg1: i32) -> (i32, i32, i32) {
    %c0_i32 = arith.constant 0 : i32
    %c0_i32_0 = arith.constant 0 : i32
    return %arg0, %c0_i32, %arg1 : i32, i32, i32
  }
}

</mosaic_0001>

<bundles_post_ra>
// kernel: dualgcn_head_forward.13
= control target key start
LH: loop header
LB: loop body
LE: loop exit
PB: predicated region body
PF: predicated region fallthrough
CT: control target
= control target key end

     0   :  { %s521_s12 = smov 0   ;;  %s564_s0 = inlined_call_operand.vmem [shape: f32[16,9], index: 0, kind: input, shape index: {}]   ;;  %s565_s1 = inlined_call_operand.vmem [shape: f32[16,1], index: 1, kind: input, shape index: {}]   ;;  %s566_s2 = inlined_call_operand.vmem [shape: bf16[2,4,16,91], index: 2, kind: input, shape index: {}]   ;;  %s567_s3 = inlined_call_operand.vmem [shape: bf16[2,16,81], index: 3, kind: output, shape index: {}]  }
   0x1 LB: > { %s411_s13 = sadd.s32 4294967295, %s487_s12   ;;  %p415_p0 = scmp.ge.s32.totalorder %s487_s12, 1  ;;  %s487_s12 = sphi %s521_s12, %s13_s12  }
   0x2   : > { %p137_p1 = scmp.lt.s32.totalorder %s487_s12, 3 }
   0x4   : > { %p138_p2 = pnand %p415_p0, %p137_p1 }
   0x5   : > { %p161_p3 = scmp.lt.s32.totalorder (!%p138_p2), %s411_s13, 1  ;;  %s498_s26 = smov (!%p138_p2), 119  }
   0x6   : > { %141 = sbr.rel (%p138_p2) target bundleno = 294 (0x126), region = 32  ;;  %s499_s27 = smov (!%p138_p2), 127  }
   0x7   : > { %s500_s28 = smov (!%p138_p2), 118  }
   0xb   : > { %v181_v0 = vld [vmem:[%s565_s1] sm:$0xff]  ;;  %v489_v2 = vmov 0   ;;  %v490_v3 = vmov 1   ;;  %v182_v4 = vld [vmem:[%s565_s1 + $0x8] sm:$0xff]  ;;  %v491_v6 = vmov 2   ;;  %v492_v7 = vmov 3  }
   0xc   : > { %v179_v1 = vld [vmem:[%s564_s0] sm:$0xff]  ;;  %464 = vset.pattern.permute.xlu1 %v489_v2  ;;  %463 = vset.pattern.permute.xlu0 %v489_v2  ;;  %v180_v5 = vld [vmem:[%s564_s0 + $0x8] sm:$0xff]  ;;  %v493_v8 = vmov 5   ;;  %v494_v9 = vmov 6   ;;  %v495_v10 = vmov 7   ;;  %v496_v11 = vmov 8  }
   0xd   : > { %199 = vperm.xlu1 %464, %v181_v0   ;;  %187 = vperm.xlu0 %463, %v179_v1   ;;  %s569_s13 = smov (!%p161_p3, %s411_s13), 1  ;;  %v497_v16 = vmov 4   ;;  %vm353_vm0 = vcmask 658432  }
   0xe   : > { %465 = vset.pattern.permute.xlu2 %v490_v3  ;;  %s422_s22 = sshll.u32 %s569_s13, 5  ;;  %s423_s29 = sshll.u32 %s569_s13, 3 }
   0xf   : > { %212 = vperm.xlu2 %465, %v179_v1   ;;  %s551_s25 = scalar_lea.vmem %s566_s2, %s422_s22  ;;  %s170_s5 = scalar_lea.vmem %s567_s3, %s423_s29 }
  0x10   : > { %v440_v12 = vld [vmem:[%s551_s25 + $0x8] sm:$0xff]   ;;  %v441_v20 = vld [vmem:[%s551_s25 + $0x10] sm:$0xff]   ;;  %v425_v22 = vld [vmem:[%s551_s25] sm:$0xff]  }
  0x11   : > { %v430_v13 = vunpack.c.l.bf16 %v440_v12  ;;  %v431_v17 = vunpack.c.h.bf16 %v440_v12  ;;  %v434_v21 = vunpack.c.l.bf16 %v441_v20  ;;  %v426_v25 = vunpack.c.l.bf16 %v425_v22  ;;  %v442_v3 = vld [vmem:[%s551_s25 + $0x18] sm:$0xff]  }
  0x12   : > { %v427_v31 = vunpack.c.h.bf16 %v425_v22  ;;  %v435_v45 = vunpack.c.h.bf16 %v441_v20 }
  0x15   : > { %204 = vperm.xlu1 %464, %v182_v4   ;;  %192 = vperm.xlu0 %463, %v180_v5  }
  0x17   : > { %216 = vperm.xlu2 %465, %v180_v5  }
  0x1d   : > { %467 = vset.pattern.permute.xlu1 %v491_v6  ;;  %466 = vset.pattern.permute.xlu0 %v491_v6 }
  0x1e   : > { %228 = vperm.xlu1 %467, %v180_v5   ;;  %224 = vperm.xlu0 %466, %v179_v1  }
  0x1f   : > { %468 = vset.pattern.permute.xlu2 %v492_v7 }
  0x20   : > { %246 = vperm.xlu2 %468, %v179_v1  }
  0x26   : > { %469 = vset.pattern.permute.xlu0 %v493_v8  ;;  %470 = vset.pattern.permute.xlu1 %v493_v8 }
  0x27   : > { %272 = vperm.xlu0 %469, %v179_v1   ;;  %276 = vperm.xlu1 %470, %v180_v5  }
  0x28   : > { %471 = vset.pattern.permute.xlu2 %v494_v9 }
  0x29   : > { %292 = vperm.xlu2 %471, %v179_v1  }
  0x2f   : > { %474 = vset.pattern.permute.xlu0 %v495_v10  ;;  %472 = vset.pattern.permute.xlu1 %v494_v9 }
  0x30   : > { %316 = vperm.xlu0 %474, %v180_v5   ;;  %296 = vperm.xlu1 %472, %v180_v5  }
  0x31   : > { %473 = vset.pattern.permute.xlu2 %v495_v10 }
  0x32   : > { %312 = vperm.xlu2 %473, %v179_v1  }
  0x38   : > { %475 = vset.pattern.permute.xlu1 %v496_v11  ;;  %479 = vset.pattern.permute.xlu0 %v497_v16 }
  0x39   : > { %332 = vperm.xlu1 %475, %v179_v1   ;;  %264 = vperm.xlu0 %479, %v180_v5  }
  0x3a   : > { %476 = vset.pattern.permute.xlu2 %v496_v11 }
  0x3b   : > { %336 = vperm.xlu2 %476, %v180_v5  }
  0x41   : > { %477 = vset.pattern.permute.xlu1 %v492_v7  ;;  %480 = vset.pattern.permute.xlu0 %v496_v11  ;;  %v439_v7 = vunpack.c.h.bf16 %v442_v3 }
  0x42   : > { %250 = vperm.xlu1 %477, %v180_v5   ;;  %v438_v5 = vunpack.c.l.bf16 %v442_v3 }
  0x43   : > { %478 = vset.pattern.permute.xlu2 %v497_v16 }
  0x44   : > { %260 = vperm.xlu2 %478, %v179_v1  }
  0x69   : > { %v213_v14 = vpop.permute.xlu2 %212 }
  0x6a   : > { %v219_v15 = vmul.f32 %v430_v13, %v213_v14 }
  0x71   : > { %v217_v18 = vpop.permute.xlu2 %216 }
  0x72   : > { %v220_v19 = vmul.f32 %v431_v17, %v217_v18 }
  0x7a   : > { %v247_v23 = vpop.permute.xlu2 %246 }
  0x7b   : > { %v253_v24 = vmul.f32 %v434_v21, %v247_v23 }
  0x7f   : > { %v200_v26 = vpop.permute.xlu1 %199  ;;  %v188_v27 = vpop.permute.xlu0 %187 }
  0x80   : > { %v195_v28 = vmul.f32 %v426_v25, %v188_v27 }
  0x82   : > { %v207_v29 = vadd.f32 %v200_v26, %v195_v28 }
  0x83   : > { %v293_v30 = vpop.permute.xlu2 %292 }
  0x84   : > { %v221_v32 = vadd.f32 %v219_v15, %v207_v29  ;;  %v299_v51 = vmul.f32 %v426_v25, %v293_v30 }
  0x87   : > { %v205_v33 = vpop.permute.xlu1 %204  ;;  %v193_v34 = vpop.permute.xlu0 %192 }
  0x88   : > { %v196_v35 = vmul.f32 %v427_v31, %v193_v34 }
  0x8a   : > { %v208_v36 = vadd.f32 %v205_v33, %v196_v35 }
  0x8c   : > { %v313_v37 = vpop.permute.xlu2 %312  ;;  %v222_v38 = vadd.f32 %v220_v19, %v208_v36 }
  0x8d   : > { %v319_v39 = vmul.f32 %v430_v13, %v313_v37 }
  0x8f   : > { %323 = vrot.lane.b32.xlu0 %v319_v39, %s498_s26 }
  0x90   : > { %v229_v40 = vpop.permute.xlu1 %228  ;;  %v225_v41 = vpop.permute.xlu0 %224 }
  0x91   : > { %v232_v42 = vmul.f32 %v427_v31, %v229_v40  ;;  %v231_v43 = vmul.f32 %v426_v25, %v225_v41 }
  0x93   : > { %237 = vrot.lane.b32.xlu1 %v232_v42, %s499_s27  ;;  %235 = vrot.lane.b32.xlu2 %v231_v43, %s499_s27 }
  0x95   : > { %v337_v44 = vpop.permute.xlu2 %336 }
  0x96   : > { %v340_v46 = vmul.f32 %v427_v31, %v337_v44 }
  0x98   : > { %345 = vrot.lane.b32.xlu0 %v340_v46, %s500_s28 }
  0x99   : > { %v273_v47 = vpop.permute.xlu0 %272  ;;  %v277_v48 = vpop.permute.xlu1 %276 }
  0x9a   : > { %v279_v49 = vmul.f32 %v434_v21, %v273_v47  ;;  %v280_v50 = vmul.f32 %v435_v45, %v277_v48 }
  0x9c   : > { %283 = vrot.lane.b32.xlu1 %v279_v49, %s499_s27  ;;  %285 = vrot.lane.b32.xlu2 %v280_v50, %s499_s27 }
  0x9e   : > { %v261_v58 = vpop.permute.xlu2 %260 }
  0x9f   : > { %v267_v9 = vmul.f32 %v438_v5, %v261_v58 }
  0xa2   : > { %v297_v52 = vpop.permute.xlu1 %296  ;;  %v317_v54 = vpop.permute.xlu0 %316 }
  0xa3   : > { %v300_v53 = vmul.f32 %v427_v31, %v297_v52  ;;  %v320_v55 = vmul.f32 %v431_v17, %v317_v54 }
  0xa4   : > { %303 = vrot.lane.b32.xlu1 %v299_v51, %s498_s26 }
  0xa5   : > { %305 = vrot.lane.b32.xlu2 %v300_v53, %s498_s26 }
  0xab   : > { %v333_v56 = vpop.permute.xlu1 %332  ;;  %v265_v6 = vpop.permute.xlu0 %264 }
  0xac   : > { %325 = vrot.lane.b32.xlu1 %v320_v55, %s498_s26  ;;  %v339_v57 = vmul.f32 %v426_v25, %v333_v56  ;;  %v268_v11 = vmul.f32 %v439_v7, %v265_v6 }
  0xae   : > { %343 = vrot.lane.b32.xlu2 %v339_v57, %s500_s28 }
  0xb4   : > { %v251_v62 = vpop.permute.xlu1 %250 }
  0xb5   : > { %v254_v0 = vmul.f32 %v435_v45, %v251_v62 }
  0xed   : > { %v236_v59 = vpop.permute.xlu2 %235 }
  0xee   : > { %v241_v60 = vadd.f32 %v236_v59, %v221_v32 }
  0xf0   : > { %v255_v61 = vadd.f32 %v253_v24, %v241_v60 }
  0xf2   : > { %v269_v12 = vadd.f32 %v267_v9, %v255_v61 }
  0xf6   : > { %v286_v2 = vpop.permute.xlu2 %285 }
  0xff   : > { %v306_v10 = vpop.permute.xlu2 %305 }
 0x101   : > { %v324_v13 = vpop.permute.xlu0 %323 }
 0x105   : > { %v238_v63 = vpop.permute.xlu1 %237 }
 0x106   : > { %v242_v1 = vadd.f32 %v238_v63, %v222_v38 }
 0x108   : > { %v256_v4 = vadd.f32 %v254_v0, %v242_v1  ;;  %v344_v18 = vpop.permute.xlu2 %343 }
 0x10a   : > { %v270_v14 = vadd.f32 %v268_v11, %v256_v4  ;;  %v346_v25 = vpop.permute.xlu0 %345 }
 0x10c   : > { %v290_v19 = vadd.f32 %v286_v2, %v270_v14 }
 0x10e   : > { %v284_v8 = vpop.permute.xlu1 %283  ;;  %v310_v22 = vadd.f32 %v306_v10, %v290_v19 }
 0x10f   : > { %v289_v15 = vadd.f32 %v284_v8, %v269_v12 }
 0x116   : > { %v304_v16 = vpop.permute.xlu1 %303 }
 0x117   : > { %v309_v17 = vadd.f32 %v304_v16, %v289_v15 }
 0x119   : > { %v329_v20 = vadd.f32 %v324_v13, %v309_v17 }
 0x11b   : > { %v349_v21 = vadd.f32 %v344_v18, %v329_v20 }
 0x11d   : > { %v351_v23 = vpack.c.bf16 %v349_v21, %v349_v21 }
 0x11e   : > { %v326_v24 = vpop.permute.xlu1 %325 }
 0x11f   : > { %354 = vst.msk [vmem:[%s170_s5] sm:$0xf] %vm353_vm0, %v351_v23  ;;  %v330_v26 = vadd.f32 %v326_v24, %v310_v22 }
 0x121   : > { %v350_v27 = vadd.f32 %v346_v25, %v330_v26 }
 0x123   : > { %v352_v28 = vpack.c.bf16 %v350_v27, %v350_v27 }
 0x125   : > { %355 = vst.msk [vmem:[%s170_s5 + $0x4] sm:$0xf] %vm353_vm0, %v352_v28 }
 0x126 PF: > { %s13_s12 = sadd.s32 1, %s487_s12  }
 0x127   : > { %p10_p4 = scmp.ge.s32.totalorder %s13_s12, 4  }
 0x129   :  { %12 = sbr.rel (!%p10_p4) target bundleno = 1 (0x1), region = 62 }

// kernel: dualgcn_head_forward.12
= control target key start
LH: loop header
LB: loop body
LE: loop exit
PB: predicated region body
PF: predicated region fallthrough
CT: control target
= control target key end

     0   :  { %s990_s18 = smov 0   ;;  %s1110_s0 = inlined_call_operand.vmem [shape: f32[1,256], index: 0, kind: input, shape index: {}]   ;;  %s1111_s1 = inlined_call_operand.vmem [shape: f32[1,256], index: 1, kind: input, shape index: {}]   ;;  %s1112_s2 = inlined_call_operand.vmem [shape: bf16[9,16,8], index: 2, kind: input, shape index: {}]   ;;  %s1113_s3 = inlined_call_operand.vmem [shape: f32[16,1], index: 3, kind: input, shape index: {}]   ;;  %s1114_s4 = inlined_call_operand.vmem [shape: bf16[2,8,291], index: 4, kind: input, shape index: {}]   ;;  %s1115_s5 = inlined_call_operand.vmem [shape: bf16[2,16,256], index: 5, kind: output, shape index: {}]  }
   0x1 LB: > { %s833_s19 = sadd.s32 4294967295, %s949_s18   ;;  %p837_p0 = scmp.ge.s32.totalorder %s949_s18, 1  ;;  %s949_s18 = sphi %s990_s18, %s15_s18  }
   0x2   : > { %p187_p1 = scmp.lt.s32.totalorder %s949_s18, 3 }
   0x4   : > { %p188_p2 = pnand %p837_p0, %p187_p1 }
   0x5   : > { %p215_p3 = scmp.lt.s32.totalorder (!%p188_p2), %s833_s19, 1  ;;  %s951_s24 = smov (!%p188_p2), 111  }
   0x6   : > { %191 = sbr.rel (%p188_p2) target bundleno = 357 (0x165), region = 40  ;;  %s952_s25 = smov (!%p188_p2), 127  }
   0x7   : > { %s953_s26 = smov (!%p188_p2), 95   ;;  %s954_s27 = smov (!%p188_p2), 112  }
   0x8   : > { %s955_s28 = smov (!%p188_p2), 96   ;;  %s956_s29 = smov (!%p188_p2), 110  }
   0x9   : > { %s957_s30 = smov (!%p188_p2), 126   ;;  %s958_s6 = smov (!%p188_p2), 94  }
   0xb   : > { %s1117_s19 = smov (!%p215_p3, %s833_s19), 1  ;;  %vm308_vm0 = vcmask 1039360   ;;  %vm262_vm1 = vcmask 1043456   ;;  %v914_v12 = vld [vmem:[%s1112_s2 + $0x8] sm:$0xff]  ;;  %vm258_vm2 = vcmask 64512   ;;  %v959_v15 = vmov 0  }
   0xc   : > { %s923_s20 = smul.u32 12, %s1117_s19  ;;  %941 = vset.pattern.permute.xlu0 %v959_v15  ;;  %v406_v16 = vld [vmem:[%s1113_s3] sm:$0xff]  ;;  %942 = vset.pattern.permute.xlu1 %v959_v15  ;;  %vm255_vm3 = vcmask 908288   ;;  %vm362_vm4 = vcmask 777216   ;;  %v407_v27 = vld [vmem:[%s1113_s3 + $0x8] sm:$0xff]  ;;  %vm438_vm5 = vcmask 916480  }
   0xd   : > { %v915_v26 = vld [vmem:[%s1112_s2 + $0x20] sm:$0xff]  ;;  %v916_v43 = vld [vmem:[%s1112_s2 + $0x38] sm:$0xff]  ;;  %vm534_vm6 = vcmask 785408   ;;  %vm608_vm7 = vcmask 900096   ;;  %v919_v60 = vld [vmem:[%s1112_s2 + $0x30] sm:$0xff]  ;;  %vm659_vm8 = vcmask 1031168  }
   0xe   : > { %s219_s23 = scalar_lea.vmem %s1114_s4, %s923_s20  ;;  %v918_v45 = vld [vmem:[%s1112_s2 + $0x18] sm:$0xff]  ;;  %v917_v57 = vld [vmem:[%s1112_s2] sm:$0xff]  ;;  %vm713_vm9 = vcmask 769024   ;;  %s913_s10 = sshll.u32 %s1117_s19, 4 }
   0xf   : > { %v229_v0 = vld [vmem:[%s219_s23 + $0x8] sm:$0xf]  ;;  %v228_v1 = vld [vmem:[%s219_s23] sm:$0xff]  ;;  %s224_s13 = scalar_lea.vmem %s1115_s5, %s913_s10 }
  0x10   : > { %v245_v2 = vunpack.c.l.b16 %v229_v0  ;;  %v243_v3 = vunpack.c.l.b16 %v228_v1  ;;  %v244_v4 = vunpack.c.h.b16 %v228_v1 }
  0x12   : > { %v248_v5 = vpack.c.b16 %v245_v2, %v245_v2  ;;  %v1004_v6 = vpack.c.b16 %v243_v3, %v243_v3  ;;  %v1006_v7 = vpack.c.b16 %v244_v4, %v244_v4 }
  0x14   : > { %253 = vrot.lane.b32.xlu1 %v248_v5, %s951_s24  ;;  %249 = vrot.lane.b32.xlu0 %v1004_v6, %s951_s24  ;;  %v487_v32 = vsel %vm262_vm1, %v1004_v6, 0  ;;  %v490_v33 = vsel %vm262_vm1, %v1006_v7, 0 }
  0x15   : > { %304 = vrot.lane.b32.xlu2 %v1006_v7, %s952_s25 }
  0x1c   : > { %302 = vrot.lane.b32.xlu1 %v1004_v6, %s952_s25  ;;  %251 = vrot.lane.b32.xlu0 %v1006_v7, %s951_s24 }
  0x1d   : > { %306 = vrot.lane.b32.xlu2 %v248_v5, %s952_s25 }
  0x24   : > { %358 = vrot.lane.b32.xlu1 %v1006_v7, %s953_s26  ;;  %356 = vrot.lane.b32.xlu0 %v1004_v6, %s953_s26 }
  0x25   : > { %360 = vrot.lane.b32.xlu2 %v248_v5, %s953_s26 }
  0x2c   : > { %434 = vrot.lane.b32.xlu1 %v1006_v7, %s954_s27  ;;  %432 = vrot.lane.b32.xlu0 %v1004_v6, %s954_s27 }
  0x2d   : > { %436 = vrot.lane.b32.xlu2 %v248_v5, %s954_s27 }
  0x34   : > { %530 = vrot.lane.b32.xlu1 %v1006_v7, %s955_s28  ;;  %528 = vrot.lane.b32.xlu0 %v1004_v6, %s955_s28 }
  0x35   : > { %532 = vrot.lane.b32.xlu2 %v248_v5, %s955_s28 }
  0x3c   : > { %604 = vrot.lane.b32.xlu1 %v1006_v7, %s956_s29  ;;  %602 = vrot.lane.b32.xlu0 %v1004_v6, %s956_s29 }
  0x3d   : > { %606 = vrot.lane.b32.xlu2 %v248_v5, %s956_s29 }
  0x44   : > { %655 = vrot.lane.b32.xlu1 %v1006_v7, %s957_s30  ;;  %653 = vrot.lane.b32.xlu0 %v1004_v6, %s957_s30 }
  0x45   : > { %657 = vrot.lane.b32.xlu2 %v248_v5, %s957_s30 }
  0x4c   : > { %709 = vrot.lane.b32.xlu1 %v1006_v7, %s958_s6  ;;  %707 = vrot.lane.b32.xlu0 %v1004_v6, %s958_s6 }
  0x4d   : > { %711 = vrot.lane.b32.xlu2 %v248_v5, %s958_s6 }
  0x54   : > { %410 = vperm.xlu0 %941, %v406_v16   ;;  %415 = vperm.xlu1 %942, %v407_v27  }
  0x6f   : > { %v305_v8 = vpop.permute.xlu2 %304 }
  0x77   : > { %v307_v9 = vpop.permute.xlu2 %306 }
  0x78   : > { %v310_v10 = vsel %vm308_vm0, %v305_v8, %v307_v9  ;;  %v921_v9 = vld [vmem:[%s1112_s2 + $0x28] sm:$0xff] }
  0x79   : > { %v318_v11 = vsel %vm262_vm1, %v310_v10, 0 }
  0x7a   : > { %341 = vmatpush.bf16.msra.mxu3 %v318_v11 }
  0x7d   : > { %856 = vmatmul.msk.bf16.vlgmr.msra.gmra.mxu3 %vm258_vm2, %v914_v12 }
  0x7f   : > { %v361_v17 = vpop.permute.xlu2 %360 }
  0x86   : > { %v254_v13 = vpop.permute.xlu1 %253  ;;  %v250_v14 = vpop.permute.xlu0 %249 }
  0x87   : > { %v437_v36 = vpop.permute.xlu2 %436 }
  0x8e   : > { %v303_v18 = vpop.permute.xlu1 %302  ;;  %v252_v19 = vpop.permute.xlu0 %251 }
  0x8f   : > { %v256_v20 = vsel %vm255_vm3, %v250_v14, %v252_v19  ;;  %v257_v21 = vsel %vm255_vm3, %v252_v19, %v254_v13  ;;  %v309_v22 = vsel %vm308_vm0, %v303_v18, %v305_v8  ;;  %v533_v44 = vpop.permute.xlu2 %532  ;;  %v922_v13 = vld [vmem:[%s1112_s2 + $0x40] sm:$0xff] }
  0x90   : > { %v264_v23 = vsel %vm262_vm1, %v256_v20, 0  ;;  %v267_v24 = vsel %vm262_vm1, %v257_v21, 0  ;;  %v315_v25 = vsel %vm262_vm1, %v309_v22, 0 }
  0x91   : > { %276 = vmatpush.bf16.msra.mxu0 %v264_v23  ;;  %290 = vmatpush.bf16.msra.mxu1 %v267_v24 }
  0x92   : > { %327 = vmatpush.bf16.msra.mxu2 %v315_v25 }
  0x94   : > { %849 = vmatmul.msk.bf16.vlgmr.msra.gmra.mxu0 %vm258_vm2, %v915_v26  ;;  %850 = vmatmul.msk.bf16.vlgmr.msra.gmra.mxu1 %vm258_vm2, %v915_v26 }
  0x95   : > { %855 = vmatmul.msk.bf16.vlgmr.msra.gmra.mxu2 %vm258_vm2, %v914_v12  ;;  %v920_v12 = vld [vmem:[%s1112_s2 + $0x10] sm:$0xff] }
  0x96   : > { %v359_v28 = vpop.permute.xlu1 %358  ;;  %v357_v29 = vpop.permute.xlu0 %356 }
  0x97   : > { %v363_v30 = vsel %vm362_vm4, %v357_v29, %v359_v28  ;;  %v364_v31 = vsel %vm362_vm4, %v359_v28, %v361_v17  ;;  %v607_v52 = vpop.permute.xlu2 %606 }
  0x98   : > { %v369_v34 = vsel %vm262_vm1, %v363_v30, 0  ;;  %v372_v35 = vsel %vm262_vm1, %v364_v31, 0 }
  0x99   : > { %381 = vmatpush.bf16.msrb.mxu0 %v369_v34  ;;  %395 = vmatpush.bf16.msrb.mxu1 %v372_v35 }
  0x9d   : > { %499 = vmatpush.bf16.msra.mxu0 %v487_v32  ;;  %513 = vmatpush.bf16.msra.mxu1 %v490_v33 }
  0x9e   : > { %v435_v37 = vpop.permute.xlu1 %434  ;;  %v433_v38 = vpop.permute.xlu0 %432 }
  0x9f   : > { %v439_v39 = vsel %vm438_vm5, %v433_v38, %v435_v37  ;;  %v440_v40 = vsel %vm438_vm5, %v435_v37, %v437_v36  ;;  %v658_v61 = vpop.permute.xlu2 %657 }
  0xa0   : > { %v445_v41 = vsel %vm262_vm1, %v439_v39, 0  ;;  %v448_v42 = vsel %vm262_vm1, %v440_v40, 0  ;;  %v226_v40 = vld [vmem:[%s1110_s0] sm:$0x3] }
  0xa1   : > { %457 = vmatpush.bf16.msrb.mxu2 %v445_v41  ;;  %471 = vmatpush.bf16.msrb.mxu3 %v448_v42 }
  0xa4   : > { %863 = vmatmul.msk.bf16.vlgmr.msrb.gmra.mxu0 %vm258_vm2, %v916_v43  ;;  %864 = vmatmul.msk.bf16.vlgmr.msrb.gmra.mxu1 %vm258_vm2, %v916_v43 }
  0xa5   : > { %871 = vmatmul.msk.bf16.vlgmr.msrb.gmra.mxu2 %vm258_vm2, %v918_v45  ;;  %872 = vmatmul.msk.bf16.vlgmr.msrb.gmra.mxu3 %vm258_vm2, %v918_v45 }
  0xa6   : > { %v531_v46 = vpop.permute.xlu1 %530  ;;  %v529_v47 = vpop.permute.xlu0 %528 }
  0xa7   : > { %v536_v48 = vsel %vm534_vm6, %v531_v46, %v533_v44  ;;  %v535_v49 = vsel %vm534_vm6, %v529_v47, %v531_v46  ;;  %v712_v4 = vpop.permute.xlu2 %711 }
  0xa8   : > { %v544_v50 = vsel %vm262_vm1, %v536_v48, 0  ;;  %v541_v51 = vsel %vm262_vm1, %v535_v49, 0 }
  0xa9   : > { %567 = vmatpush.bf16.msra.mxu3 %v544_v50  ;;  %553 = vmatpush.bf16.msra.mxu2 %v541_v51  ;;  %v579_v50 = vperm.slane %v226_v40, 0 }
  0xae   : > { %v605_v53 = vpop.permute.xlu1 %604  ;;  %v603_v54 = vpop.permute.xlu0 %602 }
  0xaf   : > { %v610_v55 = vsel %vm608_vm7, %v605_v53, %v607_v52  ;;  %v609_v56 = vsel %vm608_vm7, %v603_v54, %v605_v53  ;;  %v580_v52 = vperm.slane %v226_v40, 1  ;;  %v227_v53 = vld [vmem:[%s1111_s1] sm:$0x3] }
  0xb0   : > { %v618_v58 = vsel %vm262_vm1, %v610_v55, 0  ;;  %v615_v59 = vsel %vm262_vm1, %v609_v56, 0 }
  0xb1   : > { %627 = vmatpush.bf16.msrb.mxu0 %v615_v59  ;;  %641 = vmatpush.bf16.msrb.mxu1 %v618_v58  ;;  %v759_v58 = vperm.slane %v227_v53, 1 }
  0xb4   : > { %877 = vmatmul.msk.bf16.vlgmr.msra.gmra.mxu0 %vm258_vm2, %v917_v57  ;;  %878 = vmatmul.msk.bf16.vlgmr.msra.gmra.mxu1 %vm258_vm2, %v917_v57  ;;  %v758_v57 = vperm.slane %v227_v53, 0 }
  0xb5   : > { %885 = vmatmul.msk.bf16.vlgmr.msra.gmra.mxu2 %vm258_vm2, %v919_v60  ;;  %886 = vmatmul.msk.bf16.vlgmr.msra.gmra.mxu3 %vm258_vm2, %v919_v60 }
  0xb6   : > { %v656_v62 = vpop.permute.xlu1 %655  ;;  %v654_v63 = vpop.permute.xlu0 %653 }
  0xb7   : > { %v661_v0 = vsel %vm659_vm8, %v656_v62, %v658_v61  ;;  %v660_v1 = vsel %vm659_vm8, %v654_v63, %v656_v62 }
  0xb8   : > { %v669_v2 = vsel %vm262_vm1, %v661_v0, 0  ;;  %v666_v3 = vsel %vm262_vm1, %v660_v1, 0 }
  0xb9   : > { %678 = vmatpush.bf16.msrb.mxu2 %v666_v3  ;;  %692 = vmatpush.bf16.msrb.mxu3 %v669_v2 }
  0xbe   : > { %v710_v5 = vpop.permute.xlu1 %709  ;;  %v708_v6 = vpop.permute.xlu0 %707 }
  0xbf   : > { %v715_v7 = vsel %vm713_vm9, %v710_v5, %v712_v4  ;;  %v714_v8 = vsel %vm713_vm9, %v708_v6, %v710_v5 }
  0xc0   : > { %v723_v10 = vsel %vm262_vm1, %v715_v7, 0  ;;  %v720_v11 = vsel %vm262_vm1, %v714_v8, 0 }
  0xc1   : > { %732 = vmatpush.bf16.msra.mxu0 %v720_v11  ;;  %746 = vmatpush.bf16.msra.mxu1 %v723_v10 }
  0xc4   : > { %895 = vmatmul.msk.bf16.vlgmr.msrb.gmra.mxu0 %vm258_vm2, %v921_v9  ;;  %896 = vmatmul.msk.bf16.vlgmr.msrb.gmra.mxu1 %vm258_vm2, %v921_v9 }
  0xc5   : > { %901 = vmatmul.msk.bf16.vlgmr.msrb.gmra.mxu2 %vm258_vm2, %v920_v12  ;;  %902 = vmatmul.msk.bf16.vlgmr.msrb.gmra.mxu3 %vm258_vm2, %v920_v12 }
  0xc6   : > { %v411_v56 = vpop.permute.xlu0 %410 }
  0xd4   : > { %909 = vmatmul.msk.bf16.vlgmr.msra.gmra.mxu0 %vm258_vm2, %v922_v13  ;;  %910 = vmatmul.msk.bf16.vlgmr.msra.gmra.mxu1 %vm258_vm2, %v922_v13 }
 0x100   : > { %v343_v16 = vpop.f32.mrf.mxu3 }
 0x108   : > { %v345_v20 = vpop.f32.mrf.mxu3 }
 0x111   : > { %v278_v14 = vpop.f32.mrf.mxu0  ;;  %v292_v15 = vpop.f32.mrf.mxu1 }
 0x112   : > { %v344_v45 = vadd.f32 %v343_v16, %v292_v15 }
 0x118   : > { %v329_v17 = vpop.f32.mrf.mxu2 }
 0x119   : > { %v280_v18 = vpop.f32.mrf.mxu0  ;;  %v294_v19 = vpop.f32.mrf.mxu1  ;;  %v330_v46 = vadd.f32 %v329_v17, %v278_v14 }
 0x11a   : > { %v346_v7 = vadd.f32 %v345_v20, %v294_v19 }
 0x120   : > { %v331_v21 = vpop.f32.mrf.mxu2 }
 0x121   : > { %v383_v22 = vpop.f32.mrf.mxu0  ;;  %v397_v23 = vpop.f32.mrf.mxu1  ;;  %v332_v8 = vadd.f32 %v331_v21, %v280_v18 }
 0x122   : > { %v402_v54 = vadd.f32 %v383_v22, %v330_v46  ;;  %v403_v55 = vadd.f32 %v397_v23, %v344_v45  ;;  %v416_v23 = vpop.permute.xlu1 %415 }
 0x124   : > { %v418_v3 = vadd.f32 %v411_v56, %v402_v54  ;;  %v419_v4 = vadd.f32 %v411_v56, %v403_v55 }
 0x128   : > { %v459_v24 = vpop.f32.mrf.mxu2  ;;  %v473_v25 = vpop.f32.mrf.mxu3 }
 0x129   : > { %v385_v26 = vpop.f32.mrf.mxu0  ;;  %v399_v27 = vpop.f32.mrf.mxu1 }
 0x12a   : > { %v404_v15 = vadd.f32 %v385_v26, %v332_v8  ;;  %v405_v22 = vadd.f32 %v399_v27, %v346_v7 }
 0x12c   : > { %v420_v20 = vadd.f32 %v416_v23, %v404_v15 }
 0x130   : > { %v461_v28 = vpop.f32.mrf.mxu2  ;;  %v475_v29 = vpop.f32.mrf.mxu3 }
 0x131   : > { %v501_v30 = vpop.f32.mrf.mxu0  ;;  %v515_v31 = vpop.f32.mrf.mxu1 }
 0x132   : > { %v502_v43 = vadd.f32 %v501_v30, %v459_v24  ;;  %v516_v44 = vadd.f32 %v515_v31, %v473_v25 }
 0x138   : > { %v555_v32 = vpop.f32.mrf.mxu2  ;;  %v569_v33 = vpop.f32.mrf.mxu3 }
 0x139   : > { %v503_v34 = vpop.f32.mrf.mxu0  ;;  %v517_v35 = vpop.f32.mrf.mxu1  ;;  %v574_v49 = vadd.f32 %v555_v32, %v502_v43  ;;  %v575_v51 = vadd.f32 %v569_v33, %v516_v44  ;;  %v421_v32 = vadd.f32 %v416_v23, %v405_v22 }
 0x13a   : > { %v504_v63 = vadd.f32 %v503_v34, %v461_v28  ;;  %v518_v0 = vadd.f32 %v517_v35, %v475_v29 }
 0x13b   : > { %v583_v59 = vmul.f32 %v579_v50, %v574_v49  ;;  %v584_v60 = vmul.f32 %v580_v52, %v575_v51 }
 0x13d   : > { %v587_v11 = vadd.f32 %v583_v59, %v418_v3  ;;  %v588_v12 = vadd.f32 %v584_v60, %v419_v4 }
 0x140   : > { %v557_v36 = vpop.f32.mrf.mxu2  ;;  %v571_v37 = vpop.f32.mrf.mxu3 }
 0x141   : > { %v629_v38 = vpop.f32.mrf.mxu0  ;;  %v643_v39 = vpop.f32.mrf.mxu1  ;;  %v576_v9 = vadd.f32 %v557_v36, %v504_v63  ;;  %v577_v10 = vadd.f32 %v571_v37, %v518_v0 }
 0x143   : > { %v585_v28 = vmul.f32 %v579_v50, %v576_v9  ;;  %v586_v29 = vmul.f32 %v580_v52, %v577_v10 }
 0x145   : > { %v589_v35 = vadd.f32 %v585_v28, %v420_v20  ;;  %v590_v36 = vadd.f32 %v586_v29, %v421_v32 }
 0x148   : > { %v680_v47 = vpop.f32.mrf.mxu2  ;;  %v694_v48 = vpop.f32.mrf.mxu3 }
 0x149   : > { %v631_v41 = vpop.f32.mrf.mxu0  ;;  %v645_v42 = vpop.f32.mrf.mxu1  ;;  %v681_v61 = vadd.f32 %v680_v47, %v629_v38  ;;  %v695_v62 = vadd.f32 %v694_v48, %v643_v39 }
 0x150   : > { %v682_v16 = vpop.f32.mrf.mxu2  ;;  %v696_v17 = vpop.f32.mrf.mxu3 }
 0x151   : > { %v734_v1 = vpop.f32.mrf.mxu0  ;;  %v748_v2 = vpop.f32.mrf.mxu1  ;;  %v683_v30 = vadd.f32 %v682_v16, %v631_v41  ;;  %v697_v31 = vadd.f32 %v696_v17, %v645_v42 }
 0x152   : > { %v753_v5 = vadd.f32 %v734_v1, %v681_v61  ;;  %v754_v6 = vadd.f32 %v748_v2, %v695_v62 }
 0x154   : > { %v762_v13 = vmul.f32 %v758_v57, %v753_v5  ;;  %v763_v14 = vmul.f32 %v759_v58, %v754_v6 }
 0x156   : > { %v766_v24 = vadd.f32 %v762_v13, %v587_v11  ;;  %v767_v25 = vadd.f32 %v763_v14, %v588_v12 }
 0x158   : > { %v770_v19 = vmax.f32 %v766_v24, 0.0  ;;  %v771_v18 = vmax.f32 %v767_v25, 0.0 }
 0x159   : > { %v736_v21 = vpop.f32.mrf.mxu0  ;;  %v750_v26 = vpop.f32.mrf.mxu1 }
 0x15a   : > { %v774_v33 = vpack.c.bf16 %v771_v18, %v770_v19  ;;  %v755_v27 = vadd.f32 %v736_v21, %v683_v30  ;;  %v756_v34 = vadd.f32 %v750_v26, %v697_v31 }
 0x15c   : > { %776 = vst [vmem:[%s224_s13] sm:$0xff] %v774_v33  ;;  %v764_v37 = vmul.f32 %v758_v57, %v755_v27  ;;  %v765_v38 = vmul.f32 %v759_v58, %v756_v34 }
 0x15e   : > { %v768_v39 = vadd.f32 %v764_v37, %v589_v35  ;;  %v769_v40 = vadd.f32 %v765_v38, %v590_v36 }
 0x160   : > { %v772_v41 = vmax.f32 %v768_v39, 0.0  ;;  %v773_v42 = vmax.f32 %v769_v40, 0.0 }
 0x162   : > { %v775_v43 = vpack.c.bf16 %v773_v42, %v772_v41 }
 0x164   : > { %777 = vst [vmem:[%s224_s13 + $0x8] sm:$0xff] %v775_v43 }
 0x165 PF: > { %s15_s18 = sadd.s32 1, %s949_s18  }
 0x166   : > { %p12_p4 = scmp.ge.s32.totalorder %s15_s18, 4  }
 0x168   :  { %14 = sbr.rel (!%p12_p4) target bundleno = 1 (0x1), region = 78 }

// kernel: dualgcn_head_forward.14
= control target key start
LH: loop header
LB: loop body
LE: loop exit
PB: predicated region body
PF: predicated region fallthrough
CT: control target
= control target key end

     0   :  { %s521_s12 = smov 0   ;;  %s564_s0 = inlined_call_operand.vmem [shape: f32[16,9], index: 0, kind: input, shape index: {}]   ;;  %s565_s1 = inlined_call_operand.vmem [shape: f32[16,1], index: 1, kind: input, shape index: {}]   ;;  %s566_s2 = inlined_call_operand.vmem [shape: bf16[2,4,16,31], index: 2, kind: input, shape index: {}]   ;;  %s567_s3 = inlined_call_operand.vmem [shape: bf16[2,16,25], index: 3, kind: output, shape index: {}]  }
   0x1 LB: > { %s411_s13 = sadd.s32 4294967295, %s487_s12   ;;  %p415_p0 = scmp.ge.s32.totalorder %s487_s12, 1  ;;  %s487_s12 = sphi %s521_s12, %s13_s12  }
   0x2   : > { %p137_p1 = scmp.lt.s32.totalorder %s487_s12, 3 }
   0x4   : > { %p138_p2 = pnand %p415_p0, %p137_p1 }
   0x5   : > { %p161_p3 = scmp.lt.s32.totalorder (!%p138_p2), %s411_s13, 1  ;;  %s498_s26 = smov (!%p138_p2), 123  }
   0x6   : > { %141 = sbr.rel (%p138_p2) target bundleno = 294 (0x126), region = 32  ;;  %s499_s27 = smov (!%p138_p2), 127  }
   0x7   : > { %s500_s28 = smov (!%p138_p2), 122  }
   0xb   : > { %v181_v0 = vld [vmem:[%s565_s1] sm:$0xff]  ;;  %v489_v2 = vmov 0   ;;  %v490_v3 = vmov 1   ;;  %v182_v4 = vld [vmem:[%s565_s1 + $0x8] sm:$0xff]  ;;  %v491_v6 = vmov 2   ;;  %v492_v7 = vmov 3  }
   0xc   : > { %v179_v1 = vld [vmem:[%s564_s0] sm:$0xff]  ;;  %464 = vset.pattern.permute.xlu1 %v489_v2  ;;  %463 = vset.pattern.permute.xlu0 %v489_v2  ;;  %v180_v5 = vld [vmem:[%s564_s0 + $0x8] sm:$0xff]  ;;  %v493_v8 = vmov 5   ;;  %v494_v9 = vmov 6   ;;  %v495_v10 = vmov 7   ;;  %v496_v11 = vmov 8  }
   0xd   : > { %199 = vperm.xlu1 %464, %v181_v0   ;;  %187 = vperm.xlu0 %463, %v179_v1   ;;  %s569_s13 = smov (!%p161_p3, %s411_s13), 1  ;;  %v497_v16 = vmov 4   ;;  %vm353_vm0 = vcmask 199680  }
   0xe   : > { %465 = vset.pattern.permute.xlu2 %v490_v3  ;;  %s422_s22 = sshll.u32 %s569_s13, 5  ;;  %s423_s29 = sshll.u32 %s569_s13, 3 }
   0xf   : > { %212 = vperm.xlu2 %465, %v179_v1   ;;  %s551_s25 = scalar_lea.vmem %s566_s2, %s422_s22  ;;  %s170_s5 = scalar_lea.vmem %s567_s3, %s423_s29 }
  0x10   : > { %v440_v12 = vld [vmem:[%s551_s25 + $0x8] sm:$0xff]   ;;  %v441_v20 = vld [vmem:[%s551_s25 + $0x10] sm:$0xff]   ;;  %v425_v22 = vld [vmem:[%s551_s25] sm:$0xff]  }
  0x11   : > { %v430_v13 = vunpack.c.l.bf16 %v440_v12  ;;  %v431_v17 = vunpack.c.h.bf16 %v440_v12  ;;  %v434_v21 = vunpack.c.l.bf16 %v441_v20  ;;  %v426_v25 = vunpack.c.l.bf16 %v425_v22  ;;  %v442_v3 = vld [vmem:[%s551_s25 + $0x18] sm:$0xff]  }
  0x12   : > { %v427_v31 = vunpack.c.h.bf16 %v425_v22  ;;  %v435_v45 = vunpack.c.h.bf16 %v441_v20 }
  0x15   : > { %204 = vperm.xlu1 %464, %v182_v4   ;;  %192 = vperm.xlu0 %463, %v180_v5  }
  0x17   : > { %216 = vperm.xlu2 %465, %v180_v5  }
  0x1d   : > { %467 = vset.pattern.permute.xlu1 %v491_v6  ;;  %466 = vset.pattern.permute.xlu0 %v491_v6 }
  0x1e   : > { %228 = vperm.xlu1 %467, %v180_v5   ;;  %224 = vperm.xlu0 %466, %v179_v1  }
  0x1f   : > { %468 = vset.pattern.permute.xlu2 %v492_v7 }
  0x20   : > { %246 = vperm.xlu2 %468, %v179_v1  }
  0x26   : > { %469 = vset.pattern.permute.xlu0 %v493_v8  ;;  %470 = vset.pattern.permute.xlu1 %v493_v8 }
  0x27   : > { %272 = vperm.xlu0 %469, %v179_v1   ;;  %276 = vperm.xlu1 %470, %v180_v5  }
  0x28   : > { %471 = vset.pattern.permute.xlu2 %v494_v9 }
  0x29   : > { %292 = vperm.xlu2 %471, %v179_v1  }
  0x2f   : > { %474 = vset.pattern.permute.xlu0 %v495_v10  ;;  %472 = vset.pattern.permute.xlu1 %v494_v9 }
  0x30   : > { %316 = vperm.xlu0 %474, %v180_v5   ;;  %296 = vperm.xlu1 %472, %v180_v5  }
  0x31   : > { %473 = vset.pattern.permute.xlu2 %v495_v10 }
  0x32   : > { %312 = vperm.xlu2 %473, %v179_v1  }
  0x38   : > { %475 = vset.pattern.permute.xlu1 %v496_v11  ;;  %479 = vset.pattern.permute.xlu0 %v497_v16 }
  0x39   : > { %332 = vperm.xlu1 %475, %v179_v1   ;;  %264 = vperm.xlu0 %479, %v180_v5  }
  0x3a   : > { %476 = vset.pattern.permute.xlu2 %v496_v11 }
  0x3b   : > { %336 = vperm.xlu2 %476, %v180_v5  }
  0x41   : > { %477 = vset.pattern.permute.xlu1 %v492_v7  ;;  %480 = vset.pattern.permute.xlu0 %v496_v11  ;;  %v439_v7 = vunpack.c.h.bf16 %v442_v3 }
  0x42   : > { %250 = vperm.xlu1 %477, %v180_v5   ;;  %v438_v5 = vunpack.c.l.bf16 %v442_v3 }
  0x43   : > { %478 = vset.pattern.permute.xlu2 %v497_v16 }
  0x44   : > { %260 = vperm.xlu2 %478, %v179_v1  }
  0x69   : > { %v213_v14 = vpop.permute.xlu2 %212 }
  0x6a   : > { %v219_v15 = vmul.f32 %v430_v13, %v213_v14 }
  0x71   : > { %v217_v18 = vpop.permute.xlu2 %216 }
  0x72   : > { %v220_v19 = vmul.f32 %v431_v17, %v217_v18 }
  0x7a   : > { %v247_v23 = vpop.permute.xlu2 %246 }
  0x7b   : > { %v253_v24 = vmul.f32 %v434_v21, %v247_v23 }
  0x7f   : > { %v200_v26 = vpop.permute.xlu1 %199  ;;  %v188_v27 = vpop.permute.xlu0 %187 }
  0x80   : > { %v195_v28 = vmul.f32 %v426_v25, %v188_v27 }
  0x82   : > { %v207_v29 = vadd.f32 %v200_v26, %v195_v28 }
  0x83   : > { %v293_v30 = vpop.permute.xlu2 %292 }
  0x84   : > { %v221_v32 = vadd.f32 %v219_v15, %v207_v29  ;;  %v299_v51 = vmul.f32 %v426_v25, %v293_v30 }
  0x87   : > { %v205_v33 = vpop.permute.xlu1 %204  ;;  %v193_v34 = vpop.permute.xlu0 %192 }
  0x88   : > { %v196_v35 = vmul.f32 %v427_v31, %v193_v34 }
  0x8a   : > { %v208_v36 = vadd.f32 %v205_v33, %v196_v35 }
  0x8c   : > { %v313_v37 = vpop.permute.xlu2 %312  ;;  %v222_v38 = vadd.f32 %v220_v19, %v208_v36 }
  0x8d   : > { %v319_v39 = vmul.f32 %v430_v13, %v313_v37 }
  0x8f   : > { %323 = vrot.lane.b32.xlu0 %v319_v39, %s498_s26 }
  0x90   : > { %v229_v40 = vpop.permute.xlu1 %228  ;;  %v225_v41 = vpop.permute.xlu0 %224 }
  0x91   : > { %v232_v42 = vmul.f32 %v427_v31, %v229_v40  ;;  %v231_v43 = vmul.f32 %v426_v25, %v225_v41 }
  0x93   : > { %237 = vrot.lane.b32.xlu1 %v232_v42, %s499_s27  ;;  %235 = vrot.lane.b32.xlu2 %v231_v43, %s499_s27 }
  0x95   : > { %v337_v44 = vpop.permute.xlu2 %336 }
  0x96   : > { %v340_v46 = vmul.f32 %v427_v31, %v337_v44 }
  0x98   : > { %345 = vrot.lane.b32.xlu0 %v340_v46, %s500_s28 }
  0x99   : > { %v273_v47 = vpop.permute.xlu0 %272  ;;  %v277_v48 = vpop.permute.xlu1 %276 }
  0x9a   : > { %v279_v49 = vmul.f32 %v434_v21, %v273_v47  ;;  %v280_v50 = vmul.f32 %v435_v45, %v277_v48 }
  0x9c   : > { %283 = vrot.lane.b32.xlu1 %v279_v49, %s499_s27  ;;  %285 = vrot.lane.b32.xlu2 %v280_v50, %s499_s27 }
  0x9e   : > { %v261_v58 = vpop.permute.xlu2 %260 }
  0x9f   : > { %v267_v9 = vmul.f32 %v438_v5, %v261_v58 }
  0xa2   : > { %v297_v52 = vpop.permute.xlu1 %296  ;;  %v317_v54 = vpop.permute.xlu0 %316 }
  0xa3   : > { %v300_v53 = vmul.f32 %v427_v31, %v297_v52  ;;  %v320_v55 = vmul.f32 %v431_v17, %v317_v54 }
  0xa4   : > { %303 = vrot.lane.b32.xlu1 %v299_v51, %s498_s26 }
  0xa5   : > { %305 = vrot.lane.b32.xlu2 %v300_v53, %s498_s26 }
  0xab   : > { %v333_v56 = vpop.permute.xlu1 %332  ;;  %v265_v6 = vpop.permute.xlu0 %264 }
  0xac   : > { %325 = vrot.lane.b32.xlu1 %v320_v55, %s498_s26  ;;  %v339_v57 = vmul.f32 %v426_v25, %v333_v56  ;;  %v268_v11 = vmul.f32 %v439_v7, %v265_v6 }
  0xae   : > { %343 = vrot.lane.b32.xlu2 %v339_v57, %s500_s28 }
  0xb4   : > { %v251_v62 = vpop.permute.xlu1 %250 }
  0xb5   : > { %v254_v0 = vmul.f32 %v435_v45, %v251_v62 }
  0xed   : > { %v236_v59 = vpop.permute.xlu2 %235 }
  0xee   : > { %v241_v60 = vadd.f32 %v236_v59, %v221_v32 }
  0xf0   : > { %v255_v61 = vadd.f32 %v253_v24, %v241_v60 }
  0xf2   : > { %v269_v12 = vadd.f32 %v267_v9, %v255_v61 }
  0xf6   : > { %v286_v2 = vpop.permute.xlu2 %285 }
  0xff   : > { %v306_v10 = vpop.permute.xlu2 %305 }
 0x101   : > { %v324_v13 = vpop.permute.xlu0 %323 }
 0x105   : > { %v238_v63 = vpop.permute.xlu1 %237 }
 0x106   : > { %v242_v1 = vadd.f32 %v238_v63, %v222_v38 }
 0x108   : > { %v256_v4 = vadd.f32 %v254_v0, %v242_v1  ;;  %v344_v18 = vpop.permute.xlu2 %343 }
 0x10a   : > { %v270_v14 = vadd.f32 %v268_v11, %v256_v4  ;;  %v346_v25 = vpop.permute.xlu0 %345 }
 0x10c   : > { %v290_v19 = vadd.f32 %v286_v2, %v270_v14 }
 0x10e   : > { %v284_v8 = vpop.permute.xlu1 %283  ;;  %v310_v22 = vadd.f32 %v306_v10, %v290_v19 }
 0x10f   : > { %v289_v15 = vadd.f32 %v284_v8, %v269_v12 }
 0x116   : > { %v304_v16 = vpop.permute.xlu1 %303 }
 0x117   : > { %v309_v17 = vadd.f32 %v304_v16, %v289_v15 }
 0x119   : > { %v329_v20 = vadd.f32 %v324_v13, %v309_v17 }
 0x11b   : > { %v349_v21 = vadd.f32 %v344_v18, %v329_v20 }
 0x11d   : > { %v351_v23 = vpack.c.bf16 %v349_v21, %v349_v21 }
 0x11e   : > { %v326_v24 = vpop.permute.xlu1 %325 }
 0x11f   : > { %354 = vst.msk [vmem:[%s170_s5] sm:$0xf] %vm353_vm0, %v351_v23  ;;  %v330_v26 = vadd.f32 %v326_v24, %v310_v22 }
 0x121   : > { %v350_v27 = vadd.f32 %v346_v25, %v330_v26 }
 0x123   : > { %v352_v28 = vpack.c.bf16 %v350_v27, %v350_v27 }
 0x125   : > { %355 = vst.msk [vmem:[%s170_s5 + $0x4] sm:$0xf] %vm353_vm0, %v352_v28 }
 0x126 PF: > { %s13_s12 = sadd.s32 1, %s487_s12  }
 0x127   : > { %p10_p4 = scmp.ge.s32.totalorder %s13_s12, 4  }
 0x129   :  { %12 = sbr.rel (!%p10_p4) target bundleno = 1 (0x1), region = 62 }

// kernel: dualgcn_head_forward.15
= control target key start
LH: loop header
LB: loop body
LE: loop exit
PB: predicated region body
PF: predicated region fallthrough
CT: control target
= control target key end

     0   :  { %s521_s12 = smov 0   ;;  %s564_s0 = inlined_call_operand.vmem [shape: f32[16,9], index: 0, kind: input, shape index: {}]   ;;  %s565_s1 = inlined_call_operand.vmem [shape: f32[16,1], index: 1, kind: input, shape index: {}]   ;;  %s566_s2 = inlined_call_operand.vmem [shape: bf16[2,4,16,13], index: 2, kind: input, shape index: {}]   ;;  %s567_s3 = inlined_call_operand.vmem [shape: bf16[2,16,9], index: 3, kind: output, shape index: {}]  }
   0x1 LB: > { %s411_s13 = sadd.s32 4294967295, %s487_s12   ;;  %p415_p0 = scmp.ge.s32.totalorder %s487_s12, 1  ;;  %s487_s12 = sphi %s521_s12, %s13_s12  }
   0x2   : > { %p137_p1 = scmp.lt.s32.totalorder %s487_s12, 3 }
   0x4   : > { %p138_p2 = pnand %p415_p0, %p137_p1 }
   0x5   : > { %p161_p3 = scmp.lt.s32.totalorder (!%p138_p2), %s411_s13, 1  ;;  %s498_s26 = smov (!%p138_p2), 125  }
   0x6   : > { %141 = sbr.rel (%p138_p2) target bundleno = 294 (0x126), region = 32  ;;  %s499_s27 = smov (!%p138_p2), 127  }
   0x7   : > { %s500_s28 = smov (!%p138_p2), 124  }
   0xb   : > { %v181_v0 = vld [vmem:[%s565_s1] sm:$0xff]  ;;  %v489_v2 = vmov 0   ;;  %v490_v3 = vmov 1   ;;  %v182_v4 = vld [vmem:[%s565_s1 + $0x8] sm:$0xff]  ;;  %v491_v6 = vmov 2   ;;  %v492_v7 = vmov 3  }
   0xc   : > { %v179_v1 = vld [vmem:[%s564_s0] sm:$0xff]  ;;  %464 = vset.pattern.permute.xlu1 %v489_v2  ;;  %463 = vset.pattern.permute.xlu0 %v489_v2  ;;  %v180_v5 = vld [vmem:[%s564_s0 + $0x8] sm:$0xff]  ;;  %v493_v8 = vmov 5   ;;  %v494_v9 = vmov 6   ;;  %v495_v10 = vmov 7   ;;  %v496_v11 = vmov 8  }
   0xd   : > { %199 = vperm.xlu1 %464, %v181_v0   ;;  %187 = vperm.xlu0 %463, %v179_v1   ;;  %s569_s13 = smov (!%p161_p3, %s411_s13), 1  ;;  %v497_v16 = vmov 4   ;;  %vm353_vm0 = vcmask 68608  }
   0xe   : > { %465 = vset.pattern.permute.xlu2 %v490_v3  ;;  %s422_s22 = sshll.u32 %s569_s13, 5  ;;  %s423_s29 = sshll.u32 %s569_s13, 3 }
   0xf   : > { %212 = vperm.xlu2 %465, %v179_v1   ;;  %s551_s25 = scalar_lea.vmem %s566_s2, %s422_s22  ;;  %s170_s5 = scalar_lea.vmem %s567_s3, %s423_s29 }
  0x10   : > { %v440_v12 = vld [vmem:[%s551_s25 + $0x8] sm:$0xff]   ;;  %v441_v20 = vld [vmem:[%s551_s25 + $0x10] sm:$0xff]   ;;  %v425_v22 = vld [vmem:[%s551_s25] sm:$0xff]  }
  0x11   : > { %v430_v13 = vunpack.c.l.bf16 %v440_v12  ;;  %v431_v17 = vunpack.c.h.bf16 %v440_v12  ;;  %v434_v21 = vunpack.c.l.bf16 %v441_v20  ;;  %v426_v25 = vunpack.c.l.bf16 %v425_v22  ;;  %v442_v3 = vld [vmem:[%s551_s25 + $0x18] sm:$0xff]  }
  0x12   : > { %v427_v31 = vunpack.c.h.bf16 %v425_v22  ;;  %v435_v45 = vunpack.c.h.bf16 %v441_v20 }
  0x15   : > { %204 = vperm.xlu1 %464, %v182_v4   ;;  %192 = vperm.xlu0 %463, %v180_v5  }
  0x17   : > { %216 = vperm.xlu2 %465, %v180_v5  }
  0x1d   : > { %467 = vset.pattern.permute.xlu1 %v491_v6  ;;  %466 = vset.pattern.permute.xlu0 %v491_v6 }
  0x1e   : > { %228 = vperm.xlu1 %467, %v180_v5   ;;  %224 = vperm.xlu0 %466, %v179_v1  }
  0x1f   : > { %468 = vset.pattern.permute.xlu2 %v492_v7 }
  0x20   : > { %246 = vperm.xlu2 %468, %v179_v1  }
  0x26   : > { %469 = vset.pattern.permute.xlu0 %v493_v8  ;;  %470 = vset.pattern.permute.xlu1 %v493_v8 }
  0x27   : > { %272 = vperm.xlu0 %469, %v179_v1   ;;  %276 = vperm.xlu1 %470, %v180_v5  }
  0x28   : > { %471 = vset.pattern.permute.xlu2 %v494_v9 }
  0x29   : > { %292 = vperm.xlu2 %471, %v179_v1  }
  0x2f   : > { %474 = vset.pattern.permute.xlu0 %v495_v10  ;;  %472 = vset.pattern.permute.xlu1 %v494_v9 }
  0x30   : > { %316 = vperm.xlu0 %474, %v180_v5   ;;  %296 = vperm.xlu1 %472, %v180_v5  }
  0x31   : > { %473 = vset.pattern.permute.xlu2 %v495_v10 }
  0x32   : > { %312 = vperm.xlu2 %473, %v179_v1  }
  0x38   : > { %475 = vset.pattern.permute.xlu1 %v496_v11  ;;  %479 = vset.pattern.permute.xlu0 %v497_v16 }
  0x39   : > { %332 = vperm.xlu1 %475, %v179_v1   ;;  %264 = vperm.xlu0 %479, %v180_v5  }
  0x3a   : > { %476 = vset.pattern.permute.xlu2 %v496_v11 }
  0x3b   : > { %336 = vperm.xlu2 %476, %v180_v5  }
  0x41   : > { %477 = vset.pattern.permute.xlu1 %v492_v7  ;;  %480 = vset.pattern.permute.xlu0 %v496_v11  ;;  %v439_v7 = vunpack.c.h.bf16 %v442_v3 }
  0x42   : > { %250 = vperm.xlu1 %477, %v180_v5   ;;  %v438_v5 = vunpack.c.l.bf16 %v442_v3 }
  0x43   : > { %478 = vset.pattern.permute.xlu2 %v497_v16 }
  0x44   : > { %260 = vperm.xlu2 %478, %v179_v1  }
  0x69   : > { %v213_v14 = vpop.permute.xlu2 %212 }
  0x6a   : > { %v219_v15 = vmul.f32 %v430_v13, %v213_v14 }
  0x71   : > { %v217_v18 = vpop.permute.xlu2 %216 }
  0x72   : > { %v220_v19 = vmul.f32 %v431_v17, %v217_v18 }
  0x7a   : > { %v247_v23 = vpop.permute.xlu2 %246 }
  0x7b   : > { %v253_v24 = vmul.f32 %v434_v21, %v247_v23 }
  0x7f   : > { %v200_v26 = vpop.permute.xlu1 %199  ;;  %v188_v27 = vpop.permute.xlu0 %187 }
  0x80   : > { %v195_v28 = vmul.f32 %v426_v25, %v188_v27 }
  0x82   : > { %v207_v29 = vadd.f32 %v200_v26, %v195_v28 }
  0x83   : > { %v293_v30 = vpop.permute.xlu2 %292 }
  0x84   : > { %v221_v32 = vadd.f32 %v219_v15, %v207_v29  ;;  %v299_v51 = vmul.f32 %v426_v25, %v293_v30 }
  0x87   : > { %v205_v33 = vpop.permute.xlu1 %204  ;;  %v193_v34 = vpop.permute.xlu0 %192 }
  0x88   : > { %v196_v35 = vmul.f32 %v427_v31, %v193_v34 }
  0x8a   : > { %v208_v36 = vadd.f32 %v205_v33, %v196_v35 }
  0x8c   : > { %v313_v37 = vpop.permute.xlu2 %312  ;;  %v222_v38 = vadd.f32 %v220_v19, %v208_v36 }
  0x8d   : > { %v319_v39 = vmul.f32 %v430_v13, %v313_v37 }
  0x8f   : > { %323 = vrot.lane.b32.xlu0 %v319_v39, %s498_s26 }
  0x90   : > { %v229_v40 = vpop.permute.xlu1 %228  ;;  %v225_v41 = vpop.permute.xlu0 %224 }
  0x91   : > { %v232_v42 = vmul.f32 %v427_v31, %v229_v40  ;;  %v231_v43 = vmul.f32 %v426_v25, %v225_v41 }
  0x93   : > { %237 = vrot.lane.b32.xlu1 %v232_v42, %s499_s27  ;;  %235 = vrot.lane.b32.xlu2 %v231_v43, %s499_s27 }
  0x95   : > { %v337_v44 = vpop.permute.xlu2 %336 }
  0x96   : > { %v340_v46 = vmul.f32 %v427_v31, %v337_v44 }
  0x98   : > { %345 = vrot.lane.b32.xlu0 %v340_v46, %s500_s28 }
  0x99   : > { %v273_v47 = vpop.permute.xlu0 %272  ;;  %v277_v48 = vpop.permute.xlu1 %276 }
  0x9a   : > { %v279_v49 = vmul.f32 %v434_v21, %v273_v47  ;;  %v280_v50 = vmul.f32 %v435_v45, %v277_v48 }
  0x9c   : > { %283 = vrot.lane.b32.xlu1 %v279_v49, %s499_s27  ;;  %285 = vrot.lane.b32.xlu2 %v280_v50, %s499_s27 }
  0x9e   : > { %v261_v58 = vpop.permute.xlu2 %260 }
  0x9f   : > { %v267_v9 = vmul.f32 %v438_v5, %v261_v58 }
  0xa2   : > { %v297_v52 = vpop.permute.xlu1 %296  ;;  %v317_v54 = vpop.permute.xlu0 %316 }
  0xa3   : > { %v300_v53 = vmul.f32 %v427_v31, %v297_v52  ;;  %v320_v55 = vmul.f32 %v431_v17, %v317_v54 }
  0xa4   : > { %303 = vrot.lane.b32.xlu1 %v299_v51, %s498_s26 }
  0xa5   : > { %305 = vrot.lane.b32.xlu2 %v300_v53, %s498_s26 }
  0xab   : > { %v333_v56 = vpop.permute.xlu1 %332  ;;  %v265_v6 = vpop.permute.xlu0 %264 }
  0xac   : > { %325 = vrot.lane.b32.xlu1 %v320_v55, %s498_s26  ;;  %v339_v57 = vmul.f32 %v426_v25, %v333_v56  ;;  %v268_v11 = vmul.f32 %v439_v7, %v265_v6 }
  0xae   : > { %343 = vrot.lane.b32.xlu2 %v339_v57, %s500_s28 }
  0xb4   : > { %v251_v62 = vpop.permute.xlu1 %250 }
  0xb5   : > { %v254_v0 = vmul.f32 %v435_v45, %v251_v62 }
  0xed   : > { %v236_v59 = vpop.permute.xlu2 %235 }
  0xee   : > { %v241_v60 = vadd.f32 %v236_v59, %v221_v32 }
  0xf0   : > { %v255_v61 = vadd.f32 %v253_v24, %v241_v60 }
  0xf2   : > { %v269_v12 = vadd.f32 %v267_v9, %v255_v61 }
  0xf6   : > { %v286_v2 = vpop.permute.xlu2 %285 }
  0xff   : > { %v306_v10 = vpop.permute.xlu2 %305 }
 0x101   : > { %v324_v13 = vpop.permute.xlu0 %323 }
 0x105   : > { %v238_v63 = vpop.permute.xlu1 %237 }
 0x106   : > { %v242_v1 = vadd.f32 %v238_v63, %v222_v38 }
 0x108   : > { %v256_v4 = vadd.f32 %v254_v0, %v242_v1  ;;  %v344_v18 = vpop.permute.xlu2 %343 }
 0x10a   : > { %v270_v14 = vadd.f32 %v268_v11, %v256_v4  ;;  %v346_v25 = vpop.permute.xlu0 %345 }
 0x10c   : > { %v290_v19 = vadd.f32 %v286_v2, %v270_v14 }
 0x10e   : > { %v284_v8 = vpop.permute.xlu1 %283  ;;  %v310_v22 = vadd.f32 %v306_v10, %v290_v19 }
 0x10f   : > { %v289_v15 = vadd.f32 %v284_v8, %v269_v12 }
 0x116   : > { %v304_v16 = vpop.permute.xlu1 %303 }
 0x117   : > { %v309_v17 = vadd.f32 %v304_v16, %v289_v15 }
 0x119   : > { %v329_v20 = vadd.f32 %v324_v13, %v309_v17 }
 0x11b   : > { %v349_v21 = vadd.f32 %v344_v18, %v329_v20 }
 0x11d   : > { %v351_v23 = vpack.c.bf16 %v349_v21, %v349_v21 }
 0x11e   : > { %v326_v24 = vpop.permute.xlu1 %325 }
 0x11f   : > { %354 = vst.msk [vmem:[%s170_s5] sm:$0xf] %vm353_vm0, %v351_v23  ;;  %v330_v26 = vadd.f32 %v326_v24, %v310_v22 }
 0x121   : > { %v350_v27 = vadd.f32 %v346_v25, %v330_v26 }
 0x123   : > { %v352_v28 = vpack.c.bf16 %v350_v27, %v350_v27 }
 0x125   : > { %355 = vst.msk [vmem:[%s170_s5 + $0x4] sm:$0xf] %vm353_vm0, %v352_v28 }
 0x126 PF: > { %s13_s12 = sadd.s32 1, %s487_s12  }
 0x127   : > { %p10_p4 = scmp.ge.s32.totalorder %s13_s12, 4  }
 0x129   :  { %12 = sbr.rel (!%p10_p4) target bundleno = 1 (0x1), region = 62 }

// kernel: dualgcn_head_forward.16
= control target key start
LH: loop header
LB: loop body
LE: loop exit
PB: predicated region body
PF: predicated region fallthrough
CT: control target
= control target key end

     0   :  { %s799_s17 = smov 0   ;;  %s871_s0 = inlined_call_operand.vmem [shape: bf16[8,16], index: 0, kind: input, shape index: {}]   ;;  %s872_s1 = inlined_call_operand.vmem [shape: f32[8,1], index: 1, kind: input, shape index: {}]   ;;  %s873_s2 = inlined_call_operand.vmem [shape: bf16[8,16], index: 2, kind: input, shape index: {}]   ;;  %s874_s3 = inlined_call_operand.vmem [shape: f32[8,1], index: 3, kind: input, shape index: {}]   ;;  %s875_s4 = inlined_call_operand.vmem [shape: bf16[8,16], index: 4, kind: input, shape index: {}]   ;;  %s876_s5 = inlined_call_operand.vmem [shape: f32[8,1], index: 5, kind: input, shape index: {}]   ;;  %s877_s6 = inlined_call_operand.vmem [shape: bf16[8,8], index: 6, kind: input, shape index: {}]   ;;  %s878_s7 = inlined_call_operand.vmem [shape: f32[8,1], index: 7, kind: input, shape index: {}]   ;;  %s879_s8 = inlined_call_operand.vmem [shape: bf16[16,8], index: 8, kind: input, shape index: {}]   ;;  %s880_s9 = inlined_call_operand.vmem [shape: f32[16,1], index: 9, kind: input, shape index: {}]   ;;  %s881_s10 = inlined_call_operand.vmem [shape: bf16[2,16,4], index: 10, kind: input, shape index: {}]   ;;  %s882_s11 = inlined_call_operand.vmem [shape: bf16[2,16,4], index: 11, kind: output, shape index: {}]  }
   0x1 LB: > { %s684_s18 = sadd.s32 4294967295, %s736_s17   ;;  %p688_p0 = scmp.ge.s32.totalorder %s736_s17, 1  ;;  %s736_s17 = sphi %s799_s17, %s21_s17  }
   0x2   : > { %p337_p1 = scmp.lt.s32.totalorder %s736_s17, 3 }
   0x4   : > { %p338_p2 = pnand %p688_p0, %p337_p1 }
   0x5   : > { %p377_p3 = scmp.lt.s32.totalorder (!%p338_p2), %s684_s18, 1 }
   0x6   : > { %341 = sbr.rel (%p338_p2) target bundleno = 1131 (0x46b), region = 64 }
   0xb   : > { %v421_v0 = vld [vmem:[%s874_s3] sm:$0xff]  ;;  %v738_v1 = vmov 0   ;;  %s884_s18 = smov (!%p377_p3, %s684_s18), 1  ;;  %vm403_vm0 = vcmask 130048   ;;  %v582_v7 = vld [vmem:[%s880_s9 + $0x8] sm:$0xff]  ;;  %vm468_vm1 = vcmask 31744  }
   0xc   : > { %723 = vset.pattern.permute.xlu0 %v738_v1  ;;  %724 = vset.pattern.permute.xlu2 %v738_v1  ;;  %s710_s21 = sshll.u32 %s884_s18, 3  ;;  %v444_v3 = vld [vmem:[%s876_s5] sm:$0xff]  ;;  %vm488_vm2 = vcmask 64512   ;;  %vm534_vm3 = vcmask 1043456   ;;  %vm626_vm8 = vcmask 27648  }
   0xd   : > { %424 = vperm.xlu0 %723, %v421_v0   ;;  %725 = vset.pattern.permute.xlu1 %v738_v1  ;;  %s818_s24 = scalar_lea.vmem %s881_s10, %s710_s21  ;;  %v420_v4 = vld [vmem:[%s873_s2] sm:$0xf]  ;;  %s386_s13 = scalar_lea.vmem %s882_s11, %s710_s21 }
   0xe   : > { %v712_v2 = vld [vmem:[%s818_s24] sm:$0xff] }
   0xf   : > { %437 = vmatpush.bf16.msra.mxu1 %v712_v2  ;;  %460 = vmatpush.bf16.msra.mxu2 %v712_v2  ;;  %v443_v5 = vld [vmem:[%s875_s4] sm:$0xf] }
  0x10   : > { %414 = vmatpush.bf16.msra.mxu0 %v712_v2  ;;  %v553_v6 = vld [vmem:[%s878_s7] sm:$0xff] }
  0x11   : > { %v390_v22 = vld [vmem:[%s871_s0] sm:$0xf] }
  0x12   : > { %698 = vmatmul.msk.bf16.vlgmr.msra.gmra.mxu1 %vm403_vm0, %v420_v4  ;;  %699 = vmatmul.msk.bf16.vlgmr.msra.gmra.mxu2 %vm403_vm0, %v443_v5  ;;  %v391_v23 = vld [vmem:[%s872_s1] sm:$0xff] }
  0x13   : > { %697 = vmatmul.msk.bf16.vlgmr.msra.gmra.mxu0 %vm403_vm0, %v390_v22  ;;  %394 = vperm.xlu2 %724, %v391_v23   ;;  %v551_v52 = vld [vmem:[%s877_s6] sm:$0xf] }
  0x14   : > { %v581_v54 = vld [vmem:[%s880_s9] sm:$0xff] }
  0x15   : > { %447 = vperm.xlu0 %723, %v444_v3   ;;  %v713_v60 = vld [vmem:[%s879_s8] sm:$0xff] }
  0x16   : > { %v389_v62 = vld [vmem:[%s818_s24] sm:$0xff]  }
  0x17   : > { %v618_v0 = vunpack.c.l.bf16 %v389_v62  ;;  %v619_v5 = vunpack.c.h.bf16 %v389_v62 }
  0x1d   : > { %556 = vperm.xlu0 %723, %v553_v6  }
  0x25   : > { %590 = vperm.xlu0 %723, %v582_v7  }
  0x6d   : > { %v395_v29 = vpop.permute.xlu2 %394 }
  0x7f   : > { %v425_v8 = vpop.permute.xlu0 %424 }
  0x87   : > { %v448_v13 = vpop.permute.xlu0 %447 }
  0x8f   : > { %v439_v9 = vpop.f32.mrf.mxu1  ;;  %v557_v55 = vpop.permute.xlu0 %556 }
  0x90   : > { %v440_v10 = vadd.f32 %v439_v9, %v425_v8  ;;  %v416_v30 = vpop.f32.mrf.mxu0 }
  0x91   : > { %v417_v31 = vadd.f32 %v416_v30, %v395_v29 }
  0x92   : > { %v467_v11 = vpack.c.bf16 %v440_v10, %v440_v10 }
  0x93   : > { %v514_v32 = vpack.c.bf16 %v417_v31, %v417_v31 }
  0x94   : > { %v473_v12 = vsel %vm468_vm1, %v467_v11, 0 }
  0x95   : > { %v462_v14 = vpop.f32.mrf.mxu2  ;;  %482 = vmatpush.bf16.xpose.msra.mxu3 %v473_v12  ;;  %v536_v33 = vsel %vm534_vm3, %v514_v32, 0 }
  0x96   : > { %v463_v15 = vadd.f32 %v462_v14, %v448_v13  ;;  %545 = vmatpush.bf16.msrb.mxu0 %v536_v33 }
  0x97   : > { %v441_v16 = vpop.f32.mrf.mxu1  ;;  %v591_v7 = vpop.permute.xlu0 %590 }
  0x98   : > { %v466_v17 = vpack.c.bf16 %v463_v15, %v463_v15  ;;  %v418_v34 = vpop.f32.mrf.mxu0 }
  0x9c   : > { %700 = vmatmul.msk.bf16.vlgmr.msra.gmra.mxu3 %vm468_vm1, %v466_v17 }
  0x9d   : > { %v464_v18 = vpop.f32.mrf.mxu2 }
 0x11f   : > { %v484_v19 = vpop.f32.mrf.mxu3 }
 0x120   : > { %v489_v20 = vsel %vm488_vm2, %v484_v19, -inf }
 0x121   : > { %490 = vmax.xlane.f32.xlu1 %v489_v20 }
 0x127   : > { %v486_v21 = vpop.f32.mrf.mxu3 }
 0x194   : > { %v491_v24 = vpop.xlane.xlu1 %490 }
 0x195   : > { %v492_v25 = vsub.f32 %v484_v19, %v491_v24 }
 0x197   : > { %v493_v26 = vmul.f32 1.442695, %v492_v25 }
 0x199   : > { %726 = vpow2.f32 %v493_v26 }
 0x19f   : > { %v727_v27 = vpop.eup %726 }
 0x1a0   : > { %v495_v28 = vsel %vm488_vm2, %v727_v27, 0.0 }
 0x1a1   : > { %496 = vadd.xlane.f32.xlu1 %v495_v28 }
 0x1ba   : > { %585 = vperm.xlu1 %725, %v581_v54  }
 0x214   : > { %v497_v35 = vpop.xlane.xlu1 %496 }
 0x215   : > { %728 = vrcp.f32 %v497_v35  ;;  %v509_v39 = vand.u32 2147483648, %v497_v35  ;;  %v507_v41 = vand.u32 2147483647, %v497_v35  ;;  %vm503_vm5 = vweird.f32 %v497_v35 }
 0x217   : > { %v510_v43 = vor.u32 1.1754944e-38, %v509_v39  ;;  %vm508_vm7 = vcmp.eq.f32.partialorder %v507_v41, 8.507059e+37 }
 0x21b   : > { %v729_v36 = vpop.eup %728 }
 0x21c   : > { %v499_v37 = vmul.f32 %v729_v36, %v497_v35  ;;  %vm504_vm4 = vweird.f32 %v729_v36 }
 0x21d   : > { %vm505_vm6 = vmor %vm503_vm5, %vm504_vm4 }
 0x21e   : > { %v500_v38 = vsub.f32 1.0, %v499_v37 }
 0x220   : > { %v501_v40 = vmul.f32 %v729_v36, %v500_v38 }
 0x222   : > { %v502_v42 = vadd.f32 %v729_v36, %v501_v40 }
 0x224   : > { %v506_v44 = vsel %vm505_vm6, %v729_v36, %v502_v42 }
 0x225   : > { %v511_v45 = vsel %vm508_vm7, %v510_v43, %v506_v44 }
 0x226   : > { %v512_v46 = vmul.f32 %v727_v27, %v511_v45 }
 0x228   : > { %v513_v47 = vpack.c.bf16 %v512_v46, %v512_v46 }
 0x22a   : > { %515 = vxpose.xlu2.c.b16.start.end [1/1] (short) (narrow) %v513_v47, 16 }
 0x22c   : > { %v586_v63 = vpop.permute.xlu1 %585 }
 0x2cb   : > { %v523_v48 = vpop.trf.xlu2 }
 0x2cc   : > { %701 = vmatmul.msk.bf16.vlgmr.msrb.gmra.mxu0 %vm488_vm2, %v523_v48 }
 0x349   : > { %v547_v49 = vpop.f32.mrf.mxu0 }
 0x34a   : > { %v552_v50 = vpack.c.bf16 %v547_v49, %v547_v49 }
 0x34c   : > { %v563_v51 = vsel %vm534_vm3, %v552_v50, 0 }
 0x34d   : > { %572 = vmatpush.bf16.msrb.mxu1 %v563_v51 }
 0x350   : > { %702 = vmatmul.msk.bf16.vlgmr.msrb.gmra.mxu1 %vm488_vm2, %v551_v52 }
 0x351   : > { %v549_v53 = vpop.f32.mrf.mxu0 }
 0x3cd   : > { %v574_v56 = vpop.f32.mrf.mxu1 }
 0x3ce   : > { %v575_v57 = vadd.f32 %v574_v56, %v557_v55 }
 0x3d0   : > { %v580_v58 = vpack.c.bf16 %v575_v57, %v575_v57 }
 0x3d2   : > { %v602_v59 = vsel %vm534_vm3, %v580_v58, 0 }
 0x3d3   : > { %611 = vmatpush.bf16.msrb.mxu2 %v602_v59 }
 0x3d5   : > { %v576_v61 = vpop.f32.mrf.mxu1 }
 0x3d6   : > { %707 = vmatmul.msk.bf16.vlgmr.msrb.gmra.mxu2 %vm488_vm2, %v713_v60 }
 0x459   : > { %v613_v1 = vpop.f32.mrf.mxu2 }
 0x45a   : > { %v614_v2 = vadd.f32 %v613_v1, %v586_v63 }
 0x45c   : > { %v620_v3 = vadd.f32 %v618_v0, %v614_v2 }
 0x45e   : > { %v622_v4 = vmax.f32 %v620_v3, 0.0 }
 0x460   : > { %v624_v6 = vpack.c.bf16 %v622_v4, %v622_v4 }
 0x461   : > { %v615_v8 = vpop.f32.mrf.mxu2 }
 0x462   : > { %v616_v9 = vadd.f32 %v615_v8, %v591_v7  ;;  %627 = vst.msk [vmem:[%s386_s13] sm:$0xf] %vm626_vm8, %v624_v6 }
 0x464   : > { %v621_v10 = vadd.f32 %v619_v5, %v616_v9 }
 0x466   : > { %v623_v11 = vmax.f32 %v621_v10, 0.0 }
 0x468   : > { %v625_v12 = vpack.c.bf16 %v623_v11, %v623_v11 }
 0x46a   : > { %628 = vst.msk [vmem:[%s386_s13 + $0x4] sm:$0xf] %vm626_vm8, %v625_v12 }
 0x46b PF: > { %s21_s17 = sadd.s32 1, %s736_s17  }
 0x46c   : > { %p18_p4 = scmp.ge.s32.totalorder %s21_s17, 4  }
 0x46e   :  { %20 = sbr.rel (!%p18_p4) target bundleno = 1 (0x1), region = 94 }

// kernel: dualgcn_head_forward.17
= control target key start
LH: loop header
LB: loop body
LE: loop exit
PB: predicated region body
PF: predicated region fallthrough
CT: control target
= control target key end

     0   :  { %vm54_vm0 = vcmask 1040384   ;;  %vm41_vm1 = vcmask 15360   ;;  %vm95_vm2 = vcmask 125952   ;;  %s197_s1 = inlined_call_operand.vmem [shape: bf16[2,16], index: 1, kind: input, shape index: {}]   ;;  %s198_s0 = inlined_call_operand.vmem [shape: bf16[64,2], index: 0, kind: input, shape index: {}]   ;;  %s199_s2 = inlined_call_operand.vmem [shape: bf16[64,16], index: 2, kind: output, shape index: {}]  }
   0x1   :  { %v20_v0 = vld [vmem:[%s197_s1] sm:$0x1]  ;;  %v129_v3 = vld [vmem:[%s198_s0 + $0x8] sm:$0xff]  ;;  %v130_v4 = vld [vmem:[%s198_s0 + $0x10] sm:$0xff] }
   0x2   :  { %v56_v1 = vsel %vm54_vm0, %v20_v0, 0  ;;  %v128_v2 = vld [vmem:[%s198_s0] sm:$0xff]  ;;  %v131_v5 = vld [vmem:[%s198_s0 + $0x18] sm:$0xff] }
   0x3   :  { %65 = vmatpush.bf16.msra.mxu0 %v56_v1  ;;  %132 = vmatpush.bf16.msra.mxu1 %v56_v1 }
   0x4   :  { %133 = vmatpush.bf16.msra.mxu2 %v56_v1  ;;  %134 = vmatpush.bf16.msra.mxu3 %v56_v1 }
   0x6   :  { %124 = vmatmul.msk.bf16.vlgmr.msra.gmra.mxu0 %vm41_vm1, %v128_v2  ;;  %125 = vmatmul.msk.bf16.vlgmr.msra.gmra.mxu1 %vm41_vm1, %v129_v3 }
   0x7   :  { %126 = vmatmul.msk.bf16.vlgmr.msra.gmra.mxu2 %vm41_vm1, %v130_v4  ;;  %127 = vmatmul.msk.bf16.vlgmr.msra.gmra.mxu3 %vm41_vm1, %v131_v5 }
  0x83   :  { %v67_v6 = vpop.f32.mrf.mxu0  ;;  %v72_v7 = vpop.f32.mrf.mxu1 }
  0x84   :  { %v87_v8 = vpack.c.bf16 %v67_v6, %v67_v6  ;;  %v89_v9 = vpack.c.bf16 %v72_v7, %v72_v7 }
  0x86   :  { %96 = vst.msk [vmem:[%s199_s2] sm:$0xf] %vm95_vm2, %v87_v8 }
  0x87   :  { %98 = vst.msk [vmem:[%s199_s2 + $0x8] sm:$0xf] %vm95_vm2, %v89_v9 }
  0x8a   :  { %v77_v10 = vpop.f32.mrf.mxu2  ;;  %v82_v11 = vpop.f32.mrf.mxu3 }
  0x8b   :  { %v91_v12 = vpack.c.bf16 %v77_v10, %v77_v10  ;;  %v93_v13 = vpack.c.bf16 %v82_v11, %v82_v11  ;;  %v69_v14 = vpop.f32.mrf.mxu0  ;;  %v74_v15 = vpop.f32.mrf.mxu1 }
  0x8c   :  { %v88_v16 = vpack.c.bf16 %v69_v14, %v69_v14  ;;  %v90_v17 = vpack.c.bf16 %v74_v15, %v74_v15 }
  0x8d   :  { %100 = vst.msk [vmem:[%s199_s2 + $0x10] sm:$0xf] %vm95_vm2, %v91_v12 }
  0x8e   :  { %102 = vst.msk [vmem:[%s199_s2 + $0x18] sm:$0xf] %vm95_vm2, %v93_v13 }
  0x8f   :  { %97 = vst.msk [vmem:[%s199_s2 + $0x4] sm:$0xf] %vm95_vm2, %v88_v16 }
  0x90   :  { %99 = vst.msk [vmem:[%s199_s2 + $0xc] sm:$0xf] %vm95_vm2, %v90_v17 }
  0x92   :  { %v79_v18 = vpop.f32.mrf.mxu2  ;;  %v84_v19 = vpop.f32.mrf.mxu3 }
  0x93   :  { %v92_v20 = vpack.c.bf16 %v79_v18, %v79_v18  ;;  %v94_v21 = vpack.c.bf16 %v84_v19, %v84_v19 }
  0x95   :  { %101 = vst.msk [vmem:[%s199_s2 + $0x14] sm:$0xf] %vm95_vm2, %v92_v20 }
  0x96   :  { %103 = vst.msk [vmem:[%s199_s2 + $0x1c] sm:$0xf] %vm95_vm2, %v94_v21 }

// kernel: dualgcn_head_forward.20
= control target key start
LH: loop header
LB: loop body
LE: loop exit
PB: predicated region body
PF: predicated region fallthrough
CT: control target
= control target key end

     0   :  { %s662_s18 = smov 0   ;;  %s664_s19 = smov 0   ;;  %s715_s0 = inlined_call_operand.vmem [shape: bf16[16,16], index: 0, kind: input, shape index: {}]   ;;  %s716_s1 = inlined_call_operand.vmem [shape: bf16[16,16], index: 1, kind: input, shape index: {}]   ;;  %s717_s2 = inlined_call_operand.vmem [shape: f32[16,1], index: 2, kind: input, shape index: {}]   ;;  %s718_s3 = inlined_call_operand.vmem [shape: bf16[2,16,256], index: 3, kind: input, shape index: {}]   ;;  %s719_s4 = inlined_call_operand.vmem [shape: bf16[2,16,256], index: 4, kind: input, shape index: {}]   ;;  %s720_s5 = inlined_call_operand.vmem [shape: bf16[2,16,256], index: 5, kind: output, shape index: {}]  }
   0x1   :  { %s666_s20 = smov 0  }
   0x2 LB: > { %s27_s21 = sadd.s32 1, %s625_s19  ;;  %p535_p0 = scmp.ge.s32.totalorder %s629_s20, 1  ;;  %s629_s20 = sphi %s666_s20, %s15_s20   ;;  %s625_s19 = sphi %s664_s19, %s722_s19   ;;  %s621_s18 = sphi %s662_s18, %s721_s18  }
   0x3   : > { %p29_p1 = scmp.ge.s32.totalorder %s27_s21, 2  ;;  %p225_p2 = scmp.lt.s32.totalorder %s629_s20, 3 }
   0x5   : > { %s724_s21 = smov (%p29_p1, %s27_s21), 0  ;;  %p226_p3 = pnand %p535_p0, %p225_p2 }
   0x6   : > { %p271_p4 = scmp.lt.s32.totalorder (!%p226_p3), %s621_s18, 1 }
   0x7   : > { %229 = sbr.rel (%p226_p3) target bundleno = 168 (0xa8), region = 40 }
   0xc   : > { %v301_v0 = vld [vmem:[%s717_s2] sm:$0xff]  ;;  %v631_v1 = vmov 0   ;;  %s726_s18 = smov (!%p271_p4, %s621_s18), 1  ;;  %v302_v14 = vld [vmem:[%s717_s2 + $0x8] sm:$0xff]  ;;  %vm322_vm0 = vcmask 130048  }
   0xd   : > { %606 = vset.pattern.permute.xlu0 %v631_v1  ;;  %s683_s24 = sshll.u32 %s726_s18, 4  ;;  %v575_v5 = vld [vmem:[%s715_s0] sm:$0xff] }
   0xe   : > { %356 = vperm.xlu0 %606, %v301_v0   ;;  %s278_s27 = scalar_lea.vmem %s718_s3, %s683_s24  ;;  %s288_s30 = scalar_lea.vmem %s719_s4, %s683_s24  ;;  %v578_v16 = vld [vmem:[%s716_s1] sm:$0xff] }
   0xf   : > { %v548_v2 = vld [vmem:[%s278_s27] sm:$0xf]  ;;  %v577_v3 = vld [vmem:[%s278_s27 + $0x4] sm:$0xf0]  ;;  %v576_v4 = vld [vmem:[%s278_s27 + $0x4] sm:$0xf]  ;;  %s298_s14 = scalar_lea.vmem %s720_s5, %s683_s24 }
  0x10   : > { %v549_v6 = vor.u32 %v577_v3, %v548_v2  ;;  %v550_v7 = vld [vmem:[%s278_s27 + $0x8] sm:$0xf0]  ;;  %v562_v8 = vld [vmem:[%s288_s30] sm:$0xf]  ;;  %v580_v9 = vld [vmem:[%s288_s30 + $0x4] sm:$0xf0] }
  0x11   : > { %v553_v10 = vor.u32 %v576_v4, %v550_v7  ;;  %v563_v11 = vor.u32 %v580_v9, %v562_v8  ;;  %v579_v12 = vld [vmem:[%s288_s30 + $0x4] sm:$0xf]  ;;  %v564_v13 = vld [vmem:[%s288_s30 + $0x8] sm:$0xf0] }
  0x12   : > { %333 = vmatpush.bf16.msra.mxu0 %v549_v6  ;;  %v567_v15 = vor.u32 %v579_v12, %v564_v13 }
  0x13   : > { %347 = vmatpush.bf16.msra.mxu1 %v553_v10  ;;  %397 = vmatpush.bf16.msra.mxu2 %v563_v11 }
  0x14   : > { %411 = vmatpush.bf16.msra.mxu3 %v567_v15 }
  0x15   : > { %554 = vmatmul.msk.bf16.vlgmr.msra.gmra.mxu0 %vm322_vm0, %v575_v5 }
  0x16   : > { %361 = vperm.xlu0 %606, %v302_v14   ;;  %555 = vmatmul.msk.bf16.vlgmr.msra.gmra.mxu1 %vm322_vm0, %v575_v5 }
  0x17   : > { %568 = vmatmul.msk.bf16.vlgmr.msra.gmra.mxu2 %vm322_vm0, %v578_v16  ;;  %569 = vmatmul.msk.bf16.vlgmr.msra.gmra.mxu3 %vm322_vm0, %v578_v16 }
  0x80   : > { %v357_v19 = vpop.permute.xlu0 %356 }
  0x88   : > { %v362_v29 = vpop.permute.xlu0 %361 }
  0x92   : > { %v335_v17 = vpop.f32.mrf.mxu0 }
  0x93   : > { %v349_v18 = vpop.f32.mrf.mxu1  ;;  %v364_v20 = vadd.f32 %v357_v19, %v335_v17 }
  0x94   : > { %v365_v21 = vadd.f32 %v357_v19, %v349_v18 }
  0x9a   : > { %v399_v22 = vpop.f32.mrf.mxu2  ;;  %v413_v24 = vpop.f32.mrf.mxu3 }
  0x9b   : > { %v418_v23 = vadd.f32 %v399_v22, %v364_v20  ;;  %v419_v25 = vadd.f32 %v413_v24, %v365_v21  ;;  %v337_v27 = vpop.f32.mrf.mxu0  ;;  %v351_v28 = vpop.f32.mrf.mxu1 }
  0x9c   : > { %v366_v30 = vadd.f32 %v362_v29, %v337_v27  ;;  %v367_v31 = vadd.f32 %v362_v29, %v351_v28 }
  0x9d   : > { %v422_v26 = vpack.c.bf16 %v419_v25, %v418_v23 }
  0x9f   : > { %424 = vst [vmem:[%s298_s14] sm:$0xff] %v422_v26 }
  0xa2   : > { %v401_v32 = vpop.f32.mrf.mxu2  ;;  %v415_v34 = vpop.f32.mrf.mxu3 }
  0xa3   : > { %v420_v33 = vadd.f32 %v401_v32, %v366_v30  ;;  %v421_v35 = vadd.f32 %v415_v34, %v367_v31 }
  0xa5   : > { %v423_v36 = vpack.c.bf16 %v421_v35, %v420_v33 }
  0xa7   : > { %425 = vst [vmem:[%s298_s14 + $0x8] sm:$0xff] %v423_v36 }
  0xa8 PF: > { %s15_s20 = sadd.s32 1, %s629_s20   ;;  %s721_s18 = smov %s625_s19 }
  0xa9   : > { %p12_p5 = scmp.ge.s32.totalorder %s15_s20, 4   ;;  %s722_s19 = smov %s724_s21 }
  0xab   :  { %14 = sbr.rel (!%p12_p5) target bundleno = 2 (0x2), region = 73 }

// kernel: dualgcn_head_forward.19
= control target key start
LH: loop header
LB: loop body
LE: loop exit
PB: predicated region body
PF: predicated region fallthrough
CT: control target
= control target key end

     0   :  { %s845_s17 = smov 0   ;;  %s920_s0 = inlined_call_operand.vmem [shape: bf16[8,16], index: 0, kind: input, shape index: {}]   ;;  %s921_s1 = inlined_call_operand.vmem [shape: f32[8,1], index: 1, kind: input, shape index: {}]   ;;  %s922_s2 = inlined_call_operand.vmem [shape: bf16[4,16], index: 2, kind: input, shape index: {}]   ;;  %s923_s3 = inlined_call_operand.vmem [shape: f32[4,1], index: 3, kind: input, shape index: {}]   ;;  %s924_s4 = inlined_call_operand.vmem [shape: bf16[4,4], index: 4, kind: input, shape index: {}]   ;;  %s925_s5 = inlined_call_operand.vmem [shape: f32[1,4], index: 5, kind: input, shape index: {}]   ;;  %s926_s6 = inlined_call_operand.vmem [shape: bf16[8,8], index: 6, kind: input, shape index: {}]   ;;  %s927_s7 = inlined_call_operand.vmem [shape: f32[8,1], index: 7, kind: input, shape index: {}]   ;;  %s928_s8 = inlined_call_operand.vmem [shape: bf16[16,8], index: 8, kind: input, shape index: {}]   ;;  %s929_s9 = inlined_call_operand.vmem [shape: f32[16,1], index: 9, kind: input, shape index: {}]   ;;  %s930_s10 = inlined_call_operand.vmem [shape: bf16[2,16,256], index: 10, kind: input, shape index: {}]   ;;  %s931_s11 = inlined_call_operand.vmem [shape: bf16[2,16,256], index: 11, kind: output, shape index: {}]  }
   0x1 LB: > { %s725_s18 = sadd.s32 4294967295, %s782_s17   ;;  %p729_p0 = scmp.ge.s32.totalorder %s782_s17, 1  ;;  %s782_s17 = sphi %s845_s17, %s21_s17  }
   0x2   : > { %p337_p1 = scmp.lt.s32.totalorder %s782_s17, 3 }
   0x4   : > { %p338_p2 = pnand %p729_p0, %p337_p1 }
   0x5   : > { %p377_p3 = scmp.lt.s32.totalorder (!%p338_p2), %s725_s18, 1 }
   0x6   : > { %341 = sbr.rel (%p338_p2) target bundleno = 853 (0x355), region = 64 }
   0xb   : > { %v438_v0 = vld [vmem:[%s923_s3] sm:$0xf]  ;;  %s933_s18 = smov (!%p377_p3, %s725_s18), 1  ;;  %v784_v1 = vmov 0   ;;  %vm407_vm0 = vcmask 130048   ;;  %vm509_vm1 = vcmask 31744  }
   0xc   : > { %772 = vset.pattern.permute.xlu0 %v784_v1  ;;  %773 = vset.pattern.permute.xlu1 %v784_v1  ;;  %s758_s21 = sshll.u32 %s933_s18, 4  ;;  %v391_v8 = vld [vmem:[%s921_s1] sm:$0xff]  ;;  %vm563_vm2 = vcmask 1041408   ;;  %vm542_vm3 = vcmask 1043456   ;;  %vm538_vm4 = vcmask 64512   ;;  %v601_v54 = vld [vmem:[%s929_s9 + $0x8] sm:$0xff] }
   0xd   : > { %441 = vperm.xlu0 %772, %v438_v0   ;;  %774 = vset.pattern.permute.xlu2 %v784_v1  ;;  %s864_s24 = scalar_lea.vmem %s930_s10, %s758_s21  ;;  %v437_v9 = vld [vmem:[%s922_s2] sm:$0x3]  ;;  %s386_s13 = scalar_lea.vmem %s931_s11, %s758_s21 }
   0xe   : > { %v736_v2 = vld [vmem:[%s864_s24] sm:$0xf]  ;;  %v761_v3 = vld [vmem:[%s864_s24 + $0x4] sm:$0xf0]  ;;  %v760_v4 = vld [vmem:[%s864_s24 + $0x4] sm:$0xf]  ;;  %609 = vperm.xlu2 %774, %v601_v54  }
   0xf   : > { %v737_v5 = vor.u32 %v761_v3, %v736_v2  ;;  %v738_v6 = vld [vmem:[%s864_s24 + $0x8] sm:$0xf0]  ;;  %v390_v10 = vld [vmem:[%s920_s0] sm:$0xf] }
  0x10   : > { %v741_v7 = vor.u32 %v760_v4, %v738_v6  ;;  %v503_v11 = vld [vmem:[%s924_s4] sm:$0x3] }
  0x11   : > { %454 = vmatpush.bf16.msra.mxu2 %v737_v5  ;;  %418 = vmatpush.bf16.msra.mxu0 %v737_v5  ;;  %v514_v12 = vsel %vm509_vm1, %v503_v11, 0  ;;  %v532_v39 = vld [vmem:[%s927_s7] sm:$0xff] }
  0x12   : > { %467 = vmatpush.bf16.msra.mxu3 %v741_v7  ;;  %431 = vmatpush.bf16.msra.mxu1 %v741_v7  ;;  %v600_v40 = vld [vmem:[%s929_s9] sm:$0xff] }
  0x13   : > { %535 = vperm.xlu1 %773, %v532_v39   ;;  %v775_v41 = vld [vmem:[%s925_s5] ss:$0 sm:$0xff] }
  0x14   : > { %744 = vmatmul.msk.bf16.vlgmr.msra.gmra.mxu2 %vm407_vm0, %v437_v9  ;;  %742 = vmatmul.msk.bf16.vlgmr.msra.gmra.mxu0 %vm407_vm0, %v390_v10  ;;  %v530_v48 = vld [vmem:[%s926_s6] sm:$0xf] }
  0x15   : > { %394 = vperm.xlu0 %772, %v391_v8   ;;  %745 = vmatmul.msk.bf16.vlgmr.msra.gmra.mxu3 %vm407_vm0, %v437_v9  ;;  %v762_v61 = vld [vmem:[%s928_s8] sm:$0xff] }
  0x16   : > { %743 = vmatmul.msk.bf16.vlgmr.msra.gmra.mxu1 %vm407_vm0, %v390_v10  ;;  %523 = vmatpush.bf16.xpose.msrb.mxu2 %v514_v12  ;;  %v388_v0 = vld [vmem:[%s864_s24] sm:$0xff]  ;;  %v389_v10 = vld [vmem:[%s864_s24 + $0x8] sm:$0xff] }
  0x17   : > { %v654_v2 = vunpack.c.l.bf16 %v388_v0  ;;  %v655_v3 = vunpack.c.h.bf16 %v388_v0 }
  0x1b   : > { %604 = vperm.xlu1 %773, %v600_v40  }
  0x7f   : > { %v442_v13 = vpop.permute.xlu0 %441 }
  0x85   : > { %v536_v49 = vpop.permute.xlu1 %535 }
  0x87   : > { %v395_v21 = vpop.permute.xlu0 %394 }
  0x8d   : > { %v605_v1 = vpop.permute.xlu1 %604 }
  0x91   : > { %v420_v14 = vpop.f32.mrf.mxu0 }
  0x92   : > { %v421_v26 = vadd.f32 %v420_v14, %v395_v21 }
  0x93   : > { %v433_v15 = vpop.f32.mrf.mxu1 }
  0x94   : > { %v434_v28 = vadd.f32 %v433_v15, %v395_v21  ;;  %v473_v31 = vpack.c.bf16 %v421_v26, %v421_v26  ;;  %v656_v15 = vunpack.c.l.bf16 %v389_v10 }
  0x96   : > { %v474_v32 = vpack.c.bf16 %v434_v28, %v434_v28 }
  0x97   : > { %v456_v16 = vpop.f32.mrf.mxu2 }
  0x98   : > { %v457_v17 = vadd.f32 %v456_v16, %v442_v13  ;;  %v469_v18 = vpop.f32.mrf.mxu3  ;;  %v657_v16 = vunpack.c.h.bf16 %v389_v10 }
  0x99   : > { %v470_v19 = vadd.f32 %v469_v18, %v442_v13  ;;  %v422_v20 = vpop.f32.mrf.mxu0  ;;  %v610_v13 = vpop.permute.xlu2 %609 }
  0x9a   : > { %v475_v22 = vpack.c.bf16 %v457_v17, %v457_v17 }
  0x9b   : > { %v435_v23 = vpop.f32.mrf.mxu1  ;;  %v476_v24 = vpack.c.bf16 %v470_v19, %v470_v19 }
  0x9c   : > { %v565_v25 = vsel %vm563_vm2, %v475_v22, 0  ;;  %484 = vmatpush.bf16.xpose.msrb.mxu0 %v475_v22 }
  0x9d   : > { %v568_v27 = vsel %vm563_vm2, %v476_v24, 0  ;;  %497 = vmatpush.bf16.xpose.msrb.mxu1 %v476_v24 }
  0x9f   : > { %v458_v29 = vpop.f32.mrf.mxu2 }
  0xa0   : > { %v471_v30 = vpop.f32.mrf.mxu3 }
  0xa3   : > { %485 = vmatmul.bf16.vlgmr.msrb.gmra.mxu0 %v473_v31 }
  0xa4   : > { %577 = vmatpush.bf16.msra.mxu0 %v565_v25  ;;  %498 = vmatmul.bf16.vlgmr.msrb.gmra.mxu1 %v474_v32 }
  0xa5   : > { %590 = vmatpush.bf16.msra.mxu1 %v568_v27 }
 0x120   : > { %v486_v33 = vpop.f32.mrf.mxu0 }
 0x121   : > { %v499_v34 = vpop.f32.mrf.mxu1 }
 0x122   : > { %v500_v35 = vadd.f32 %v499_v34, %v486_v33 }
 0x124   : > { %v504_v36 = vpack.c.bf16 %v500_v35, %v500_v35 }
 0x126   : > { %746 = vmatmul.msk.bf16.vlgmr.msrb.gmra.mxu2 %vm509_vm1, %v504_v36 }
 0x128   : > { %v488_v37 = vpop.f32.mrf.mxu0 }
 0x129   : > { %v501_v38 = vpop.f32.mrf.mxu1 }
 0x1a9   : > { %v525_v42 = vpop.f32.mrf.mxu2 }
 0x1aa   : > { %v526_v43 = vadd.f32 %v775_v41, %v525_v42 }
 0x1ac   : > { %v529_v44 = vadd.f32 %v526_v43, %v500_v35 }
 0x1ae   : > { %v531_v45 = vpack.c.bf16 %v529_v44, %v529_v44 }
 0x1b0   : > { %v544_v46 = vsel %vm542_vm3, %v531_v45, 0 }
 0x1b1   : > { %v527_v47 = vpop.f32.mrf.mxu2  ;;  %553 = vmatpush.bf16.msrb.mxu3 %v544_v46 }
 0x1b4   : > { %747 = vmatmul.msk.bf16.vlgmr.msrb.gmra.mxu3 %vm538_vm4, %v530_v48 }
 0x237   : > { %v555_v50 = vpop.f32.mrf.mxu3 }
 0x238   : > { %v556_v51 = vadd.f32 %v555_v50, %v536_v49 }
 0x23a   : > { %v559_v52 = vpack.c.bf16 %v556_v51, %v556_v51 }
 0x23c   : > { %748 = vmatmul.msk.bf16.vlgmr.msra.gmra.mxu0 %vm509_vm1, %v559_v52  ;;  %749 = vmatmul.msk.bf16.vlgmr.msra.gmra.mxu1 %vm509_vm1, %v559_v52 }
 0x23f   : > { %v557_v53 = vpop.f32.mrf.mxu3 }
 0x2b9   : > { %v579_v55 = vpop.f32.mrf.mxu0  ;;  %v592_v56 = vpop.f32.mrf.mxu1 }
 0x2ba   : > { %v598_v57 = vpack.c.bf16 %v579_v55, %v579_v55  ;;  %v599_v58 = vpack.c.bf16 %v592_v56, %v592_v56 }
 0x2bc   : > { %v621_v59 = vsel %vm542_vm3, %v598_v57, 0  ;;  %v624_v60 = vsel %vm542_vm3, %v599_v58, 0 }
 0x2bd   : > { %633 = vmatpush.bf16.msra.mxu2 %v621_v59  ;;  %647 = vmatpush.bf16.msra.mxu3 %v624_v60 }
 0x2c0   : > { %754 = vmatmul.msk.bf16.vlgmr.msra.gmra.mxu2 %vm538_vm4, %v762_v61  ;;  %755 = vmatmul.msk.bf16.vlgmr.msra.gmra.mxu3 %vm538_vm4, %v762_v61 }
 0x2c1   : > { %v581_v62 = vpop.f32.mrf.mxu0  ;;  %v594_v63 = vpop.f32.mrf.mxu1 }
 0x343   : > { %v635_v4 = vpop.f32.mrf.mxu2  ;;  %v649_v5 = vpop.f32.mrf.mxu3 }
 0x344   : > { %v636_v6 = vadd.f32 %v635_v4, %v605_v1  ;;  %v650_v7 = vadd.f32 %v649_v5, %v605_v1 }
 0x346   : > { %v658_v8 = vadd.f32 %v654_v2, %v636_v6  ;;  %v659_v9 = vadd.f32 %v655_v3, %v650_v7 }
 0x348   : > { %v662_v11 = vmax.f32 %v658_v8, 0.0  ;;  %v663_v12 = vmax.f32 %v659_v9, 0.0 }
 0x34a   : > { %v666_v14 = vpack.c.bf16 %v663_v12, %v662_v11 }
 0x34b   : > { %v637_v17 = vpop.f32.mrf.mxu2  ;;  %v651_v18 = vpop.f32.mrf.mxu3 }
 0x34c   : > { %668 = vst [vmem:[%s386_s13] sm:$0xff] %v666_v14  ;;  %v638_v19 = vadd.f32 %v637_v17, %v610_v13  ;;  %v652_v20 = vadd.f32 %v651_v18, %v610_v13 }
 0x34e   : > { %v660_v21 = vadd.f32 %v656_v15, %v638_v19  ;;  %v661_v22 = vadd.f32 %v657_v16, %v652_v20 }
 0x350   : > { %v664_v23 = vmax.f32 %v660_v21, 0.0  ;;  %v665_v24 = vmax.f32 %v661_v22, 0.0 }
 0x352   : > { %v667_v25 = vpack.c.bf16 %v665_v24, %v664_v23 }
 0x354   : > { %669 = vst [vmem:[%s386_s13 + $0x8] sm:$0xff] %v667_v25 }
 0x355 PF: > { %s21_s17 = sadd.s32 1, %s782_s17  }
 0x356   : > { %p18_p4 = scmp.ge.s32.totalorder %s21_s17, 4  }
 0x358   :  { %20 = sbr.rel (!%p18_p4) target bundleno = 1 (0x1), region = 94 }

// kernel: dualgcn_head_forward.18
= control target key start
LH: loop header
LB: loop body
LE: loop exit
PB: predicated region body
PF: predicated region fallthrough
CT: control target
= control target key end

     0   :  { %vm337_vm0 = vcmask 1040384   ;;  %vm240_vm1 = vcmask 15360   ;;  %vm830_vm2 = vcmask 125952   ;;  %s1756_s1 = inlined_call_operand.vmem [shape: bf16[2,16], index: 1, kind: input, shape index: {}]   ;;  %s1757_s0 = inlined_call_operand.vmem [shape: bf16[512,2], index: 0, kind: input, shape index: {}]   ;;  %s1758_s2 = inlined_call_operand.vmem [shape: bf16[512,16], index: 2, kind: input, shape index: {}]   ;;  %s1759_s3 = inlined_call_operand.vmem [shape: bf16[512,16], index: 3, kind: output, shape index: {}]  }
   0x1   :  { %v79_v0 = vld [vmem:[%s1756_s1] sm:$0x1]  ;;  %v1060_v6 = vld [vmem:[%s1757_s0 + $0x8] sm:$0xff]  ;;  %v1061_v10 = vld [vmem:[%s1757_s0 + $0x10] sm:$0xff] }
   0x2   :  { %v339_v1 = vsel %vm337_vm0, %v79_v0, 0  ;;  %v1059_v2 = vld [vmem:[%s1757_s0] sm:$0xff]  ;;  %v1068_v7 = vld [vmem:[%s1757_s0 + $0x48] sm:$0xff]  ;;  %v1069_v11 = vld [vmem:[%s1757_s0 + $0x50] sm:$0xff] }
   0x3   :  { %v1067_v3 = vld [vmem:[%s1757_s0 + $0x40] sm:$0xff]  ;;  %348 = vmatpush.bf16.msra.mxu0 %v339_v1  ;;  %1250 = vmatpush.bf16.msra.mxu1 %v339_v1  ;;  %v1076_v8 = vld [vmem:[%s1757_s0 + $0x88] sm:$0xff]  ;;  %v1077_v12 = vld [vmem:[%s1757_s0 + $0x90] sm:$0xff] }
   0x4   :  { %v1075_v4 = vld [vmem:[%s1757_s0 + $0x80] sm:$0xff]  ;;  %1251 = vmatpush.bf16.msra.mxu2 %v339_v1  ;;  %1252 = vmatpush.bf16.msra.mxu3 %v339_v1  ;;  %v1084_v9 = vld [vmem:[%s1757_s0 + $0xc8] sm:$0xff]  ;;  %v1085_v13 = vld [vmem:[%s1757_s0 + $0xd0] sm:$0xff] }
   0x5   :  { %v1083_v5 = vld [vmem:[%s1757_s0 + $0xc0] sm:$0xff]  ;;  %v1062_v14 = vld [vmem:[%s1757_s0 + $0x18] sm:$0xff]  ;;  %v1064_v22 = vld [vmem:[%s1757_s0 + $0x28] sm:$0xff] }
   0x6   :  { %1027 = vmatmul.msk.bf16.vlgmr.msra.gmra.mxu0 %vm240_vm1, %v1059_v2  ;;  %1035 = vmatmul.msk.bf16.vlgmr.msra.gmra.mxu1 %vm240_vm1, %v1067_v3  ;;  %v1070_v15 = vld [vmem:[%s1757_s0 + $0x58] sm:$0xff]  ;;  %v1063_v18 = vld [vmem:[%s1757_s0 + $0x20] sm:$0xff]  ;;  %v1072_v23 = vld [vmem:[%s1757_s0 + $0x68] sm:$0xff] }
   0x7   :  { %1043 = vmatmul.msk.bf16.vlgmr.msra.gmra.mxu2 %vm240_vm1, %v1075_v4  ;;  %1051 = vmatmul.msk.bf16.vlgmr.msra.gmra.mxu3 %vm240_vm1, %v1083_v5  ;;  %v1078_v16 = vld [vmem:[%s1757_s0 + $0x98] sm:$0xff]  ;;  %v1071_v19 = vld [vmem:[%s1757_s0 + $0x60] sm:$0xff]  ;;  %v1080_v24 = vld [vmem:[%s1757_s0 + $0xa8] sm:$0xff] }
   0x8   :  { %v1086_v17 = vld [vmem:[%s1757_s0 + $0xd8] sm:$0xff]  ;;  %v1079_v20 = vld [vmem:[%s1757_s0 + $0xa0] sm:$0xff]  ;;  %v1088_v25 = vld [vmem:[%s1757_s0 + $0xe8] sm:$0xff] }
   0x9   :  { %v1087_v21 = vld [vmem:[%s1757_s0 + $0xe0] sm:$0xff]  ;;  %v1065_v26 = vld [vmem:[%s1757_s0 + $0x30] sm:$0xff]  ;;  %v1066_v30 = vld [vmem:[%s1757_s0 + $0x38] sm:$0xff] }
   0xa   :  { %v1073_v27 = vld [vmem:[%s1757_s0 + $0x70] sm:$0xff]  ;;  %v1074_v31 = vld [vmem:[%s1757_s0 + $0x78] sm:$0xff]  ;;  %v1092_v34 = vld [vmem:[%s1758_s2] sm:$0xff]  }
   0xb   :  { %v1081_v28 = vld [vmem:[%s1757_s0 + $0xb0] sm:$0xff]  ;;  %v1082_v32 = vld [vmem:[%s1757_s0 + $0xb8] sm:$0xff]  ;;  %v1226_v35 = vld [vmem:[%s1758_s2 + $0x40] sm:$0xff]   ;;  %v1093_v36 = vunpack.c.l.bf16 %v1092_v34  ;;  %v1094_v50 = vunpack.c.h.bf16 %v1092_v34 }
   0xc   :  { %v1089_v29 = vld [vmem:[%s1757_s0 + $0xf0] sm:$0xff]  ;;  %v1090_v33 = vld [vmem:[%s1757_s0 + $0xf8] sm:$0xff]  ;;  %v1125_v37 = vunpack.c.l.bf16 %v1226_v35  ;;  %v1234_v42 = vld [vmem:[%s1758_s2 + $0x80] sm:$0xff]   ;;  %v1126_v51 = vunpack.c.h.bf16 %v1226_v35 }
   0xd   :  { %v1242_v43 = vld [vmem:[%s1758_s2 + $0xc0] sm:$0xff]   ;;  %v1157_v46 = vunpack.c.l.bf16 %v1234_v42  ;;  %v1219_v62 = vld [vmem:[%s1758_s2 + $0x8] sm:$0xff]   ;;  %v1158_v4 = vunpack.c.h.bf16 %v1234_v42  ;;  %v1220_v42 = vld [vmem:[%s1758_s2 + $0x10] sm:$0xff]  }
   0xe   :  { %v1189_v47 = vunpack.c.l.bf16 %v1242_v43  ;;  %v1227_v63 = vld [vmem:[%s1758_s2 + $0x48] sm:$0xff]   ;;  %v1190_v5 = vunpack.c.h.bf16 %v1242_v43  ;;  %v1228_v43 = vld [vmem:[%s1758_s2 + $0x50] sm:$0xff]  }
  0x16   :  { %1028 = vmatmul.msk.bf16.gmra.mxu0 %vm240_vm1, %v1060_v6  ;;  %1036 = vmatmul.msk.bf16.gmra.mxu1 %vm240_vm1, %v1068_v7 }
  0x17   :  { %1044 = vmatmul.msk.bf16.gmra.mxu2 %vm240_vm1, %v1076_v8  ;;  %1052 = vmatmul.msk.bf16.gmra.mxu3 %vm240_vm1, %v1084_v9  ;;  %v1097_v8 = vunpack.c.l.bf16 %v1219_v62  ;;  %v1129_v9 = vunpack.c.l.bf16 %v1227_v63 }
  0x26   :  { %1029 = vmatmul.msk.bf16.gmra.mxu0 %vm240_vm1, %v1061_v10  ;;  %1037 = vmatmul.msk.bf16.gmra.mxu1 %vm240_vm1, %v1069_v11 }
  0x27   :  { %1045 = vmatmul.msk.bf16.gmra.mxu2 %vm240_vm1, %v1077_v12  ;;  %1053 = vmatmul.msk.bf16.gmra.mxu3 %vm240_vm1, %v1085_v13 }
  0x36   :  { %1030 = vmatmul.msk.bf16.gmra.mxu0 %vm240_vm1, %v1062_v14  ;;  %1038 = vmatmul.msk.bf16.gmra.mxu1 %vm240_vm1, %v1070_v15 }
  0x37   :  { %1046 = vmatmul.msk.bf16.gmra.mxu2 %vm240_vm1, %v1078_v16  ;;  %1054 = vmatmul.msk.bf16.gmra.mxu3 %vm240_vm1, %v1086_v17 }
  0x46   :  { %1031 = vmatmul.msk.bf16.gmra.mxu0 %vm240_vm1, %v1063_v18  ;;  %1039 = vmatmul.msk.bf16.gmra.mxu1 %vm240_vm1, %v1071_v19  ;;  %v1235_v18 = vld [vmem:[%s1758_s2 + $0x88] sm:$0xff]  }
  0x47   :  { %1047 = vmatmul.msk.bf16.gmra.mxu2 %vm240_vm1, %v1079_v20  ;;  %1055 = vmatmul.msk.bf16.gmra.mxu3 %vm240_vm1, %v1087_v21  ;;  %v1243_v19 = vld [vmem:[%s1758_s2 + $0xc8] sm:$0xff]  }
  0x56   :  { %1032 = vmatmul.msk.bf16.gmra.mxu0 %vm240_vm1, %v1064_v22  ;;  %1040 = vmatmul.msk.bf16.gmra.mxu1 %vm240_vm1, %v1072_v23 }
  0x57   :  { %1048 = vmatmul.msk.bf16.gmra.mxu2 %vm240_vm1, %v1080_v24  ;;  %1056 = vmatmul.msk.bf16.gmra.mxu3 %vm240_vm1, %v1088_v25 }
  0x66   :  { %1033 = vmatmul.msk.bf16.gmra.mxu0 %vm240_vm1, %v1065_v26  ;;  %1041 = vmatmul.msk.bf16.gmra.mxu1 %vm240_vm1, %v1073_v27  ;;  %v1161_v26 = vunpack.c.l.bf16 %v1235_v18  ;;  %v1193_v27 = vunpack.c.l.bf16 %v1243_v19 }
  0x67   :  { %1049 = vmatmul.msk.bf16.gmra.mxu2 %vm240_vm1, %v1081_v28  ;;  %1057 = vmatmul.msk.bf16.gmra.mxu3 %vm240_vm1, %v1089_v29 }
  0x76   :  { %1034 = vmatmul.msk.bf16.gmra.mxu0 %vm240_vm1, %v1066_v30  ;;  %1042 = vmatmul.msk.bf16.gmra.mxu1 %vm240_vm1, %v1074_v31  ;;  %v1098_v30 = vunpack.c.h.bf16 %v1219_v62  ;;  %v1130_v31 = vunpack.c.h.bf16 %v1227_v63  ;;  %v1236_v62 = vld [vmem:[%s1758_s2 + $0x90] sm:$0xff]  }
  0x77   :  { %1050 = vmatmul.msk.bf16.gmra.mxu2 %vm240_vm1, %v1082_v32  ;;  %1058 = vmatmul.msk.bf16.gmra.mxu3 %vm240_vm1, %v1090_v33  ;;  %v1244_v63 = vld [vmem:[%s1758_s2 + $0xd0] sm:$0xff]  }
  0x83   :  { %v350_v38 = vpop.f32.mrf.mxu0  ;;  %v390_v39 = vpop.f32.mrf.mxu1 }
  0x84   :  { %v638_v40 = vmul.f32 %v1093_v36, %v350_v38  ;;  %v654_v41 = vmul.f32 %v1125_v37, %v390_v39 }
  0x86   :  { %v702_v44 = vadd.f32 %v1093_v36, %v638_v40  ;;  %v718_v45 = vadd.f32 %v1125_v37, %v654_v41 }
  0x88   :  { %v766_v48 = vpack.c.bf16 %v702_v44, %v702_v44  ;;  %v782_v49 = vpack.c.bf16 %v718_v45, %v718_v45 }
  0x8a   :  { %831 = vst.msk [vmem:[%s1759_s3] sm:$0xf] %vm830_vm2, %v766_v48  ;;  %v430_v52 = vpop.f32.mrf.mxu2  ;;  %v470_v53 = vpop.f32.mrf.mxu3  ;;  %v1162_v48 = vunpack.c.h.bf16 %v1235_v18 }
  0x8b   :  { %847 = vst.msk [vmem:[%s1759_s3 + $0x40] sm:$0xf] %vm830_vm2, %v782_v49  ;;  %v670_v54 = vmul.f32 %v1157_v46, %v430_v52  ;;  %v686_v55 = vmul.f32 %v1189_v47, %v470_v53  ;;  %v352_v56 = vpop.f32.mrf.mxu0  ;;  %v392_v57 = vpop.f32.mrf.mxu1  ;;  %v1194_v49 = vunpack.c.h.bf16 %v1243_v19  ;;  %v1101_v52 = vunpack.c.l.bf16 %v1220_v42 }
  0x8c   :  { %v639_v58 = vmul.f32 %v1094_v50, %v352_v56  ;;  %v655_v59 = vmul.f32 %v1126_v51, %v392_v57  ;;  %v1133_v53 = vunpack.c.l.bf16 %v1228_v43 }
  0x8d   :  { %v734_v60 = vadd.f32 %v1157_v46, %v670_v54  ;;  %v750_v61 = vadd.f32 %v1189_v47, %v686_v55 }
  0x8e   :  { %v703_v0 = vadd.f32 %v1094_v50, %v639_v58  ;;  %v719_v1 = vadd.f32 %v1126_v51, %v655_v59 }
  0x8f   :  { %v798_v2 = vpack.c.bf16 %v734_v60, %v734_v60  ;;  %v814_v3 = vpack.c.bf16 %v750_v61, %v750_v61 }
  0x90   :  { %v767_v6 = vpack.c.bf16 %v703_v0, %v703_v0  ;;  %v783_v7 = vpack.c.bf16 %v719_v1, %v719_v1 }
  0x91   :  { %863 = vst.msk [vmem:[%s1759_s3 + $0x80] sm:$0xf] %vm830_vm2, %v798_v2 }
  0x92   :  { %879 = vst.msk [vmem:[%s1759_s3 + $0xc0] sm:$0xf] %vm830_vm2, %v814_v3  ;;  %v432_v10 = vpop.f32.mrf.mxu2  ;;  %v472_v11 = vpop.f32.mrf.mxu3 }
  0x93   :  { %832 = vst.msk [vmem:[%s1759_s3 + $0x4] sm:$0xf] %vm830_vm2, %v767_v6  ;;  %v671_v12 = vmul.f32 %v1158_v4, %v432_v10  ;;  %v687_v13 = vmul.f32 %v1190_v5, %v472_v11  ;;  %v355_v14 = vpop.f32.mrf.mxu0  ;;  %v395_v15 = vpop.f32.mrf.mxu1  ;;  %v1165_v6 = vunpack.c.l.bf16 %v1236_v62  ;;  %v1102_v10 = vunpack.c.h.bf16 %v1220_v42  ;;  %v1237_v42 = vld [vmem:[%s1758_s2 + $0x98] sm:$0xff]  }
  0x94   :  { %848 = vst.msk [vmem:[%s1759_s3 + $0x44] sm:$0xf] %vm830_vm2, %v783_v7  ;;  %v640_v16 = vmul.f32 %v1097_v8, %v355_v14  ;;  %v656_v17 = vmul.f32 %v1129_v9, %v395_v15  ;;  %v1197_v7 = vunpack.c.l.bf16 %v1244_v63  ;;  %v1134_v11 = vunpack.c.h.bf16 %v1228_v43  ;;  %v1245_v43 = vld [vmem:[%s1758_s2 + $0xd8] sm:$0xff]  }
  0x95   :  { %v735_v20 = vadd.f32 %v1158_v4, %v671_v12  ;;  %v751_v21 = vadd.f32 %v1190_v5, %v687_v13 }
  0x96   :  { %v704_v22 = vadd.f32 %v1097_v8, %v640_v16  ;;  %v720_v23 = vadd.f32 %v1129_v9, %v656_v17 }
  0x97   :  { %v799_v24 = vpack.c.bf16 %v735_v20, %v735_v20  ;;  %v815_v25 = vpack.c.bf16 %v751_v21, %v751_v21 }
  0x98   :  { %v768_v28 = vpack.c.bf16 %v704_v22, %v704_v22  ;;  %v784_v29 = vpack.c.bf16 %v720_v23, %v720_v23  ;;  %v1221_v22 = vld [vmem:[%s1758_s2 + $0x18] sm:$0xff]  }
  0x99   :  { %864 = vst.msk [vmem:[%s1759_s3 + $0x84] sm:$0xf] %vm830_vm2, %v799_v24  ;;  %v1229_v23 = vld [vmem:[%s1758_s2 + $0x58] sm:$0xff]  }
  0x9a   :  { %880 = vst.msk [vmem:[%s1759_s3 + $0xc4] sm:$0xf] %vm830_vm2, %v815_v25  ;;  %v435_v32 = vpop.f32.mrf.mxu2  ;;  %v475_v33 = vpop.f32.mrf.mxu3 }
  0x9b   :  { %833 = vst.msk [vmem:[%s1759_s3 + $0x8] sm:$0xf] %vm830_vm2, %v768_v28  ;;  %v672_v34 = vmul.f32 %v1161_v26, %v435_v32  ;;  %v688_v35 = vmul.f32 %v1193_v27, %v475_v33  ;;  %v357_v36 = vpop.f32.mrf.mxu0  ;;  %v397_v37 = vpop.f32.mrf.mxu1  ;;  %v1166_v28 = vunpack.c.h.bf16 %v1236_v62  ;;  %v1105_v32 = vunpack.c.l.bf16 %v1221_v22 }
  0x9c   :  { %849 = vst.msk [vmem:[%s1759_s3 + $0x48] sm:$0xf] %vm830_vm2, %v784_v29  ;;  %v641_v38 = vmul.f32 %v1098_v30, %v357_v36  ;;  %v657_v39 = vmul.f32 %v1130_v31, %v397_v37  ;;  %v1198_v29 = vunpack.c.h.bf16 %v1244_v63  ;;  %v1137_v33 = vunpack.c.l.bf16 %v1229_v23 }
  0x9d   :  { %v736_v40 = vadd.f32 %v1161_v26, %v672_v34  ;;  %v752_v41 = vadd.f32 %v1193_v27, %v688_v35 }
  0x9e   :  { %v705_v44 = vadd.f32 %v1098_v30, %v641_v38  ;;  %v721_v45 = vadd.f32 %v1130_v31, %v657_v39 }
  0x9f   :  { %v800_v46 = vpack.c.bf16 %v736_v40, %v736_v40  ;;  %v816_v47 = vpack.c.bf16 %v752_v41, %v752_v41 }
  0xa0   :  { %v769_v50 = vpack.c.bf16 %v705_v44, %v705_v44  ;;  %v785_v51 = vpack.c.bf16 %v721_v45, %v721_v45 }
  0xa1   :  { %865 = vst.msk [vmem:[%s1759_s3 + $0x88] sm:$0xf] %vm830_vm2, %v800_v46 }
  0xa2   :  { %881 = vst.msk [vmem:[%s1759_s3 + $0xc8] sm:$0xf] %vm830_vm2, %v816_v47  ;;  %v437_v54 = vpop.f32.mrf.mxu2  ;;  %v477_v55 = vpop.f32.mrf.mxu3 }
  0xa3   :  { %834 = vst.msk [vmem:[%s1759_s3 + $0xc] sm:$0xf] %vm830_vm2, %v769_v50  ;;  %v673_v56 = vmul.f32 %v1162_v48, %v437_v54  ;;  %v689_v57 = vmul.f32 %v1194_v49, %v477_v55  ;;  %v360_v58 = vpop.f32.mrf.mxu0  ;;  %v400_v59 = vpop.f32.mrf.mxu1  ;;  %v1169_v50 = vunpack.c.l.bf16 %v1237_v42  ;;  %v1106_v54 = vunpack.c.h.bf16 %v1221_v22  ;;  %v1238_v22 = vld [vmem:[%s1758_s2 + $0xa0] sm:$0xff]  }
  0xa4   :  { %850 = vst.msk [vmem:[%s1759_s3 + $0x4c] sm:$0xf] %vm830_vm2, %v785_v51  ;;  %v642_v60 = vmul.f32 %v1101_v52, %v360_v58  ;;  %v658_v61 = vmul.f32 %v1133_v53, %v400_v59  ;;  %v1201_v51 = vunpack.c.l.bf16 %v1245_v43  ;;  %v1138_v55 = vunpack.c.h.bf16 %v1229_v23  ;;  %v1246_v23 = vld [vmem:[%s1758_s2 + $0xe0] sm:$0xff]  }
  0xa5   :  { %v737_v0 = vadd.f32 %v1162_v48, %v673_v56  ;;  %v753_v1 = vadd.f32 %v1194_v49, %v689_v57 }
  0xa6   :  { %v706_v2 = vadd.f32 %v1101_v52, %v642_v60  ;;  %v722_v3 = vadd.f32 %v1133_v53, %v658_v61 }
  0xa7   :  { %v801_v4 = vpack.c.bf16 %v737_v0, %v737_v0  ;;  %v817_v5 = vpack.c.bf16 %v753_v1, %v753_v1 }
  0xa8   :  { %v770_v8 = vpack.c.bf16 %v706_v2, %v706_v2  ;;  %v786_v9 = vpack.c.bf16 %v722_v3, %v722_v3  ;;  %v1222_v2 = vld [vmem:[%s1758_s2 + $0x20] sm:$0xff]  }
  0xa9   :  { %866 = vst.msk [vmem:[%s1759_s3 + $0x8c] sm:$0xf] %vm830_vm2, %v801_v4  ;;  %v1230_v3 = vld [vmem:[%s1758_s2 + $0x60] sm:$0xff]  }
  0xaa   :  { %882 = vst.msk [vmem:[%s1759_s3 + $0xcc] sm:$0xf] %vm830_vm2, %v817_v5  ;;  %v440_v12 = vpop.f32.mrf.mxu2  ;;  %v480_v13 = vpop.f32.mrf.mxu3 }
  0xab   :  { %835 = vst.msk [vmem:[%s1759_s3 + $0x10] sm:$0xf] %vm830_vm2, %v770_v8  ;;  %v674_v14 = vmul.f32 %v1165_v6, %v440_v12  ;;  %v690_v15 = vmul.f32 %v1197_v7, %v480_v13  ;;  %v362_v16 = vpop.f32.mrf.mxu0  ;;  %v402_v17 = vpop.f32.mrf.mxu1  ;;  %v1170_v8 = vunpack.c.h.bf16 %v1237_v42  ;;  %v1109_v12 = vunpack.c.l.bf16 %v1222_v2 }
  0xac   :  { %851 = vst.msk [vmem:[%s1759_s3 + $0x50] sm:$0xf] %vm830_vm2, %v786_v9  ;;  %v643_v18 = vmul.f32 %v1102_v10, %v362_v16  ;;  %v659_v19 = vmul.f32 %v1134_v11, %v402_v17  ;;  %v1202_v9 = vunpack.c.h.bf16 %v1245_v43  ;;  %v1141_v13 = vunpack.c.l.bf16 %v1230_v3 }
  0xad   :  { %v738_v20 = vadd.f32 %v1165_v6, %v674_v14  ;;  %v754_v21 = vadd.f32 %v1197_v7, %v690_v15 }
  0xae   :  { %v707_v24 = vadd.f32 %v1102_v10, %v643_v18  ;;  %v723_v25 = vadd.f32 %v1134_v11, %v659_v19 }
  0xaf   :  { %v802_v26 = vpack.c.bf16 %v738_v20, %v738_v20  ;;  %v818_v27 = vpack.c.bf16 %v754_v21, %v754_v21 }
  0xb0   :  { %v771_v30 = vpack.c.bf16 %v707_v24, %v707_v24  ;;  %v787_v31 = vpack.c.bf16 %v723_v25, %v723_v25 }
  0xb1   :  { %867 = vst.msk [vmem:[%s1759_s3 + $0x90] sm:$0xf] %vm830_vm2, %v802_v26 }
  0xb2   :  { %883 = vst.msk [vmem:[%s1759_s3 + $0xd0] sm:$0xf] %vm830_vm2, %v818_v27  ;;  %v442_v34 = vpop.f32.mrf.mxu2  ;;  %v482_v35 = vpop.f32.mrf.mxu3 }
  0xb3   :  { %836 = vst.msk [vmem:[%s1759_s3 + $0x14] sm:$0xf] %vm830_vm2, %v771_v30  ;;  %v675_v36 = vmul.f32 %v1166_v28, %v442_v34  ;;  %v691_v37 = vmul.f32 %v1198_v29, %v482_v35  ;;  %v365_v38 = vpop.f32.mrf.mxu0  ;;  %v405_v39 = vpop.f32.mrf.mxu1  ;;  %v1173_v30 = vunpack.c.l.bf16 %v1238_v22  ;;  %v1110_v34 = vunpack.c.h.bf16 %v1222_v2  ;;  %v1239_v2 = vld [vmem:[%s1758_s2 + $0xa8] sm:$0xff]  }
  0xb4   :  { %852 = vst.msk [vmem:[%s1759_s3 + $0x54] sm:$0xf] %vm830_vm2, %v787_v31  ;;  %v644_v40 = vmul.f32 %v1105_v32, %v365_v38  ;;  %v660_v41 = vmul.f32 %v1137_v33, %v405_v39  ;;  %v1205_v31 = vunpack.c.l.bf16 %v1246_v23  ;;  %v1142_v35 = vunpack.c.h.bf16 %v1230_v3  ;;  %v1247_v3 = vld [vmem:[%s1758_s2 + $0xe8] sm:$0xff]  }
  0xb5   :  { %v739_v44 = vadd.f32 %v1166_v28, %v675_v36  ;;  %v755_v45 = vadd.f32 %v1198_v29, %v691_v37 }
  0xb6   :  { %v708_v46 = vadd.f32 %v1105_v32, %v644_v40  ;;  %v724_v47 = vadd.f32 %v1137_v33, %v660_v41 }
  0xb7   :  { %v803_v48 = vpack.c.bf16 %v739_v44, %v739_v44  ;;  %v819_v49 = vpack.c.bf16 %v755_v45, %v755_v45 }
  0xb8   :  { %v772_v52 = vpack.c.bf16 %v708_v46, %v708_v46  ;;  %v788_v53 = vpack.c.bf16 %v724_v47, %v724_v47  ;;  %v1223_v46 = vld [vmem:[%s1758_s2 + $0x28] sm:$0xff]  }
  0xb9   :  { %868 = vst.msk [vmem:[%s1759_s3 + $0x94] sm:$0xf] %vm830_vm2, %v803_v48  ;;  %v1231_v47 = vld [vmem:[%s1758_s2 + $0x68] sm:$0xff]  }
  0xba   :  { %884 = vst.msk [vmem:[%s1759_s3 + $0xd4] sm:$0xf] %vm830_vm2, %v819_v49  ;;  %v445_v56 = vpop.f32.mrf.mxu2  ;;  %v485_v57 = vpop.f32.mrf.mxu3 }
  0xbb   :  { %837 = vst.msk [vmem:[%s1759_s3 + $0x18] sm:$0xf] %vm830_vm2, %v772_v52  ;;  %v676_v58 = vmul.f32 %v1169_v50, %v445_v56  ;;  %v692_v59 = vmul.f32 %v1201_v51, %v485_v57  ;;  %v367_v60 = vpop.f32.mrf.mxu0  ;;  %v407_v61 = vpop.f32.mrf.mxu1  ;;  %v1174_v52 = vunpack.c.h.bf16 %v1238_v22  ;;  %v1113_v56 = vunpack.c.l.bf16 %v1223_v46 }
  0xbc   :  { %853 = vst.msk [vmem:[%s1759_s3 + $0x58] sm:$0xf] %vm830_vm2, %v788_v53  ;;  %v645_v62 = vmul.f32 %v1106_v54, %v367_v60  ;;  %v661_v63 = vmul.f32 %v1138_v55, %v407_v61  ;;  %v1206_v53 = vunpack.c.h.bf16 %v1246_v23  ;;  %v1145_v57 = vunpack.c.l.bf16 %v1231_v47 }
  0xbd   :  { %v740_v0 = vadd.f32 %v1169_v50, %v676_v58  ;;  %v756_v1 = vadd.f32 %v1201_v51, %v692_v59 }
  0xbe   :  { %v709_v4 = vadd.f32 %v1106_v54, %v645_v62  ;;  %v725_v5 = vadd.f32 %v1138_v55, %v661_v63 }
  0xbf   :  { %v804_v6 = vpack.c.bf16 %v740_v0, %v740_v0  ;;  %v820_v7 = vpack.c.bf16 %v756_v1, %v756_v1 }
  0xc0   :  { %v773_v10 = vpack.c.bf16 %v709_v4, %v709_v4  ;;  %v789_v11 = vpack.c.bf16 %v725_v5, %v725_v5 }
  0xc1   :  { %869 = vst.msk [vmem:[%s1759_s3 + $0x98] sm:$0xf] %vm830_vm2, %v804_v6 }
  0xc2   :  { %885 = vst.msk [vmem:[%s1759_s3 + $0xd8] sm:$0xf] %vm830_vm2, %v820_v7  ;;  %v447_v14 = vpop.f32.mrf.mxu2  ;;  %v487_v15 = vpop.f32.mrf.mxu3 }
  0xc3   :  { %838 = vst.msk [vmem:[%s1759_s3 + $0x1c] sm:$0xf] %vm830_vm2, %v773_v10  ;;  %v677_v16 = vmul.f32 %v1170_v8, %v447_v14  ;;  %v693_v17 = vmul.f32 %v1202_v9, %v487_v15  ;;  %v370_v18 = vpop.f32.mrf.mxu0  ;;  %v410_v19 = vpop.f32.mrf.mxu1  ;;  %v1177_v10 = vunpack.c.l.bf16 %v1239_v2  ;;  %v1114_v14 = vunpack.c.h.bf16 %v1223_v46  ;;  %v1240_v46 = vld [vmem:[%s1758_s2 + $0xb0] sm:$0xff]  }
  0xc4   :  { %854 = vst.msk [vmem:[%s1759_s3 + $0x5c] sm:$0xf] %vm830_vm2, %v789_v11  ;;  %v646_v20 = vmul.f32 %v1109_v12, %v370_v18  ;;  %v662_v21 = vmul.f32 %v1141_v13, %v410_v19  ;;  %v1209_v11 = vunpack.c.l.bf16 %v1247_v3  ;;  %v1146_v15 = vunpack.c.h.bf16 %v1231_v47  ;;  %v1248_v47 = vld [vmem:[%s1758_s2 + $0xf0] sm:$0xff]  }
  0xc5   :  { %v741_v24 = vadd.f32 %v1170_v8, %v677_v16  ;;  %v757_v25 = vadd.f32 %v1202_v9, %v693_v17 }
  0xc6   :  { %v710_v26 = vadd.f32 %v1109_v12, %v646_v20  ;;  %v726_v27 = vadd.f32 %v1141_v13, %v662_v21 }
  0xc7   :  { %v805_v28 = vpack.c.bf16 %v741_v24, %v741_v24  ;;  %v821_v29 = vpack.c.bf16 %v757_v25, %v757_v25 }
  0xc8   :  { %v774_v32 = vpack.c.bf16 %v710_v26, %v710_v26  ;;  %v790_v33 = vpack.c.bf16 %v726_v27, %v726_v27  ;;  %v1224_v26 = vld [vmem:[%s1758_s2 + $0x30] sm:$0xff]  }
  0xc9   :  { %870 = vst.msk [vmem:[%s1759_s3 + $0x9c] sm:$0xf] %vm830_vm2, %v805_v28  ;;  %v1232_v27 = vld [vmem:[%s1758_s2 + $0x70] sm:$0xff]  }
  0xca   :  { %886 = vst.msk [vmem:[%s1759_s3 + $0xdc] sm:$0xf] %vm830_vm2, %v821_v29  ;;  %v450_v36 = vpop.f32.mrf.mxu2  ;;  %v490_v37 = vpop.f32.mrf.mxu3 }
  0xcb   :  { %839 = vst.msk [vmem:[%s1759_s3 + $0x20] sm:$0xf] %vm830_vm2, %v774_v32  ;;  %v678_v38 = vmul.f32 %v1173_v30, %v450_v36  ;;  %v694_v39 = vmul.f32 %v1205_v31, %v490_v37  ;;  %v372_v40 = vpop.f32.mrf.mxu0  ;;  %v412_v41 = vpop.f32.mrf.mxu1  ;;  %v1178_v32 = vunpack.c.h.bf16 %v1239_v2  ;;  %v1117_v36 = vunpack.c.l.bf16 %v1224_v26 }
  0xcc   :  { %855 = vst.msk [vmem:[%s1759_s3 + $0x60] sm:$0xf] %vm830_vm2, %v790_v33  ;;  %v647_v42 = vmul.f32 %v1110_v34, %v372_v40  ;;  %v663_v43 = vmul.f32 %v1142_v35, %v412_v41  ;;  %v1210_v33 = vunpack.c.h.bf16 %v1247_v3  ;;  %v1149_v37 = vunpack.c.l.bf16 %v1232_v27 }
  0xcd   :  { %v742_v44 = vadd.f32 %v1173_v30, %v678_v38  ;;  %v758_v45 = vadd.f32 %v1205_v31, %v694_v39 }
  0xce   :  { %v711_v48 = vadd.f32 %v1110_v34, %v647_v42  ;;  %v727_v49 = vadd.f32 %v1142_v35, %v663_v43 }
  0xcf   :  { %v806_v50 = vpack.c.bf16 %v742_v44, %v742_v44  ;;  %v822_v51 = vpack.c.bf16 %v758_v45, %v758_v45 }
  0xd0   :  { %v775_v54 = vpack.c.bf16 %v711_v48, %v711_v48  ;;  %v791_v55 = vpack.c.bf16 %v727_v49, %v727_v49 }
  0xd1   :  { %871 = vst.msk [vmem:[%s1759_s3 + $0xa0] sm:$0xf] %vm830_vm2, %v806_v50 }
  0xd2   :  { %887 = vst.msk [vmem:[%s1759_s3 + $0xe0] sm:$0xf] %vm830_vm2, %v822_v51  ;;  %v452_v58 = vpop.f32.mrf.mxu2  ;;  %v492_v59 = vpop.f32.mrf.mxu3 }
  0xd3   :  { %840 = vst.msk [vmem:[%s1759_s3 + $0x24] sm:$0xf] %vm830_vm2, %v775_v54  ;;  %v679_v60 = vmul.f32 %v1174_v52, %v452_v58  ;;  %v695_v61 = vmul.f32 %v1206_v53, %v492_v59  ;;  %v375_v62 = vpop.f32.mrf.mxu0  ;;  %v415_v63 = vpop.f32.mrf.mxu1  ;;  %v1181_v54 = vunpack.c.l.bf16 %v1240_v46  ;;  %v1118_v58 = vunpack.c.h.bf16 %v1224_v26  ;;  %v1241_v26 = vld [vmem:[%s1758_s2 + $0xb8] sm:$0xff]  }
  0xd4   :  { %856 = vst.msk [vmem:[%s1759_s3 + $0x64] sm:$0xf] %vm830_vm2, %v791_v55  ;;  %v648_v0 = vmul.f32 %v1113_v56, %v375_v62  ;;  %v664_v1 = vmul.f32 %v1145_v57, %v415_v63  ;;  %v1213_v55 = vunpack.c.l.bf16 %v1248_v47  ;;  %v1150_v59 = vunpack.c.h.bf16 %v1232_v27  ;;  %v1249_v27 = vld [vmem:[%s1758_s2 + $0xf8] sm:$0xff]  }
  0xd5   :  { %v743_v4 = vadd.f32 %v1174_v52, %v679_v60  ;;  %v759_v5 = vadd.f32 %v1206_v53, %v695_v61 }
  0xd6   :  { %v712_v6 = vadd.f32 %v1113_v56, %v648_v0  ;;  %v728_v7 = vadd.f32 %v1145_v57, %v664_v1 }
  0xd7   :  { %v807_v8 = vpack.c.bf16 %v743_v4, %v743_v4  ;;  %v823_v9 = vpack.c.bf16 %v759_v5, %v759_v5 }
  0xd8   :  { %v776_v12 = vpack.c.bf16 %v712_v6, %v712_v6  ;;  %v792_v13 = vpack.c.bf16 %v728_v7, %v728_v7  ;;  %v1225_v6 = vld [vmem:[%s1758_s2 + $0x38] sm:$0xff]  }
  0xd9   :  { %872 = vst.msk [vmem:[%s1759_s3 + $0xa4] sm:$0xf] %vm830_vm2, %v807_v8  ;;  %v1233_v7 = vld [vmem:[%s1758_s2 + $0x78] sm:$0xff]  }
  0xda   :  { %888 = vst.msk [vmem:[%s1759_s3 + $0xe4] sm:$0xf] %vm830_vm2, %v823_v9  ;;  %v455_v16 = vpop.f32.mrf.mxu2  ;;  %v495_v17 = vpop.f32.mrf.mxu3 }
  0xdb   :  { %841 = vst.msk [vmem:[%s1759_s3 + $0x28] sm:$0xf] %vm830_vm2, %v776_v12  ;;  %v680_v18 = vmul.f32 %v1177_v10, %v455_v16  ;;  %v696_v19 = vmul.f32 %v1209_v11, %v495_v17  ;;  %v377_v20 = vpop.f32.mrf.mxu0  ;;  %v417_v21 = vpop.f32.mrf.mxu1  ;;  %v1182_v12 = vunpack.c.h.bf16 %v1240_v46  ;;  %v1121_v16 = vunpack.c.l.bf16 %v1225_v6 }
  0xdc   :  { %857 = vst.msk [vmem:[%s1759_s3 + $0x68] sm:$0xf] %vm830_vm2, %v792_v13  ;;  %v649_v22 = vmul.f32 %v1114_v14, %v377_v20  ;;  %v665_v23 = vmul.f32 %v1146_v15, %v417_v21  ;;  %v1214_v13 = vunpack.c.h.bf16 %v1248_v47  ;;  %v1153_v17 = vunpack.c.l.bf16 %v1233_v7 }
  0xdd   :  { %v744_v24 = vadd.f32 %v1177_v10, %v680_v18  ;;  %v760_v25 = vadd.f32 %v1209_v11, %v696_v19 }
  0xde   :  { %v713_v28 = vadd.f32 %v1114_v14, %v649_v22  ;;  %v729_v29 = vadd.f32 %v1146_v15, %v665_v23 }
  0xdf   :  { %v808_v30 = vpack.c.bf16 %v744_v24, %v744_v24  ;;  %v824_v31 = vpack.c.bf16 %v760_v25, %v760_v25 }
  0xe0   :  { %v777_v34 = vpack.c.bf16 %v713_v28, %v713_v28  ;;  %v793_v35 = vpack.c.bf16 %v729_v29, %v729_v29 }
  0xe1   :  { %873 = vst.msk [vmem:[%s1759_s3 + $0xa8] sm:$0xf] %vm830_vm2, %v808_v30 }
  0xe2   :  { %889 = vst.msk [vmem:[%s1759_s3 + $0xe8] sm:$0xf] %vm830_vm2, %v824_v31  ;;  %v457_v38 = vpop.f32.mrf.mxu2  ;;  %v497_v39 = vpop.f32.mrf.mxu3 }
  0xe3   :  { %842 = vst.msk [vmem:[%s1759_s3 + $0x2c] sm:$0xf] %vm830_vm2, %v777_v34  ;;  %v681_v40 = vmul.f32 %v1178_v32, %v457_v38  ;;  %v697_v41 = vmul.f32 %v1210_v33, %v497_v39  ;;  %v380_v42 = vpop.f32.mrf.mxu0  ;;  %v420_v43 = vpop.f32.mrf.mxu1  ;;  %v1185_v34 = vunpack.c.l.bf16 %v1241_v26  ;;  %v1122_v38 = vunpack.c.h.bf16 %v1225_v6 }
  0xe4   :  { %858 = vst.msk [vmem:[%s1759_s3 + $0x6c] sm:$0xf] %vm830_vm2, %v793_v35  ;;  %v650_v44 = vmul.f32 %v1117_v36, %v380_v42  ;;  %v666_v45 = vmul.f32 %v1149_v37, %v420_v43  ;;  %v1217_v35 = vunpack.c.l.bf16 %v1249_v27  ;;  %v1154_v39 = vunpack.c.h.bf16 %v1233_v7 }
  0xe5   :  { %v745_v48 = vadd.f32 %v1178_v32, %v681_v40  ;;  %v761_v49 = vadd.f32 %v1210_v33, %v697_v41 }
  0xe6   :  { %v714_v50 = vadd.f32 %v1117_v36, %v650_v44  ;;  %v730_v51 = vadd.f32 %v1149_v37, %v666_v45 }
  0xe7   :  { %v809_v52 = vpack.c.bf16 %v745_v48, %v745_v48  ;;  %v825_v53 = vpack.c.bf16 %v761_v49, %v761_v49 }
  0xe8   :  { %v778_v56 = vpack.c.bf16 %v714_v50, %v714_v50  ;;  %v794_v57 = vpack.c.bf16 %v730_v51, %v730_v51 }
  0xe9   :  { %874 = vst.msk [vmem:[%s1759_s3 + $0xac] sm:$0xf] %vm830_vm2, %v809_v52 }
  0xea   :  { %890 = vst.msk [vmem:[%s1759_s3 + $0xec] sm:$0xf] %vm830_vm2, %v825_v53  ;;  %v460_v60 = vpop.f32.mrf.mxu2  ;;  %v500_v61 = vpop.f32.mrf.mxu3 }
  0xeb   :  { %843 = vst.msk [vmem:[%s1759_s3 + $0x30] sm:$0xf] %vm830_vm2, %v778_v56  ;;  %v682_v62 = vmul.f32 %v1181_v54, %v460_v60  ;;  %v698_v63 = vmul.f32 %v1213_v55, %v500_v61  ;;  %v382_v0 = vpop.f32.mrf.mxu0  ;;  %v422_v1 = vpop.f32.mrf.mxu1 }
  0xec   :  { %859 = vst.msk [vmem:[%s1759_s3 + $0x70] sm:$0xf] %vm830_vm2, %v794_v57  ;;  %v651_v2 = vmul.f32 %v1118_v58, %v382_v0  ;;  %v667_v3 = vmul.f32 %v1150_v59, %v422_v1 }
  0xed   :  { %v746_v4 = vadd.f32 %v1181_v54, %v682_v62  ;;  %v762_v5 = vadd.f32 %v1213_v55, %v698_v63  ;;  %v1186_v54 = vunpack.c.h.bf16 %v1241_v26  ;;  %v1218_v55 = vunpack.c.h.bf16 %v1249_v27 }
  0xee   :  { %v715_v8 = vadd.f32 %v1118_v58, %v651_v2  ;;  %v731_v9 = vadd.f32 %v1150_v59, %v667_v3 }
  0xef   :  { %v810_v10 = vpack.c.bf16 %v746_v4, %v746_v4  ;;  %v826_v11 = vpack.c.bf16 %v762_v5, %v762_v5 }
  0xf0   :  { %v779_v14 = vpack.c.bf16 %v715_v8, %v715_v8  ;;  %v795_v15 = vpack.c.bf16 %v731_v9, %v731_v9 }
  0xf1   :  { %875 = vst.msk [vmem:[%s1759_s3 + $0xb0] sm:$0xf] %vm830_vm2, %v810_v10 }
  0xf2   :  { %891 = vst.msk [vmem:[%s1759_s3 + $0xf0] sm:$0xf] %vm830_vm2, %v826_v11  ;;  %v462_v18 = vpop.f32.mrf.mxu2  ;;  %v502_v19 = vpop.f32.mrf.mxu3 }
  0xf3   :  { %844 = vst.msk [vmem:[%s1759_s3 + $0x34] sm:$0xf] %vm830_vm2, %v779_v14  ;;  %v683_v20 = vmul.f32 %v1182_v12, %v462_v18  ;;  %v699_v21 = vmul.f32 %v1214_v13, %v502_v19  ;;  %v385_v22 = vpop.f32.mrf.mxu0  ;;  %v425_v23 = vpop.f32.mrf.mxu1 }
  0xf4   :  { %860 = vst.msk [vmem:[%s1759_s3 + $0x74] sm:$0xf] %vm830_vm2, %v795_v15  ;;  %v652_v24 = vmul.f32 %v1121_v16, %v385_v22  ;;  %v668_v25 = vmul.f32 %v1153_v17, %v425_v23 }
  0xf5   :  { %v747_v28 = vadd.f32 %v1182_v12, %v683_v20  ;;  %v763_v29 = vadd.f32 %v1214_v13, %v699_v21 }
  0xf6   :  { %v716_v30 = vadd.f32 %v1121_v16, %v652_v24  ;;  %v732_v31 = vadd.f32 %v1153_v17, %v668_v25 }
  0xf7   :  { %v811_v32 = vpack.c.bf16 %v747_v28, %v747_v28  ;;  %v827_v33 = vpack.c.bf16 %v763_v29, %v763_v29 }
  0xf8   :  { %v780_v36 = vpack.c.bf16 %v716_v30, %v716_v30  ;;  %v796_v37 = vpack.c.bf16 %v732_v31, %v732_v31 }
  0xf9   :  { %876 = vst.msk [vmem:[%s1759_s3 + $0xb4] sm:$0xf] %vm830_vm2, %v811_v32 }
  0xfa   :  { %892 = vst.msk [vmem:[%s1759_s3 + $0xf4] sm:$0xf] %vm830_vm2, %v827_v33  ;;  %v465_v40 = vpop.f32.mrf.mxu2  ;;  %v505_v41 = vpop.f32.mrf.mxu3 }
  0xfb   :  { %845 = vst.msk [vmem:[%s1759_s3 + $0x38] sm:$0xf] %vm830_vm2, %v780_v36  ;;  %v684_v42 = vmul.f32 %v1185_v34, %v465_v40  ;;  %v700_v43 = vmul.f32 %v1217_v35, %v505_v41  ;;  %v387_v44 = vpop.f32.mrf.mxu0  ;;  %v427_v45 = vpop.f32.mrf.mxu1 }
  0xfc   :  { %861 = vst.msk [vmem:[%s1759_s3 + $0x78] sm:$0xf] %vm830_vm2, %v796_v37  ;;  %v653_v46 = vmul.f32 %v1122_v38, %v387_v44  ;;  %v669_v47 = vmul.f32 %v1154_v39, %v427_v45 }
  0xfd   :  { %v748_v48 = vadd.f32 %v1185_v34, %v684_v42  ;;  %v764_v49 = vadd.f32 %v1217_v35, %v700_v43 }
  0xfe   :  { %v717_v50 = vadd.f32 %v1122_v38, %v653_v46  ;;  %v733_v51 = vadd.f32 %v1154_v39, %v669_v47 }
  0xff   :  { %v812_v52 = vpack.c.bf16 %v748_v48, %v748_v48  ;;  %v828_v53 = vpack.c.bf16 %v764_v49, %v764_v49 }
 0x100   :  { %v781_v56 = vpack.c.bf16 %v717_v50, %v717_v50  ;;  %v797_v57 = vpack.c.bf16 %v733_v51, %v733_v51 }
 0x101   :  { %877 = vst.msk [vmem:[%s1759_s3 + $0xb8] sm:$0xf] %vm830_vm2, %v812_v52 }
 0x102   :  { %893 = vst.msk [vmem:[%s1759_s3 + $0xf8] sm:$0xf] %vm830_vm2, %v828_v53  ;;  %v467_v58 = vpop.f32.mrf.mxu2  ;;  %v507_v59 = vpop.f32.mrf.mxu3 }
 0x103   :  { %846 = vst.msk [vmem:[%s1759_s3 + $0x3c] sm:$0xf] %vm830_vm2, %v781_v56  ;;  %v685_v60 = vmul.f32 %v1186_v54, %v467_v58  ;;  %v701_v61 = vmul.f32 %v1218_v55, %v507_v59 }
 0x104   :  { %862 = vst.msk [vmem:[%s1759_s3 + $0x7c] sm:$0xf] %vm830_vm2, %v797_v57 }
 0x105   :  { %v749_v62 = vadd.f32 %v1186_v54, %v685_v60  ;;  %v765_v63 = vadd.f32 %v1218_v55, %v701_v61 }
 0x107   :  { %v813_v0 = vpack.c.bf16 %v749_v62, %v749_v62  ;;  %v829_v1 = vpack.c.bf16 %v765_v63, %v765_v63 }
 0x109   :  { %878 = vst.msk [vmem:[%s1759_s3 + $0xbc] sm:$0xf] %vm830_vm2, %v813_v0 }
 0x10a   :  { %894 = vst.msk [vmem:[%s1759_s3 + $0xfc] sm:$0xf] %vm830_vm2, %v829_v1 }

// kernel: dualgcn_head_forward.23
= control target key start
LH: loop header
LB: loop body
LE: loop exit
PB: predicated region body
PF: predicated region fallthrough
CT: control target
= control target key end

     0   :  { %s447_s12 = smov 0   ;;  %s449_s13 = smov 0   ;;  %s486_s0 = inlined_call_operand.vmem [shape: bf16[8,16], index: 0, kind: input, shape index: {}]   ;;  %s487_s1 = inlined_call_operand.vmem [shape: f32[8,1], index: 1, kind: input, shape index: {}]   ;;  %s488_s2 = inlined_call_operand.vmem [shape: bf16[2,16,256], index: 2, kind: input, shape index: {}]   ;;  %s489_s3 = inlined_call_operand.vmem [shape: f32[2,8,256], index: 3, kind: output, shape index: {}]  }
   0x1   :  { %s451_s14 = smov 0  }
   0x2 LB: > { %s25_s15 = sadd.s32 1, %s420_s13  ;;  %p355_p0 = scmp.ge.s32.totalorder %s424_s14, 1  ;;  %s424_s14 = sphi %s451_s14, %s13_s14   ;;  %s420_s13 = sphi %s449_s13, %s491_s13   ;;  %s416_s12 = sphi %s447_s12, %s490_s12  }
   0x3   : > { %p27_p1 = scmp.ge.s32.totalorder %s25_s15, 2  ;;  %p158_p2 = scmp.lt.s32.totalorder %s424_s14, 3 }
   0x5   : > { %s493_s15 = smov (%p27_p1, %s25_s15), 0  ;;  %p159_p3 = pnand %p355_p0, %p158_p2 }
   0x6   : > { %p191_p4 = scmp.lt.s32.totalorder (!%p159_p3), %s416_s12, 1 }
   0x7   : > { %162 = sbr.rel (%p159_p3) target bundleno = 156 (0x9c), region = 32 }
   0xc   : > { %v211_v0 = vld [vmem:[%s487_s1] sm:$0xff]  ;;  %v426_v1 = vmov 0   ;;  %s495_s12 = smov (!%p191_p4, %s416_s12), 1  ;;  %vm225_vm0 = vcmask 130048  }
   0xd   : > { %401 = vset.pattern.permute.xlu0 %v426_v1  ;;  %s372_s18 = sshll.u32 %s495_s12, 4  ;;  %v212_v8 = vld [vmem:[%s486_s0] sm:$0xf] }
   0xe   : > { %257 = vperm.xlu0 %401, %v211_v0   ;;  %s198_s21 = scalar_lea.vmem %s488_s2, %s372_s18  ;;  %s208_s26 = scalar_lea.vmem %s489_s3, %s372_s18 }
   0xf   : > { %v362_v2 = vld [vmem:[%s198_s21] sm:$0xf]  ;;  %v375_v3 = vld [vmem:[%s198_s21 + $0x4] sm:$0xf0]  ;;  %v374_v4 = vld [vmem:[%s198_s21 + $0x4] sm:$0xf] }
  0x10   : > { %v363_v5 = vor.u32 %v375_v3, %v362_v2  ;;  %v364_v6 = vld [vmem:[%s198_s21 + $0x8] sm:$0xf0] }
  0x11   : > { %v367_v7 = vor.u32 %v374_v4, %v364_v6 }
  0x12   : > { %236 = vmatpush.bf16.msra.mxu0 %v363_v5 }
  0x13   : > { %249 = vmatpush.bf16.msra.mxu1 %v367_v7 }
  0x15   : > { %368 = vmatmul.msk.bf16.vlgmr.msra.gmra.mxu0 %vm225_vm0, %v212_v8 }
  0x16   : > { %369 = vmatmul.msk.bf16.vlgmr.msra.gmra.mxu1 %vm225_vm0, %v212_v8 }
  0x80   : > { %v258_v9 = vpop.permute.xlu0 %257 }
  0x92   : > { %v238_v10 = vpop.f32.mrf.mxu0 }
  0x93   : > { %v260_v11 = vadd.f32 %v258_v9, %v238_v10  ;;  %v251_v12 = vpop.f32.mrf.mxu1 }
  0x94   : > { %v261_v13 = vadd.f32 %v258_v9, %v251_v12 }
  0x95   : > { %262 = vst [vmem:[%s208_s26] sm:$0xff] %v260_v11 }
  0x96   : > { %263 = vst [vmem:[%s208_s26 + $0x8] sm:$0xff] %v261_v13 }
  0x9a   : > { %v240_v14 = vpop.f32.mrf.mxu0 }
  0x9b   : > { %v253_v15 = vpop.f32.mrf.mxu1 }
  0x9c PF: > { %s13_s14 = sadd.s32 1, %s424_s14   ;;  %s490_s12 = smov %s420_s13 }
  0x9d   : > { %p10_p5 = scmp.ge.s32.totalorder %s13_s14, 4   ;;  %s491_s13 = smov %s493_s15 }
  0x9f   :  { %12 = sbr.rel (!%p10_p5) target bundleno = 2 (0x2), region = 62 }

// kernel: dualgcn_head_forward.21
= control target key start
LH: loop header
LB: loop body
LE: loop exit
PB: predicated region body
PF: predicated region fallthrough
CT: control target
= control target key end

     0   :  { %s975_s18 = smov 0   ;;  %s1077_s0 = inlined_call_operand.vmem [shape: f32[1,256], index: 0, kind: input, shape index: {}]   ;;  %s1078_s1 = inlined_call_operand.vmem [shape: f32[1,256], index: 1, kind: input, shape index: {}]   ;;  %s1079_s2 = inlined_call_operand.vmem [shape: bf16[9,16,16], index: 2, kind: input, shape index: {}]   ;;  %s1080_s3 = inlined_call_operand.vmem [shape: f32[16,1], index: 3, kind: input, shape index: {}]   ;;  %s1081_s4 = inlined_call_operand.vmem [shape: bf16[2,16,291], index: 4, kind: input, shape index: {}]   ;;  %s1082_s5 = inlined_call_operand.vmem [shape: bf16[2,16,256], index: 5, kind: output, shape index: {}]  }
   0x1 LB: > { %s803_s19 = sadd.s32 4294967295, %s934_s18   ;;  %p807_p0 = scmp.ge.s32.totalorder %s934_s18, 1  ;;  %s934_s18 = sphi %s975_s18, %s15_s18  }
   0x2   : > { %p187_p1 = scmp.lt.s32.totalorder %s934_s18, 3 }
   0x4   : > { %p188_p2 = pnand %p807_p0, %p187_p1 }
   0x5   : > { %p215_p3 = scmp.lt.s32.totalorder (!%p188_p2), %s803_s19, 1  ;;  %s936_s24 = smov (!%p188_p2), 111  }
   0x6   : > { %191 = sbr.rel (%p188_p2) target bundleno = 355 (0x163), region = 40  ;;  %s937_s25 = smov (!%p188_p2), 127  }
   0x7   : > { %s938_s26 = smov (!%p188_p2), 95   ;;  %s939_s27 = smov (!%p188_p2), 112  }
   0x8   : > { %s940_s28 = smov (!%p188_p2), 96   ;;  %s941_s29 = smov (!%p188_p2), 110  }
   0x9   : > { %s942_s30 = smov (!%p188_p2), 126   ;;  %s943_s6 = smov (!%p188_p2), 94  }
   0xb   : > { %s1084_s19 = smov (!%p215_p3, %s803_s19), 1  ;;  %vm310_vm0 = vcmask 1039360   ;;  %v899_v12 = vld [vmem:[%s1079_s2 + $0x8] sm:$0xff]  ;;  %vm267_vm1 = vcmask 130048   ;;  %v400_v15 = vld [vmem:[%s1080_s3] sm:$0xff]  ;;  %v944_v16 = vmov 0  }
   0xc   : > { %s908_s20 = smul.u32 24, %s1084_s19  ;;  %926 = vset.pattern.permute.xlu0 %v944_v16  ;;  %927 = vset.pattern.permute.xlu1 %v944_v16  ;;  %vm262_vm2 = vcmask 908288   ;;  %v900_v23 = vld [vmem:[%s1079_s2 + $0x20] sm:$0xff]  ;;  %vm360_vm3 = vcmask 777216   ;;  %v401_v24 = vld [vmem:[%s1080_s3 + $0x8] sm:$0xff]  ;;  %vm432_vm4 = vcmask 916480  }
   0xd   : > { %v903_v33 = vld [vmem:[%s1079_s2 + $0x18] sm:$0xff]  ;;  %vm520_vm5 = vcmask 785408   ;;  %vm590_vm6 = vcmask 900096   ;;  %v904_v43 = vld [vmem:[%s1079_s2 + $0x30] sm:$0xff]  ;;  %v902_v46 = vld [vmem:[%s1079_s2] sm:$0xff]  ;;  %vm637_vm7 = vcmask 1031168  }
   0xe   : > { %s219_s23 = scalar_lea.vmem %s1081_s4, %s908_s20  ;;  %v901_v35 = vld [vmem:[%s1079_s2 + $0x38] sm:$0xff]  ;;  %vm687_vm8 = vcmask 769024   ;;  %v905_v55 = vld [vmem:[%s1079_s2 + $0x10] sm:$0xff]  ;;  %v906_v58 = vld [vmem:[%s1079_s2 + $0x28] sm:$0xff]  ;;  %s895_s10 = sshll.u32 %s1084_s19, 4 }
   0xf   : > { %v829_v0 = vld [vmem:[%s219_s23 + $0x8] sm:$0xf]  ;;  %v898_v1 = vld [vmem:[%s219_s23 + $0x10] sm:$0xf0]  ;;  %v821_v2 = vld [vmem:[%s219_s23] sm:$0xf]  ;;  %s224_s13 = scalar_lea.vmem %s1082_s5, %s895_s10 }
  0x10   : > { %v830_v3 = vor.u32 %v898_v1, %v829_v0  ;;  %v897_v4 = vld [vmem:[%s219_s23 + $0x8] sm:$0xf0]  ;;  %v896_v5 = vld [vmem:[%s219_s23 + $0x4] sm:$0xf]  ;;  %v823_v6 = vld [vmem:[%s219_s23 + $0xc] sm:$0xf0] }
  0x11   : > { %v989_v7 = vor.u32 %v897_v4, %v821_v2  ;;  %v991_v8 = vor.u32 %v896_v5, %v823_v6  ;;  %v907_v60 = vld [vmem:[%s1079_s2 + $0x40] sm:$0xff] }
  0x12   : > { %260 = vrot.lane.b32.xlu1 %v830_v3, %s936_s24 }
  0x13   : > { %256 = vrot.lane.b32.xlu0 %v989_v7, %s936_s24  ;;  %306 = vrot.lane.b32.xlu2 %v991_v8, %s937_s25 }
  0x1a   : > { %304 = vrot.lane.b32.xlu1 %v989_v7, %s937_s25 }
  0x1b   : > { %258 = vrot.lane.b32.xlu0 %v991_v8, %s936_s24  ;;  %308 = vrot.lane.b32.xlu2 %v830_v3, %s937_s25 }
  0x22   : > { %356 = vrot.lane.b32.xlu1 %v991_v8, %s938_s26 }
  0x23   : > { %354 = vrot.lane.b32.xlu0 %v989_v7, %s938_s26  ;;  %358 = vrot.lane.b32.xlu2 %v830_v3, %s938_s26 }
  0x2a   : > { %428 = vrot.lane.b32.xlu1 %v991_v8, %s939_s27 }
  0x2b   : > { %426 = vrot.lane.b32.xlu0 %v989_v7, %s939_s27  ;;  %430 = vrot.lane.b32.xlu2 %v830_v3, %s939_s27 }
  0x32   : > { %516 = vrot.lane.b32.xlu1 %v991_v8, %s940_s28 }
  0x33   : > { %514 = vrot.lane.b32.xlu0 %v989_v7, %s940_s28  ;;  %518 = vrot.lane.b32.xlu2 %v830_v3, %s940_s28 }
  0x3a   : > { %586 = vrot.lane.b32.xlu1 %v991_v8, %s941_s29 }
  0x3b   : > { %584 = vrot.lane.b32.xlu0 %v989_v7, %s941_s29  ;;  %588 = vrot.lane.b32.xlu2 %v830_v3, %s941_s29 }
  0x42   : > { %633 = vrot.lane.b32.xlu1 %v991_v8, %s942_s30 }
  0x43   : > { %631 = vrot.lane.b32.xlu0 %v989_v7, %s942_s30  ;;  %635 = vrot.lane.b32.xlu2 %v830_v3, %s942_s30 }
  0x4a   : > { %683 = vrot.lane.b32.xlu1 %v991_v8, %s943_s6 }
  0x4b   : > { %681 = vrot.lane.b32.xlu0 %v989_v7, %s943_s6  ;;  %685 = vrot.lane.b32.xlu2 %v830_v3, %s943_s6 }
  0x52   : > { %409 = vperm.xlu1 %927, %v401_v24  }
  0x53   : > { %404 = vperm.xlu0 %926, %v400_v15  }
  0x6d   : > { %v307_v9 = vpop.permute.xlu2 %306 }
  0x75   : > { %v309_v10 = vpop.permute.xlu2 %308 }
  0x76   : > { %v312_v11 = vsel %vm310_vm0, %v307_v9, %v309_v10 }
  0x77   : > { %339 = vmatpush.bf16.msra.mxu3 %v312_v11 }
  0x7a   : > { %838 = vmatmul.msk.bf16.vlgmr.msra.gmra.mxu3 %vm267_vm1, %v899_v12 }
  0x7d   : > { %v359_v18 = vpop.permute.xlu2 %358 }
  0x84   : > { %v261_v13 = vpop.permute.xlu1 %260 }
  0x85   : > { %v257_v14 = vpop.permute.xlu0 %256  ;;  %v431_v29 = vpop.permute.xlu2 %430 }
  0x8c   : > { %v305_v17 = vpop.permute.xlu1 %304 }
  0x8d   : > { %v259_v19 = vpop.permute.xlu0 %258  ;;  %v311_v20 = vsel %vm310_vm0, %v305_v17, %v307_v9  ;;  %v519_v36 = vpop.permute.xlu2 %518 }
  0x8e   : > { %v263_v21 = vsel %vm262_vm2, %v257_v14, %v259_v19  ;;  %v264_v22 = vsel %vm262_vm2, %v259_v19, %v261_v13  ;;  %325 = vmatpush.bf16.msra.mxu2 %v311_v20 }
  0x8f   : > { %278 = vmatpush.bf16.msra.mxu0 %v263_v21  ;;  %292 = vmatpush.bf16.msra.mxu1 %v264_v22 }
  0x91   : > { %837 = vmatmul.msk.bf16.vlgmr.msra.gmra.mxu2 %vm267_vm1, %v899_v12 }
  0x92   : > { %831 = vmatmul.msk.bf16.vlgmr.msra.gmra.mxu0 %vm267_vm1, %v900_v23  ;;  %832 = vmatmul.msk.bf16.vlgmr.msra.gmra.mxu1 %vm267_vm1, %v900_v23  ;;  %v226_v23 = vld [vmem:[%s1077_s0] sm:$0x3] }
  0x94   : > { %v357_v25 = vpop.permute.xlu1 %356 }
  0x95   : > { %v355_v26 = vpop.permute.xlu0 %354  ;;  %v362_v27 = vsel %vm360_vm3, %v357_v25, %v359_v18  ;;  %v589_v41 = vpop.permute.xlu2 %588 }
  0x96   : > { %v361_v28 = vsel %vm360_vm3, %v355_v26, %v357_v25  ;;  %389 = vmatpush.bf16.msrb.mxu1 %v362_v27 }
  0x97   : > { %375 = vmatpush.bf16.msrb.mxu0 %v361_v28 }
  0x9a   : > { %499 = vmatpush.bf16.msra.mxu1 %v991_v8 }
  0x9b   : > { %485 = vmatpush.bf16.msra.mxu0 %v989_v7 }
  0x9c   : > { %v429_v30 = vpop.permute.xlu1 %428 }
  0x9d   : > { %v427_v31 = vpop.permute.xlu0 %426  ;;  %v434_v32 = vsel %vm432_vm4, %v429_v30, %v431_v29  ;;  %v636_v48 = vpop.permute.xlu2 %635 }
  0x9e   : > { %v433_v34 = vsel %vm432_vm4, %v427_v31, %v429_v30  ;;  %461 = vmatpush.bf16.msrb.mxu3 %v434_v32 }
  0x9f   : > { %447 = vmatpush.bf16.msrb.mxu2 %v433_v34 }
  0xa1   : > { %854 = vmatmul.msk.bf16.vlgmr.msrb.gmra.mxu3 %vm267_vm1, %v903_v33 }
  0xa2   : > { %845 = vmatmul.msk.bf16.vlgmr.msrb.gmra.mxu0 %vm267_vm1, %v901_v35  ;;  %846 = vmatmul.msk.bf16.vlgmr.msrb.gmra.mxu1 %vm267_vm1, %v901_v35  ;;  %v562_v35 = vperm.slane %v226_v23, 1 }
  0xa3   : > { %853 = vmatmul.msk.bf16.vlgmr.msrb.gmra.mxu2 %vm267_vm1, %v903_v33  ;;  %v561_v33 = vperm.slane %v226_v23, 0 }
  0xa4   : > { %v517_v37 = vpop.permute.xlu1 %516 }
  0xa5   : > { %v522_v38 = vsel %vm520_vm5, %v517_v37, %v519_v36  ;;  %v515_v39 = vpop.permute.xlu0 %514  ;;  %v686_v53 = vpop.permute.xlu2 %685  ;;  %v227_v36 = vld [vmem:[%s1078_s1] sm:$0x3] }
  0xa6   : > { %v521_v40 = vsel %vm520_vm5, %v515_v39, %v517_v37  ;;  %549 = vmatpush.bf16.msra.mxu3 %v522_v38 }
  0xa7   : > { %535 = vmatpush.bf16.msra.mxu2 %v521_v40  ;;  %v728_v40 = vperm.slane %v227_v36, 0 }
  0xac   : > { %v587_v42 = vpop.permute.xlu1 %586 }
  0xad   : > { %v592_v44 = vsel %vm590_vm6, %v587_v42, %v589_v41  ;;  %v585_v45 = vpop.permute.xlu0 %584  ;;  %v729_v41 = vperm.slane %v227_v36, 1 }
  0xae   : > { %v591_v47 = vsel %vm590_vm6, %v585_v45, %v587_v42  ;;  %619 = vmatpush.bf16.msrb.mxu1 %v592_v44 }
  0xaf   : > { %605 = vmatpush.bf16.msrb.mxu0 %v591_v47 }
  0xb1   : > { %868 = vmatmul.msk.bf16.vlgmr.msra.gmra.mxu3 %vm267_vm1, %v904_v43 }
  0xb2   : > { %859 = vmatmul.msk.bf16.vlgmr.msra.gmra.mxu0 %vm267_vm1, %v902_v46  ;;  %860 = vmatmul.msk.bf16.vlgmr.msra.gmra.mxu1 %vm267_vm1, %v902_v46 }
  0xb3   : > { %867 = vmatmul.msk.bf16.vlgmr.msra.gmra.mxu2 %vm267_vm1, %v904_v43 }
  0xb4   : > { %v634_v49 = vpop.permute.xlu1 %633 }
  0xb5   : > { %v639_v50 = vsel %vm637_vm7, %v634_v49, %v636_v48  ;;  %v632_v51 = vpop.permute.xlu0 %631 }
  0xb6   : > { %v638_v52 = vsel %vm637_vm7, %v632_v51, %v634_v49  ;;  %666 = vmatpush.bf16.msrb.mxu3 %v639_v50 }
  0xb7   : > { %652 = vmatpush.bf16.msrb.mxu2 %v638_v52 }
  0xbc   : > { %v684_v54 = vpop.permute.xlu1 %683 }
  0xbd   : > { %v689_v56 = vsel %vm687_vm8, %v684_v54, %v686_v53  ;;  %v682_v57 = vpop.permute.xlu0 %681 }
  0xbe   : > { %v688_v59 = vsel %vm687_vm8, %v682_v57, %v684_v54  ;;  %716 = vmatpush.bf16.msra.mxu1 %v689_v56 }
  0xbf   : > { %702 = vmatpush.bf16.msra.mxu0 %v688_v59 }
  0xc1   : > { %884 = vmatmul.msk.bf16.vlgmr.msrb.gmra.mxu3 %vm267_vm1, %v905_v55 }
  0xc2   : > { %877 = vmatmul.msk.bf16.vlgmr.msrb.gmra.mxu0 %vm267_vm1, %v906_v58  ;;  %878 = vmatmul.msk.bf16.vlgmr.msrb.gmra.mxu1 %vm267_vm1, %v906_v58 }
  0xc3   : > { %883 = vmatmul.msk.bf16.vlgmr.msrb.gmra.mxu2 %vm267_vm1, %v905_v55 }
  0xc5   : > { %v405_v39 = vpop.permute.xlu0 %404 }
  0xd2   : > { %891 = vmatmul.msk.bf16.vlgmr.msra.gmra.mxu0 %vm267_vm1, %v907_v60  ;;  %892 = vmatmul.msk.bf16.vlgmr.msra.gmra.mxu1 %vm267_vm1, %v907_v60 }
  0xfd   : > { %v341_v63 = vpop.f32.mrf.mxu3 }
 0x105   : > { %v343_v3 = vpop.f32.mrf.mxu3 }
 0x10f   : > { %v280_v61 = vpop.f32.mrf.mxu0  ;;  %v294_v62 = vpop.f32.mrf.mxu1 }
 0x110   : > { %v342_v28 = vadd.f32 %v341_v63, %v294_v62 }
 0x114   : > { %v327_v0 = vpop.f32.mrf.mxu2 }
 0x115   : > { %v328_v29 = vadd.f32 %v327_v0, %v280_v61 }
 0x117   : > { %v282_v1 = vpop.f32.mrf.mxu0  ;;  %v296_v2 = vpop.f32.mrf.mxu1 }
 0x118   : > { %v344_v54 = vadd.f32 %v343_v3, %v296_v2 }
 0x11c   : > { %v329_v4 = vpop.f32.mrf.mxu2 }
 0x11d   : > { %v330_v55 = vadd.f32 %v329_v4, %v282_v1 }
 0x11f   : > { %v377_v5 = vpop.f32.mrf.mxu0  ;;  %v391_v6 = vpop.f32.mrf.mxu1 }
 0x120   : > { %v396_v37 = vadd.f32 %v377_v5, %v328_v29  ;;  %v397_v38 = vadd.f32 %v391_v6, %v342_v28  ;;  %v410_v6 = vpop.permute.xlu1 %409 }
 0x122   : > { %v412_v50 = vadd.f32 %v405_v39, %v396_v37  ;;  %v413_v51 = vadd.f32 %v405_v39, %v397_v38 }
 0x124   : > { %v463_v7 = vpop.f32.mrf.mxu3 }
 0x126   : > { %v449_v8 = vpop.f32.mrf.mxu2 }
 0x127   : > { %v379_v9 = vpop.f32.mrf.mxu0  ;;  %v393_v10 = vpop.f32.mrf.mxu1 }
 0x128   : > { %v398_v62 = vadd.f32 %v379_v9, %v330_v55  ;;  %v399_v5 = vadd.f32 %v393_v10, %v344_v54 }
 0x12a   : > { %v414_v3 = vadd.f32 %v410_v6, %v398_v62 }
 0x12c   : > { %v465_v11 = vpop.f32.mrf.mxu3 }
 0x12e   : > { %v451_v12 = vpop.f32.mrf.mxu2 }
 0x12f   : > { %v487_v13 = vpop.f32.mrf.mxu0  ;;  %v501_v14 = vpop.f32.mrf.mxu1 }
 0x130   : > { %v488_v26 = vadd.f32 %v487_v13, %v449_v8  ;;  %v502_v27 = vadd.f32 %v501_v14, %v463_v7 }
 0x134   : > { %v551_v15 = vpop.f32.mrf.mxu3 }
 0x135   : > { %v557_v34 = vadd.f32 %v551_v15, %v502_v27  ;;  %v415_v15 = vadd.f32 %v410_v6, %v399_v5 }
 0x136   : > { %v537_v16 = vpop.f32.mrf.mxu2 }
 0x137   : > { %v489_v17 = vpop.f32.mrf.mxu0  ;;  %v503_v18 = vpop.f32.mrf.mxu1  ;;  %v556_v32 = vadd.f32 %v537_v16, %v488_v26  ;;  %v566_v43 = vmul.f32 %v562_v35, %v557_v34 }
 0x138   : > { %v490_v46 = vadd.f32 %v489_v17, %v451_v12  ;;  %v504_v47 = vadd.f32 %v503_v18, %v465_v11 }
 0x139   : > { %v565_v42 = vmul.f32 %v561_v33, %v556_v32  ;;  %v570_v59 = vadd.f32 %v566_v43, %v413_v51 }
 0x13b   : > { %v569_v58 = vadd.f32 %v565_v42, %v412_v50 }
 0x13c   : > { %v553_v20 = vpop.f32.mrf.mxu3 }
 0x13d   : > { %v559_v57 = vadd.f32 %v553_v20, %v504_v47 }
 0x13e   : > { %v539_v19 = vpop.f32.mrf.mxu2 }
 0x13f   : > { %v607_v21 = vpop.f32.mrf.mxu0  ;;  %v621_v22 = vpop.f32.mrf.mxu1  ;;  %v558_v56 = vadd.f32 %v539_v19, %v490_v46  ;;  %v568_v12 = vmul.f32 %v562_v35, %v559_v57 }
 0x141   : > { %v567_v11 = vmul.f32 %v561_v33, %v558_v56  ;;  %v572_v19 = vadd.f32 %v568_v12, %v415_v15 }
 0x143   : > { %v571_v18 = vadd.f32 %v567_v11, %v414_v3 }
 0x144   : > { %v668_v31 = vpop.f32.mrf.mxu3 }
 0x145   : > { %v669_v45 = vadd.f32 %v668_v31, %v621_v22 }
 0x146   : > { %v654_v30 = vpop.f32.mrf.mxu2 }
 0x147   : > { %v609_v24 = vpop.f32.mrf.mxu0  ;;  %v623_v25 = vpop.f32.mrf.mxu1  ;;  %v655_v44 = vadd.f32 %v654_v30, %v607_v21 }
 0x14c   : > { %v670_v0 = vpop.f32.mrf.mxu3 }
 0x14d   : > { %v671_v14 = vadd.f32 %v670_v0, %v623_v25 }
 0x14e   : > { %v656_v63 = vpop.f32.mrf.mxu2 }
 0x14f   : > { %v704_v48 = vpop.f32.mrf.mxu0  ;;  %v718_v49 = vpop.f32.mrf.mxu1  ;;  %v657_v13 = vadd.f32 %v656_v63, %v609_v24 }
 0x150   : > { %v723_v52 = vadd.f32 %v704_v48, %v655_v44  ;;  %v724_v53 = vadd.f32 %v718_v49, %v669_v45 }
 0x152   : > { %v732_v60 = vmul.f32 %v728_v40, %v723_v52  ;;  %v733_v61 = vmul.f32 %v729_v41, %v724_v53 }
 0x154   : > { %v736_v7 = vadd.f32 %v732_v60, %v569_v58  ;;  %v737_v8 = vadd.f32 %v733_v61, %v570_v59 }
 0x156   : > { %v740_v2 = vmax.f32 %v736_v7, 0.0  ;;  %v741_v1 = vmax.f32 %v737_v8, 0.0 }
 0x157   : > { %v706_v4 = vpop.f32.mrf.mxu0  ;;  %v720_v9 = vpop.f32.mrf.mxu1 }
 0x158   : > { %v744_v16 = vpack.c.bf16 %v741_v1, %v740_v2  ;;  %v725_v10 = vadd.f32 %v706_v4, %v657_v13  ;;  %v726_v17 = vadd.f32 %v720_v9, %v671_v14 }
 0x15a   : > { %746 = vst [vmem:[%s224_s13] sm:$0xff] %v744_v16  ;;  %v734_v20 = vmul.f32 %v728_v40, %v725_v10  ;;  %v735_v21 = vmul.f32 %v729_v41, %v726_v17 }
 0x15c   : > { %v738_v22 = vadd.f32 %v734_v20, %v571_v18  ;;  %v739_v23 = vadd.f32 %v735_v21, %v572_v19 }
 0x15e   : > { %v742_v24 = vmax.f32 %v738_v22, 0.0  ;;  %v743_v25 = vmax.f32 %v739_v23, 0.0 }
 0x160   : > { %v745_v26 = vpack.c.bf16 %v743_v25, %v742_v24 }
 0x162   : > { %747 = vst [vmem:[%s224_s13 + $0x8] sm:$0xff] %v745_v26 }
 0x163 PF: > { %s15_s18 = sadd.s32 1, %s934_s18  }
 0x164   : > { %p12_p4 = scmp.ge.s32.totalorder %s15_s18, 4  }
 0x166   :  { %14 = sbr.rel (!%p12_p4) target bundleno = 1 (0x1), region = 78 }

// kernel: dualgcn_head_forward.22
= control target key start
LH: loop header
LB: loop body
LE: loop exit
PB: predicated region body
PF: predicated region fallthrough
CT: control target
= control target key end

     0   :  { %s1668_s24 = smov 0   ;;  %s1875_s0 = inlined_call_operand.vmem [shape: f32[1,256], index: 0, kind: input, shape index: {}]   ;;  %s1876_s1 = inlined_call_operand.vmem [shape: f32[1,256], index: 1, kind: input, shape index: {}]   ;;  %s1877_s2 = inlined_call_operand.vmem [shape: bf16[9,16,8], index: 2, kind: input, shape index: {}]   ;;  %s1878_s3 = inlined_call_operand.vmem [shape: bf16[9,16,16], index: 3, kind: input, shape index: {}]   ;;  %s1879_s4 = inlined_call_operand.vmem [shape: f32[16,1], index: 4, kind: input, shape index: {}]   ;;  %s1880_s5 = inlined_call_operand.vmem [shape: bf16[2,8,291], index: 5, kind: input, shape index: {}]   ;;  %s1881_s6 = inlined_call_operand.vmem [shape: bf16[2,16,291], index: 6, kind: input, shape index: {}]   ;;  %s1882_s7 = inlined_call_operand.vmem [shape: bf16[2,16,256], index: 7, kind: output, shape index: {}]  }
   0x1 LB: > { %s1405_s25 = sadd.s32 4294967295, %s1617_s24   ;;  %p1409_p0 = scmp.ge.s32.totalorder %s1617_s24, 1  ;;  %s1617_s24 = sphi %s1668_s24, %s17_s24  }
   0x2   : > { %p247_p1 = scmp.lt.s32.totalorder %s1617_s24, 3 }
   0x4   : > { %p248_p2 = pnand %p1409_p0, %p247_p1 }
   0x5   : > { %p284_p3 = scmp.lt.s32.totalorder (!%p248_p2), %s1405_s25, 1  ;;  %s1619_s11 = smov (!%p248_p2), 127  }
   0x6   : > { %251 = sbr.rel (%p248_p2) target bundleno = 429 (0x1ad), region = 48  ;;  %s1620_s12 = smov (!%p248_p2), 111  }
   0x7   : > { %s1621_s13 = smov (!%p248_p2), 95   ;;  %s1622_s14 = smov (!%p248_p2), 112  }
   0x8   : > { %s1623_s15 = smov (!%p248_p2), 96   ;;  %s1624_s16 = smov (!%p248_p2), 126  }
   0x9   : > { %s1625_s17 = smov (!%p248_p2), 110   ;;  %s1626_s20 = smov (!%p248_p2), 94  }
   0xb   : > { %s1884_s25 = smov (!%p284_p3, %s1405_s25), 1  ;;  %vm338_vm0 = vcmask 1039360   ;;  %v1573_v20 = vld [vmem:[%s1878_s3 + $0x8] sm:$0xff]  ;;  %vm343_vm1 = vcmask 130048   ;;  %vm400_vm2 = vcmask 1043456   ;;  %vm396_vm3 = vcmask 64512  }
   0xc   : > { %s1590_s26 = smul.u32 12, %s1884_s25  ;;  %v1572_v32 = vld [vmem:[%s1877_s2 + $0x8] sm:$0xff]  ;;  %vm449_vm4 = vcmask 908288   ;;  %v1574_v45 = vld [vmem:[%s1877_s2 + $0x20] sm:$0xff]  ;;  %vm560_vm5 = vcmask 777216   ;;  %v1627_v54 = vmov 0  }
   0xd   : > { %s1591_s27 = smul.u32 24, %s1884_s25  ;;  %v1575_v46 = vld [vmem:[%s1878_s3 + $0x20] sm:$0xff]  ;;  %v658_v49 = vld [vmem:[%s1879_s4 + $0x8] sm:$0xff]  ;;  %1609 = vset.pattern.permute.xlu0 %v1627_v54  ;;  %1610 = vset.pattern.permute.xlu1 %v1627_v54  ;;  %vm771_vm6 = vcmask 916480   ;;  %vm882_vm7 = vcmask 785408   ;;  %vm1009_vm8 = vcmask 1031168  }
   0xe   : > { %s288_s30 = scalar_lea.vmem %s1880_s5, %s1590_s26  ;;  %v657_v48 = vld [vmem:[%s1879_s4] sm:$0xff]  ;;  %vm1109_vm9 = vcmask 900096   ;;  %vm1220_vm10 = vcmask 769024   ;;  %s1568_s21 = sshll.u32 %s1884_s25, 4 }
   0xf   : > { %s293_s10 = scalar_lea.vmem %s1881_s6, %s1591_s27  ;;  %v303_v0 = vld [vmem:[%s288_s30 + $0x8] sm:$0xf]  ;;  %v302_v1 = vld [vmem:[%s288_s30] sm:$0xff]  ;;  %s298_s26 = scalar_lea.vmem %s1882_s7, %s1568_s21 }
  0x10   : > { %v384_v2 = vunpack.c.l.b16 %v303_v0  ;;  %v382_v3 = vunpack.c.l.b16 %v302_v1  ;;  %v1569_v4 = vld [vmem:[%s293_s10 + $0x4] sm:$0xf]  ;;  %v1426_v5 = vld [vmem:[%s293_s10 + $0xc] sm:$0xf0]  ;;  %v383_v9 = vunpack.c.h.b16 %v302_v1  ;;  %v1424_v10 = vld [vmem:[%s293_s10] sm:$0xf] }
  0x11   : > { %v1690_v8 = vor.u32 %v1569_v4, %v1426_v5  ;;  %v1570_v11 = vld [vmem:[%s293_s10 + $0x8] sm:$0xf0]  ;;  %v1432_v12 = vld [vmem:[%s293_s10 + $0x8] sm:$0xf]  ;;  %v1571_v13 = vld [vmem:[%s293_s10 + $0x10] sm:$0xf0] }
  0x12   : > { %v1686_v6 = vpack.c.b16 %v384_v2, %v384_v2  ;;  %v1688_v7 = vpack.c.b16 %v382_v3, %v382_v3  ;;  %v1695_v14 = vpack.c.b16 %v383_v9, %v383_v9  ;;  %v1697_v15 = vor.u32 %v1570_v11, %v1424_v10  ;;  %v1576_v0 = vld [vmem:[%s1877_s2 + $0x38] sm:$0xff] }
  0x13   : > { %334 = vrot.lane.b32.xlu2 %v1690_v8, %s1619_s11  ;;  %v1433_v16 = vor.u32 %v1571_v13, %v1432_v12  ;;  %v1577_v1 = vld [vmem:[%s1878_s3 + $0x38] sm:$0xff]  ;;  %v1579_v12 = vld [vmem:[%s1878_s3] sm:$0xff] }
  0x14   : > { %392 = vrot.lane.b32.xlu1 %v1686_v6, %s1619_s11  ;;  %388 = vrot.lane.b32.xlu0 %v1688_v7, %s1619_s11  ;;  %v724_v52 = vsel %vm400_vm2, %v1688_v7, 0  ;;  %v727_v53 = vsel %vm400_vm2, %v1695_v14, 0 }
  0x1b   : > { %336 = vrot.lane.b32.xlu2 %v1433_v16, %s1619_s11 }
  0x1c   : > { %332 = vrot.lane.b32.xlu1 %v1697_v15, %s1619_s11  ;;  %390 = vrot.lane.b32.xlu0 %v1695_v14, %s1619_s11 }
  0x23   : > { %505 = vrot.lane.b32.xlu2 %v1433_v16, %s1620_s12 }
  0x24   : > { %503 = vrot.lane.b32.xlu1 %v1690_v8, %s1620_s12  ;;  %501 = vrot.lane.b32.xlu0 %v1697_v15, %s1620_s12 }
  0x2b   : > { %447 = vrot.lane.b32.xlu2 %v1686_v6, %s1620_s12 }
  0x2c   : > { %445 = vrot.lane.b32.xlu1 %v1695_v14, %s1620_s12  ;;  %443 = vrot.lane.b32.xlu0 %v1688_v7, %s1620_s12 }
  0x33   : > { %616 = vrot.lane.b32.xlu2 %v1433_v16, %s1621_s13 }
  0x34   : > { %614 = vrot.lane.b32.xlu1 %v1690_v8, %s1621_s13  ;;  %612 = vrot.lane.b32.xlu0 %v1697_v15, %s1621_s13 }
  0x3b   : > { %558 = vrot.lane.b32.xlu2 %v1686_v6, %s1621_s13 }
  0x3c   : > { %556 = vrot.lane.b32.xlu1 %v1695_v14, %s1621_s13  ;;  %554 = vrot.lane.b32.xlu0 %v1688_v7, %s1621_s13 }
  0x43   : > { %827 = vrot.lane.b32.xlu2 %v1433_v16, %s1622_s14 }
  0x44   : > { %825 = vrot.lane.b32.xlu1 %v1690_v8, %s1622_s14  ;;  %823 = vrot.lane.b32.xlu0 %v1697_v15, %s1622_s14 }
  0x4b   : > { %769 = vrot.lane.b32.xlu2 %v1686_v6, %s1622_s14 }
  0x4c   : > { %767 = vrot.lane.b32.xlu1 %v1695_v14, %s1622_s14  ;;  %765 = vrot.lane.b32.xlu0 %v1688_v7, %s1622_s14 }
  0x53   : > { %938 = vrot.lane.b32.xlu2 %v1433_v16, %s1623_s15 }
  0x54   : > { %936 = vrot.lane.b32.xlu1 %v1690_v8, %s1623_s15  ;;  %934 = vrot.lane.b32.xlu0 %v1697_v15, %s1623_s15 }
  0x5b   : > { %880 = vrot.lane.b32.xlu2 %v1686_v6, %s1623_s15 }
  0x5c   : > { %878 = vrot.lane.b32.xlu1 %v1695_v14, %s1623_s15  ;;  %876 = vrot.lane.b32.xlu0 %v1688_v7, %s1623_s15 }
  0x63   : > { %1054 = vrot.lane.b32.xlu2 %v1686_v6, %s1624_s16 }
  0x64   : > { %1052 = vrot.lane.b32.xlu1 %v1695_v14, %s1624_s16  ;;  %1050 = vrot.lane.b32.xlu0 %v1688_v7, %s1624_s16 }
  0x6b   : > { %1007 = vrot.lane.b32.xlu2 %v1433_v16, %s1624_s16 }
  0x6c   : > { %1005 = vrot.lane.b32.xlu1 %v1690_v8, %s1624_s16  ;;  %1003 = vrot.lane.b32.xlu0 %v1697_v15, %s1624_s16 }
  0x6d   : > { %v335_v17 = vpop.permute.xlu2 %334 }
  0x73   : > { %1165 = vrot.lane.b32.xlu2 %v1433_v16, %s1625_s17 }
  0x74   : > { %1163 = vrot.lane.b32.xlu1 %v1690_v8, %s1625_s17  ;;  %1161 = vrot.lane.b32.xlu0 %v1697_v15, %s1625_s17 }
  0x75   : > { %v337_v18 = vpop.permute.xlu2 %336 }
  0x76   : > { %v340_v19 = vsel %vm338_vm0, %v335_v17, %v337_v18 }
  0x77   : > { %368 = vmatpush.bf16.msra.mxu1 %v340_v19 }
  0x7a   : > { %1435 = vmatmul.msk.bf16.vlgmr.msra.gmra.mxu1 %vm343_vm1, %v1573_v20 }
  0x7b   : > { %1107 = vrot.lane.b32.xlu2 %v1686_v6, %s1625_s17 }
  0x7c   : > { %1105 = vrot.lane.b32.xlu1 %v1695_v14, %s1625_s17  ;;  %1103 = vrot.lane.b32.xlu0 %v1688_v7, %s1625_s17 }
  0x7d   : > { %v506_v21 = vpop.permute.xlu2 %505 }
  0x83   : > { %1276 = vrot.lane.b32.xlu2 %v1433_v16, %s1626_s20 }
  0x84   : > { %1274 = vrot.lane.b32.xlu1 %v1690_v8, %s1626_s20  ;;  %1272 = vrot.lane.b32.xlu0 %v1697_v15, %s1626_s20 }
  0x85   : > { %v448_v24 = vpop.permute.xlu2 %447 }
  0x86   : > { %v393_v22 = vpop.permute.xlu1 %392  ;;  %v389_v23 = vpop.permute.xlu0 %388 }
  0x8b   : > { %1218 = vrot.lane.b32.xlu2 %v1686_v6, %s1626_s20 }
  0x8c   : > { %1216 = vrot.lane.b32.xlu1 %v1695_v14, %s1626_s20  ;;  %1214 = vrot.lane.b32.xlu0 %v1688_v7, %s1626_s20 }
  0x8d   : > { %v617_v33 = vpop.permute.xlu2 %616 }
  0x8e   : > { %v333_v25 = vpop.permute.xlu1 %332  ;;  %v391_v26 = vpop.permute.xlu0 %390 }
  0x8f   : > { %v339_v27 = vsel %vm338_vm0, %v333_v25, %v335_v17  ;;  %v394_v28 = vsel %vm338_vm0, %v389_v23, %v391_v26  ;;  %v395_v29 = vsel %vm338_vm0, %v391_v26, %v393_v22  ;;  %v1580_v25 = vld [vmem:[%s1877_s2 + $0x18] sm:$0xff] }
  0x90   : > { %354 = vmatpush.bf16.msra.mxu0 %v339_v27  ;;  %v402_v30 = vsel %vm400_vm2, %v394_v28, 0  ;;  %v405_v31 = vsel %vm400_vm2, %v395_v29, 0  ;;  %v1581_v28 = vld [vmem:[%s1878_s3 + $0x18] sm:$0xff] }
  0x91   : > { %414 = vmatpush.bf16.msra.mxu2 %v402_v30  ;;  %428 = vmatpush.bf16.msra.mxu3 %v405_v31 }
  0x93   : > { %1434 = vmatmul.msk.bf16.vlgmr.msra.gmra.mxu0 %vm343_vm1, %v1573_v20 }
  0x94   : > { %1440 = vmatmul.msk.bf16.vlgmr.msra.gmra.mxu2 %vm396_vm3, %v1572_v32  ;;  %1441 = vmatmul.msk.bf16.vlgmr.msra.gmra.mxu3 %vm396_vm3, %v1572_v32 }
  0x95   : > { %v559_v38 = vpop.permute.xlu2 %558  ;;  %661 = vperm.xlu0 %1609, %v657_v48   ;;  %666 = vperm.xlu1 %1610, %v658_v49  }
  0x96   : > { %v504_v34 = vpop.permute.xlu1 %503  ;;  %v502_v35 = vpop.permute.xlu0 %501 }
  0x97   : > { %v507_v36 = vsel %vm449_vm4, %v502_v35, %v504_v34  ;;  %v508_v37 = vsel %vm449_vm4, %v504_v34, %v506_v21 }
  0x98   : > { %521 = vmatpush.bf16.msrb.mxu2 %v507_v36  ;;  %535 = vmatpush.bf16.msrb.mxu3 %v508_v37 }
  0x9d   : > { %v828_v47 = vpop.permute.xlu2 %827 }
  0x9e   : > { %v446_v39 = vpop.permute.xlu1 %445  ;;  %v444_v40 = vpop.permute.xlu0 %443 }
  0x9f   : > { %v450_v41 = vsel %vm449_vm4, %v444_v40, %v446_v39  ;;  %v451_v42 = vsel %vm449_vm4, %v446_v39, %v448_v24 }
  0xa0   : > { %v456_v43 = vsel %vm400_vm2, %v450_v41, 0  ;;  %v459_v44 = vsel %vm400_vm2, %v451_v42, 0  ;;  %v1582_v41 = vld [vmem:[%s1877_s2 + $0x30] sm:$0xff] }
  0xa1   : > { %468 = vmatpush.bf16.msrb.mxu0 %v456_v43  ;;  %482 = vmatpush.bf16.msrb.mxu1 %v459_v44  ;;  %v1583_v42 = vld [vmem:[%s1878_s3 + $0x30] sm:$0xff] }
  0xa4   : > { %1448 = vmatmul.msk.bf16.vlgmr.msrb.gmra.mxu0 %vm396_vm3, %v1574_v45  ;;  %1449 = vmatmul.msk.bf16.vlgmr.msrb.gmra.mxu1 %vm396_vm3, %v1574_v45 }
  0xa5   : > { %1456 = vmatmul.msk.bf16.vlgmr.msrb.gmra.mxu2 %vm343_vm1, %v1575_v46  ;;  %1457 = vmatmul.msk.bf16.vlgmr.msrb.gmra.mxu3 %vm343_vm1, %v1575_v46  ;;  %v770_v57 = vpop.permute.xlu2 %769 }
  0xa6   : > { %v615_v50 = vpop.permute.xlu1 %614  ;;  %v613_v51 = vpop.permute.xlu0 %612 }
  0xa7   : > { %v619_v55 = vsel %vm560_vm5, %v615_v50, %v617_v33  ;;  %v618_v56 = vsel %vm560_vm5, %v613_v51, %v615_v50 }
  0xa8   : > { %632 = vmatpush.bf16.msra.mxu2 %v618_v56  ;;  %646 = vmatpush.bf16.msra.mxu3 %v619_v55  ;;  %v1584_v55 = vld [vmem:[%s1877_s2 + $0x10] sm:$0xff] }
  0xac   : > { %736 = vmatpush.bf16.msrb.mxu2 %v724_v52  ;;  %750 = vmatpush.bf16.msrb.mxu3 %v727_v53  ;;  %v1585_v52 = vld [vmem:[%s1878_s3 + $0x10] sm:$0xff] }
  0xad   : > { %v939_v2 = vpop.permute.xlu2 %938 }
  0xae   : > { %v557_v58 = vpop.permute.xlu1 %556  ;;  %v555_v59 = vpop.permute.xlu0 %554 }
  0xaf   : > { %v562_v60 = vsel %vm560_vm5, %v557_v58, %v559_v38  ;;  %v561_v61 = vsel %vm560_vm5, %v555_v59, %v557_v58 }
  0xb0   : > { %v570_v62 = vsel %vm400_vm2, %v562_v60, 0  ;;  %v567_v63 = vsel %vm400_vm2, %v561_v61, 0 }
  0xb1   : > { %579 = vmatpush.bf16.msra.mxu0 %v567_v63  ;;  %593 = vmatpush.bf16.msra.mxu1 %v570_v62 }
  0xb4   : > { %1464 = vmatmul.msk.bf16.vlgmr.msra.gmra.mxu0 %vm396_vm3, %v1576_v0  ;;  %1465 = vmatmul.msk.bf16.vlgmr.msra.gmra.mxu1 %vm396_vm3, %v1576_v0 }
  0xb5   : > { %694 = vmatpush.bf16.msrb.mxu0 %v1697_v15  ;;  %708 = vmatpush.bf16.msrb.mxu1 %v1690_v8  ;;  %v881_v11 = vpop.permute.xlu2 %880  ;;  %v1578_v15 = vld [vmem:[%s1877_s2] sm:$0xff] }
  0xb6   : > { %1472 = vmatmul.msk.bf16.vlgmr.msra.gmra.mxu2 %vm343_vm1, %v1577_v1  ;;  %1473 = vmatmul.msk.bf16.vlgmr.msra.gmra.mxu3 %vm343_vm1, %v1577_v1  ;;  %v826_v3 = vpop.permute.xlu1 %825  ;;  %v824_v4 = vpop.permute.xlu0 %823 }
  0xb7   : > { %v830_v5 = vsel %vm771_vm6, %v826_v3, %v828_v47  ;;  %v829_v6 = vsel %vm771_vm6, %v824_v4, %v826_v3 }
  0xb8   : > { %843 = vmatpush.bf16.msra.mxu2 %v829_v6  ;;  %857 = vmatpush.bf16.msra.mxu3 %v830_v5  ;;  %v1587_v5 = vld [vmem:[%s1878_s3 + $0x28] sm:$0xff] }
  0xbd   : > { %v1055_v20 = vpop.permute.xlu2 %1054 }
  0xbe   : > { %v768_v7 = vpop.permute.xlu1 %767  ;;  %v766_v9 = vpop.permute.xlu0 %765 }
  0xbf   : > { %v773_v10 = vsel %vm771_vm6, %v768_v7, %v770_v57  ;;  %v772_v8 = vsel %vm771_vm6, %v766_v9, %v768_v7  ;;  %v1588_v9 = vld [vmem:[%s1877_s2 + $0x40] sm:$0xff] }
  0xc0   : > { %v781_v13 = vsel %vm400_vm2, %v773_v10, 0  ;;  %v778_v14 = vsel %vm400_vm2, %v772_v8, 0  ;;  %v1589_v10 = vld [vmem:[%s1878_s3 + $0x40] sm:$0xff] }
  0xc1   : > { %790 = vmatpush.bf16.msra.mxu0 %v778_v14  ;;  %804 = vmatpush.bf16.msra.mxu1 %v781_v13 }
  0xc4   : > { %1478 = vmatmul.msk.bf16.vlgmr.msrb.gmra.mxu0 %vm343_vm1, %v1579_v12  ;;  %1479 = vmatmul.msk.bf16.vlgmr.msrb.gmra.mxu1 %vm343_vm1, %v1579_v12 }
  0xc5   : > { %v1008_v29 = vpop.permute.xlu2 %1007 }
  0xc6   : > { %1484 = vmatmul.msk.bf16.vlgmr.msrb.gmra.mxu2 %vm396_vm3, %v1578_v15  ;;  %1485 = vmatmul.msk.bf16.vlgmr.msrb.gmra.mxu3 %vm396_vm3, %v1578_v15  ;;  %v937_v16 = vpop.permute.xlu1 %936  ;;  %v935_v17 = vpop.permute.xlu0 %934 }
  0xc7   : > { %v941_v18 = vsel %vm882_vm7, %v937_v16, %v939_v2  ;;  %v940_v19 = vsel %vm882_vm7, %v935_v17, %v937_v16  ;;  %v1586_v2 = vld [vmem:[%s1877_s2 + $0x28] sm:$0xff] }
  0xc8   : > { %954 = vmatpush.bf16.msrb.mxu2 %v940_v19  ;;  %968 = vmatpush.bf16.msrb.mxu3 %v941_v18 }
  0xcd   : > { %v1166_v36 = vpop.permute.xlu2 %1165 }
  0xce   : > { %v879_v21 = vpop.permute.xlu1 %878  ;;  %v877_v22 = vpop.permute.xlu0 %876 }
  0xcf   : > { %v884_v23 = vsel %vm882_vm7, %v879_v21, %v881_v11  ;;  %v883_v24 = vsel %vm882_vm7, %v877_v22, %v879_v21 }
  0xd0   : > { %v892_v26 = vsel %vm400_vm2, %v884_v23, 0  ;;  %v889_v27 = vsel %vm400_vm2, %v883_v24, 0 }
  0xd1   : > { %901 = vmatpush.bf16.msrb.mxu0 %v889_v27  ;;  %915 = vmatpush.bf16.msrb.mxu1 %v892_v26 }
  0xd4   : > { %1492 = vmatmul.msk.bf16.vlgmr.msra.gmra.mxu0 %vm396_vm3, %v1580_v25  ;;  %1493 = vmatmul.msk.bf16.vlgmr.msra.gmra.mxu1 %vm396_vm3, %v1580_v25 }
  0xd5   : > { %v1108_v47 = vpop.permute.xlu2 %1107 }
  0xd6   : > { %1500 = vmatmul.msk.bf16.vlgmr.msra.gmra.mxu2 %vm343_vm1, %v1581_v28  ;;  %1501 = vmatmul.msk.bf16.vlgmr.msra.gmra.mxu3 %vm343_vm1, %v1581_v28  ;;  %v1053_v30 = vpop.permute.xlu1 %1052  ;;  %v1051_v31 = vpop.permute.xlu0 %1050 }
  0xd7   : > { %v1057_v32 = vsel %vm1009_vm8, %v1053_v30, %v1055_v20  ;;  %v1056_v33 = vsel %vm1009_vm8, %v1051_v31, %v1053_v30 }
  0xd8   : > { %v1065_v34 = vsel %vm400_vm2, %v1057_v32, 0  ;;  %v1062_v35 = vsel %vm400_vm2, %v1056_v33, 0 }
  0xd9   : > { %1074 = vmatpush.bf16.msra.mxu2 %v1062_v35  ;;  %1088 = vmatpush.bf16.msra.mxu3 %v1065_v34 }
  0xdd   : > { %v1277_v56 = vpop.permute.xlu2 %1276 }
  0xde   : > { %v1006_v37 = vpop.permute.xlu1 %1005  ;;  %v1004_v38 = vpop.permute.xlu0 %1003 }
  0xdf   : > { %v1011_v39 = vsel %vm1009_vm8, %v1006_v37, %v1008_v29  ;;  %v1010_v40 = vsel %vm1009_vm8, %v1004_v38, %v1006_v37 }
  0xe0   : > { %1024 = vmatpush.bf16.msra.mxu0 %v1010_v40  ;;  %1038 = vmatpush.bf16.msra.mxu1 %v1011_v39 }
  0xe4   : > { %1508 = vmatmul.msk.bf16.vlgmr.msrb.gmra.mxu0 %vm396_vm3, %v1582_v41  ;;  %1509 = vmatmul.msk.bf16.vlgmr.msrb.gmra.mxu1 %vm396_vm3, %v1582_v41 }
  0xe5   : > { %v1219_v61 = vpop.permute.xlu2 %1218 }
  0xe6   : > { %1516 = vmatmul.msk.bf16.vlgmr.msrb.gmra.mxu2 %vm343_vm1, %v1583_v42  ;;  %1517 = vmatmul.msk.bf16.vlgmr.msrb.gmra.mxu3 %vm343_vm1, %v1583_v42  ;;  %v1164_v43 = vpop.permute.xlu1 %1163  ;;  %v1162_v44 = vpop.permute.xlu0 %1161 }
  0xe7   : > { %v1168_v45 = vsel %vm1109_vm9, %v1164_v43, %v1166_v36  ;;  %v1167_v46 = vsel %vm1109_vm9, %v1162_v44, %v1164_v43 }
  0xe8   : > { %1181 = vmatpush.bf16.msrb.mxu2 %v1167_v46  ;;  %1195 = vmatpush.bf16.msrb.mxu3 %v1168_v45 }
  0xee   : > { %v1106_v48 = vpop.permute.xlu1 %1105  ;;  %v1104_v49 = vpop.permute.xlu0 %1103 }
  0xef   : > { %v1111_v50 = vsel %vm1109_vm9, %v1106_v48, %v1108_v47  ;;  %v1110_v51 = vsel %vm1109_vm9, %v1104_v49, %v1106_v48 }
  0xf0   : > { %v1119_v53 = vsel %vm400_vm2, %v1111_v50, 0  ;;  %v1116_v54 = vsel %vm400_vm2, %v1110_v51, 0 }
  0xf1   : > { %1128 = vmatpush.bf16.msrb.mxu0 %v1116_v54  ;;  %1142 = vmatpush.bf16.msrb.mxu1 %v1119_v53 }
  0xf4   : > { %1526 = vmatmul.msk.bf16.vlgmr.msra.gmra.mxu0 %vm343_vm1, %v1585_v52  ;;  %1527 = vmatmul.msk.bf16.vlgmr.msra.gmra.mxu1 %vm343_vm1, %v1585_v52 }
  0xf6   : > { %1532 = vmatmul.msk.bf16.vlgmr.msra.gmra.mxu2 %vm396_vm3, %v1584_v55  ;;  %1533 = vmatmul.msk.bf16.vlgmr.msra.gmra.mxu3 %vm396_vm3, %v1584_v55  ;;  %v1275_v57 = vpop.permute.xlu1 %1274  ;;  %v1273_v58 = vpop.permute.xlu0 %1272 }
  0xf7   : > { %v1279_v59 = vsel %vm1220_vm10, %v1275_v57, %v1277_v56  ;;  %v1278_v60 = vsel %vm1220_vm10, %v1273_v58, %v1275_v57  ;;  %v370_v6 = vpop.f32.mrf.mxu1 }
  0xf8   : > { %1292 = vmatpush.bf16.msra.mxu2 %v1278_v60  ;;  %1306 = vmatpush.bf16.msra.mxu3 %v1279_v59 }
  0xfe   : > { %v1217_v62 = vpop.permute.xlu1 %1216  ;;  %v1215_v63 = vpop.permute.xlu0 %1214 }
  0xff   : > { %v1222_v0 = vsel %vm1220_vm10, %v1217_v62, %v1219_v61  ;;  %v1221_v1 = vsel %vm1220_vm10, %v1215_v63, %v1217_v62  ;;  %v372_v15 = vpop.f32.mrf.mxu1 }
 0x100   : > { %v1230_v3 = vsel %vm400_vm2, %v1222_v0, 0  ;;  %v1227_v4 = vsel %vm400_vm2, %v1221_v1, 0 }
 0x101   : > { %1239 = vmatpush.bf16.msra.mxu0 %v1227_v4  ;;  %1253 = vmatpush.bf16.msra.mxu1 %v1230_v3 }
 0x104   : > { %1540 = vmatmul.msk.bf16.vlgmr.msrb.gmra.mxu0 %vm396_vm3, %v1586_v2  ;;  %1541 = vmatmul.msk.bf16.vlgmr.msrb.gmra.mxu1 %vm396_vm3, %v1586_v2 }
 0x106   : > { %1548 = vmatmul.msk.bf16.vlgmr.msrb.gmra.mxu2 %vm343_vm1, %v1587_v5  ;;  %1549 = vmatmul.msk.bf16.vlgmr.msrb.gmra.mxu3 %vm343_vm1, %v1587_v5 }
 0x110   : > { %v356_v7 = vpop.f32.mrf.mxu0 }
 0x114   : > { %1556 = vmatmul.msk.bf16.vlgmr.msra.gmra.mxu0 %vm396_vm3, %v1588_v9  ;;  %1557 = vmatmul.msk.bf16.vlgmr.msra.gmra.mxu1 %vm396_vm3, %v1588_v9 }
 0x116   : > { %1564 = vmatmul.msk.bf16.vlgmr.msra.gmra.mxu2 %vm343_vm1, %v1589_v10  ;;  %1565 = vmatmul.msk.bf16.vlgmr.msra.gmra.mxu3 %vm343_vm1, %v1589_v10 }
 0x117   : > { %v416_v8 = vpop.f32.mrf.mxu2  ;;  %v430_v11 = vpop.f32.mrf.mxu3 }
 0x118   : > { %v417_v12 = vadd.f32 %v416_v8, %v356_v7  ;;  %v431_v13 = vadd.f32 %v430_v11, %v370_v6  ;;  %v358_v14 = vpop.f32.mrf.mxu0 }
 0x11f   : > { %v418_v16 = vpop.f32.mrf.mxu2  ;;  %v432_v17 = vpop.f32.mrf.mxu3 }
 0x120   : > { %v419_v18 = vadd.f32 %v418_v16, %v358_v14  ;;  %v433_v19 = vadd.f32 %v432_v17, %v372_v15  ;;  %v662_v15 = vpop.permute.xlu0 %661 }
 0x121   : > { %v470_v20 = vpop.f32.mrf.mxu0  ;;  %v484_v21 = vpop.f32.mrf.mxu1 }
 0x122   : > { %v489_v22 = vadd.f32 %v470_v20, %v417_v12  ;;  %v490_v23 = vadd.f32 %v484_v21, %v431_v13  ;;  %v300_v12 = vld [vmem:[%s1875_s0] sm:$0x3] }
 0x128   : > { %v523_v24 = vpop.f32.mrf.mxu2  ;;  %v537_v25 = vpop.f32.mrf.mxu3 }
 0x129   : > { %v542_v26 = vadd.f32 %v523_v24, %v489_v22  ;;  %v543_v27 = vadd.f32 %v537_v25, %v490_v23  ;;  %v472_v28 = vpop.f32.mrf.mxu0  ;;  %v486_v29 = vpop.f32.mrf.mxu1 }
 0x12a   : > { %v491_v30 = vadd.f32 %v472_v28, %v419_v18  ;;  %v492_v31 = vadd.f32 %v486_v29, %v433_v19  ;;  %v980_v18 = vperm.slane %v300_v12, 0  ;;  %v981_v19 = vperm.slane %v300_v12, 1 }
 0x130   : > { %v525_v32 = vpop.f32.mrf.mxu2  ;;  %v539_v33 = vpop.f32.mrf.mxu3 }
 0x131   : > { %v544_v34 = vadd.f32 %v525_v32, %v491_v30  ;;  %v545_v35 = vadd.f32 %v539_v33, %v492_v31  ;;  %v581_v36 = vpop.f32.mrf.mxu0  ;;  %v595_v37 = vpop.f32.mrf.mxu1 }
 0x132   : > { %v600_v38 = vadd.f32 %v581_v36, %v542_v26  ;;  %v601_v39 = vadd.f32 %v595_v37, %v543_v27  ;;  %v667_v36 = vpop.permute.xlu1 %666 }
 0x139   : > { %v634_v40 = vpop.f32.mrf.mxu2  ;;  %v648_v41 = vpop.f32.mrf.mxu3 }
 0x13a   : > { %v653_v42 = vadd.f32 %v634_v40, %v600_v38  ;;  %v654_v43 = vadd.f32 %v648_v41, %v601_v39  ;;  %v583_v44 = vpop.f32.mrf.mxu0  ;;  %v597_v45 = vpop.f32.mrf.mxu1 }
 0x13b   : > { %v602_v46 = vadd.f32 %v583_v44, %v544_v34  ;;  %v603_v47 = vadd.f32 %v597_v45, %v545_v35 }
 0x13c   : > { %v669_v26 = vadd.f32 %v662_v15, %v653_v42  ;;  %v670_v27 = vadd.f32 %v662_v15, %v654_v43 }
 0x141   : > { %v636_v48 = vpop.f32.mrf.mxu2  ;;  %v650_v49 = vpop.f32.mrf.mxu3 }
 0x142   : > { %v655_v50 = vadd.f32 %v636_v48, %v602_v46  ;;  %v656_v51 = vadd.f32 %v650_v49, %v603_v47  ;;  %v710_v52 = vpop.f32.mrf.mxu1  ;;  %v696_v53 = vpop.f32.mrf.mxu0 }
 0x144   : > { %v671_v47 = vadd.f32 %v667_v36, %v655_v50  ;;  %v672_v42 = vadd.f32 %v667_v36, %v656_v51 }
 0x149   : > { %v738_v54 = vpop.f32.mrf.mxu2  ;;  %v752_v55 = vpop.f32.mrf.mxu3 }
 0x14a   : > { %v739_v56 = vadd.f32 %v738_v54, %v696_v53  ;;  %v753_v57 = vadd.f32 %v752_v55, %v710_v52  ;;  %v698_v58 = vpop.f32.mrf.mxu0  ;;  %v712_v59 = vpop.f32.mrf.mxu1 }
 0x151   : > { %v740_v60 = vpop.f32.mrf.mxu2  ;;  %v754_v61 = vpop.f32.mrf.mxu3 }
 0x152   : > { %v741_v62 = vadd.f32 %v740_v60, %v698_v58  ;;  %v755_v63 = vadd.f32 %v754_v61, %v712_v59  ;;  %v792_v0 = vpop.f32.mrf.mxu0  ;;  %v806_v1 = vpop.f32.mrf.mxu1 }
 0x153   : > { %v811_v8 = vadd.f32 %v792_v0, %v739_v56  ;;  %v812_v11 = vadd.f32 %v806_v1, %v753_v57 }
 0x159   : > { %v845_v2 = vpop.f32.mrf.mxu2  ;;  %v859_v3 = vpop.f32.mrf.mxu3 }
 0x15a   : > { %v794_v4 = vpop.f32.mrf.mxu0  ;;  %v808_v5 = vpop.f32.mrf.mxu1  ;;  %v864_v13 = vadd.f32 %v845_v2, %v811_v8  ;;  %v865_v14 = vadd.f32 %v859_v3, %v812_v11 }
 0x15b   : > { %v813_v28 = vadd.f32 %v794_v4, %v741_v62  ;;  %v814_v29 = vadd.f32 %v808_v5, %v755_v63 }
 0x161   : > { %v847_v6 = vpop.f32.mrf.mxu2  ;;  %v861_v7 = vpop.f32.mrf.mxu3 }
 0x162   : > { %v903_v9 = vpop.f32.mrf.mxu0  ;;  %v917_v10 = vpop.f32.mrf.mxu1  ;;  %v866_v32 = vadd.f32 %v847_v6, %v813_v28  ;;  %v867_v33 = vadd.f32 %v861_v7, %v814_v29  ;;  %v301_v7 = vld [vmem:[%s1876_s1] sm:$0x3] }
 0x163   : > { %v922_v16 = vadd.f32 %v903_v9, %v864_v13  ;;  %v923_v17 = vadd.f32 %v917_v10, %v865_v14  ;;  %v1318_v12 = vperm.slane %v301_v7, 0  ;;  %v1319_v13 = vperm.slane %v301_v7, 1 }
 0x169   : > { %v956_v20 = vpop.f32.mrf.mxu2  ;;  %v970_v21 = vpop.f32.mrf.mxu3 }
 0x16a   : > { %v975_v22 = vadd.f32 %v956_v20, %v922_v16  ;;  %v976_v23 = vadd.f32 %v970_v21, %v923_v17  ;;  %v905_v24 = vpop.f32.mrf.mxu0  ;;  %v919_v25 = vpop.f32.mrf.mxu1 }
 0x16b   : > { %v924_v37 = vadd.f32 %v905_v24, %v866_v32  ;;  %v925_v38 = vadd.f32 %v919_v25, %v867_v33 }
 0x16c   : > { %v984_v30 = vmul.f32 %v980_v18, %v975_v22  ;;  %v985_v31 = vmul.f32 %v981_v19, %v976_v23 }
 0x16e   : > { %v988_v34 = vadd.f32 %v984_v30, %v669_v26  ;;  %v989_v35 = vadd.f32 %v985_v31, %v670_v27 }
 0x171   : > { %v958_v39 = vpop.f32.mrf.mxu2  ;;  %v972_v40 = vpop.f32.mrf.mxu3 }
 0x172   : > { %v977_v41 = vadd.f32 %v958_v39, %v924_v37  ;;  %v978_v44 = vadd.f32 %v972_v40, %v925_v38  ;;  %v1026_v45 = vpop.f32.mrf.mxu0  ;;  %v1040_v46 = vpop.f32.mrf.mxu1 }
 0x174   : > { %v986_v43 = vmul.f32 %v980_v18, %v977_v41  ;;  %v987_v48 = vmul.f32 %v981_v19, %v978_v44 }
 0x176   : > { %v990_v49 = vadd.f32 %v986_v43, %v671_v47  ;;  %v991_v52 = vadd.f32 %v987_v48, %v672_v42 }
 0x179   : > { %v1076_v53 = vpop.f32.mrf.mxu2  ;;  %v1090_v54 = vpop.f32.mrf.mxu3 }
 0x17a   : > { %v1028_v55 = vpop.f32.mrf.mxu0  ;;  %v1042_v56 = vpop.f32.mrf.mxu1  ;;  %v1077_v50 = vadd.f32 %v1076_v53, %v1026_v45  ;;  %v1091_v51 = vadd.f32 %v1090_v54, %v1040_v46 }
 0x181   : > { %v1078_v57 = vpop.f32.mrf.mxu2  ;;  %v1092_v58 = vpop.f32.mrf.mxu3 }
 0x182   : > { %v1130_v59 = vpop.f32.mrf.mxu0  ;;  %v1144_v60 = vpop.f32.mrf.mxu1  ;;  %v1079_v16 = vadd.f32 %v1078_v57, %v1028_v55  ;;  %v1093_v17 = vadd.f32 %v1092_v58, %v1042_v56 }
 0x183   : > { %v1149_v5 = vadd.f32 %v1130_v59, %v1077_v50  ;;  %v1150_v6 = vadd.f32 %v1144_v60, %v1091_v51 }
 0x189   : > { %v1183_v61 = vpop.f32.mrf.mxu2  ;;  %v1197_v62 = vpop.f32.mrf.mxu3 }
 0x18a   : > { %v1132_v63 = vpop.f32.mrf.mxu0  ;;  %v1146_v0 = vpop.f32.mrf.mxu1  ;;  %v1202_v9 = vadd.f32 %v1183_v61, %v1149_v5  ;;  %v1203_v10 = vadd.f32 %v1197_v62, %v1150_v6 }
 0x18b   : > { %v1151_v20 = vadd.f32 %v1132_v63, %v1079_v16  ;;  %v1152_v21 = vadd.f32 %v1146_v0, %v1093_v17 }
 0x191   : > { %v1185_v1 = vpop.f32.mrf.mxu2  ;;  %v1199_v2 = vpop.f32.mrf.mxu3 }
 0x192   : > { %v1241_v3 = vpop.f32.mrf.mxu0  ;;  %v1255_v4 = vpop.f32.mrf.mxu1  ;;  %v1204_v26 = vadd.f32 %v1185_v1, %v1151_v20  ;;  %v1205_v27 = vadd.f32 %v1199_v2, %v1152_v21 }
 0x193   : > { %v1260_v8 = vadd.f32 %v1241_v3, %v1202_v9  ;;  %v1261_v11 = vadd.f32 %v1255_v4, %v1203_v10 }
 0x199   : > { %v1294_v14 = vpop.f32.mrf.mxu2  ;;  %v1308_v15 = vpop.f32.mrf.mxu3 }
 0x19a   : > { %v1313_v18 = vadd.f32 %v1294_v14, %v1260_v8  ;;  %v1314_v19 = vadd.f32 %v1308_v15, %v1261_v11  ;;  %v1243_v24 = vpop.f32.mrf.mxu0  ;;  %v1257_v25 = vpop.f32.mrf.mxu1 }
 0x19b   : > { %v1262_v32 = vadd.f32 %v1243_v24, %v1204_v26  ;;  %v1263_v33 = vadd.f32 %v1257_v25, %v1205_v27 }
 0x19c   : > { %v1322_v22 = vmul.f32 %v1318_v12, %v1313_v18  ;;  %v1323_v23 = vmul.f32 %v1319_v13, %v1314_v19 }
 0x19e   : > { %v1326_v28 = vadd.f32 %v1322_v22, %v988_v34  ;;  %v1327_v29 = vadd.f32 %v1323_v23, %v989_v35 }
 0x1a0   : > { %v1330_v30 = vmax.f32 %v1326_v28, 0.0  ;;  %v1331_v31 = vmax.f32 %v1327_v29, 0.0 }
 0x1a1   : > { %v1296_v36 = vpop.f32.mrf.mxu2  ;;  %v1310_v37 = vpop.f32.mrf.mxu3 }
 0x1a2   : > { %v1334_v38 = vpack.c.bf16 %v1331_v31, %v1330_v30  ;;  %v1315_v39 = vadd.f32 %v1296_v36, %v1262_v32  ;;  %v1316_v40 = vadd.f32 %v1310_v37, %v1263_v33 }
 0x1a4   : > { %1336 = vst [vmem:[%s298_s26] sm:$0xff] %v1334_v38  ;;  %v1324_v41 = vmul.f32 %v1318_v12, %v1315_v39  ;;  %v1325_v44 = vmul.f32 %v1319_v13, %v1316_v40 }
 0x1a6   : > { %v1328_v45 = vadd.f32 %v1324_v41, %v990_v49  ;;  %v1329_v34 = vadd.f32 %v1325_v44, %v991_v52 }
 0x1a8   : > { %v1332_v46 = vmax.f32 %v1328_v45, 0.0  ;;  %v1333_v35 = vmax.f32 %v1329_v34, 0.0 }
 0x1aa   : > { %v1335_v47 = vpack.c.bf16 %v1333_v35, %v1332_v46 }
 0x1ac   : > { %1337 = vst [vmem:[%s298_s26 + $0x8] sm:$0xff] %v1335_v47 }
 0x1ad PF: > { %s17_s24 = sadd.s32 1, %s1617_s24  }
 0x1ae   : > { %p14_p4 = scmp.ge.s32.totalorder %s17_s24, 4  }
 0x1b0   :  { %16 = sbr.rel (!%p14_p4) target bundleno = 1 (0x1), region = 97 }

</bundles_post_ra>
